<compile_context>
chip_gen: v7x
topology: tpu7x:2x2x1
jax: 0.10.0
libtpu: 0.0.40
codegen_flags: <defaults>
</compile_context>

<pallas_src>
import functools

import jax
import jax.numpy as jnp
from jax.experimental import pallas as pl
from jax.experimental.pallas import tpu as pltpu

PAD = 128   # lane padding for hidden / output dims
BP = 8      # batch padded to one sublane tile


# ----------------------------------------------------------------------------
# Pallas kernel: full GRU stack (all layers) + final FC in one invocation
# ----------------------------------------------------------------------------
def gru_stack_kernel(x_ref, h0_ref, wi0_ref, wih_ref, whh_ref, bi_ref, bh_ref,
                     fcw_ref, fcb_ref,
                     out_ref, hn_ref,
                     seq_scr, gi_scr):
    """Shapes (P = PAD, G = 3*P, Bp = BP, TB = T*Bp):
      x_ref   : (TB, D)      f32  time-major input, batch padded to Bp, unpadded D
      h0_ref  : (L, Bp, P)   f32  initial hidden state per layer
      wi0_ref : (D, G)       bf16 layer-0 input weights  [r | z | n] (transposed)
      wih_ref : (L, P, G)    bf16 input weights for layers >= 1 (entry 0 unused)
      whh_ref : (L, P, G)    bf16 hidden weights [r | z | n] (transposed)
      bi_ref  : (L, 1, G)    f32  input biases
      bh_ref  : (L, 1, G)    f32  hidden biases
      fcw_ref : (P, P)       bf16 padded FC weight (H x O in top-left)
      fcb_ref : (1, P)       f32  padded FC bias
      out_ref : (Bp, P)      f32  padded FC output
      hn_ref  : (L, Bp, P)   f32  final hidden state per layer
      seq_scr : (TB, P)      f32  VMEM scratch: current layer's output sequence
      gi_scr  : (TB, G)      f32  VMEM scratch: precomputed input-side gates
    """
    TB, _ = x_ref.shape
    L, P, G = whh_ref.shape
    Bp = h0_ref.shape[1]
    T = TB // Bp

    h_last = None
    for l in range(L):  # static, small layer loop — all fused in one kernel
        # ---- Pre-pass: ONE batched input-side matmul for the whole sequence
        #      (independent of the recurrence -> off the serial critical path).
        if l == 0:
            src = x_ref[...]
            w_in = wi0_ref[...]
        else:
            src = seq_scr[...]
            w_in = wih_ref[l]
        gi_scr[...] = (jnp.dot(src.astype(jnp.bfloat16), w_in,
                               preferred_element_type=jnp.float32)
                       + bi_ref[l])

        # ---- Per-layer constants hoisted off the serial path ---------------
        w_hh = whh_ref[l]                                    # (P, G) bf16
        b_hh = jnp.broadcast_to(bh_ref[l], (Bp, G))          # (Bp, G) f32
        write_seq = l < L - 1   # last layer's sequence is never read again

        # ---- Serial recurrence: h lives in the loop carry (vregs) ----------
        def step(t, h_prev, w_hh=w_hh, b_hh=b_hh, write_seq=write_seq):
            gh = (jnp.dot(h_prev.astype(jnp.bfloat16), w_hh,
                          preferred_element_type=jnp.float32)
                  + b_hh)                                    # (Bp, G)
            gi_t = gi_scr[pl.ds(t * Bp, Bp), :]              # (Bp, G) aligned
            # PyTorch GRU gate order (r, z, n); r gates only the hidden term.
            r = jax.nn.sigmoid(gi_t[:, 0:P] + gh[:, 0:P])
            z = jax.nn.sigmoid(gi_t[:, P:2 * P] + gh[:, P:2 * P])
            n = jnp.tanh(gi_t[:, 2 * P:3 * P] + r * gh[:, 2 * P:3 * P])
            h_new = (1.0 - z) * n + z * h_prev
            if write_seq:
                seq_scr[pl.ds(t * Bp, Bp), :] = h_new
            return h_new

        h_last = jax.lax.fori_loop(0, T, step, h0_ref[l], unroll=True)
        hn_ref[l] = h_last

    # ---- Final Linear on the last layer's last hidden state ----------------
    out_ref[...] = (jnp.dot(h_last.astype(jnp.bfloat16), fcw_ref[...],
                            preferred_element_type=jnp.float32)
                    + fcb_ref[...]).astype(out_ref.dtype)


# ----------------------------------------------------------------------------
# Wrapper
# ----------------------------------------------------------------------------
def _full(shape):
    return pl.BlockSpec(shape, lambda i, _n=len(shape): (0,) * _n)


def _run_stack(x_btd, h0, params, *, pad=PAD, bp=BP):
    """x_btd: (B, T, D) batch-first; h0: (L, Bp, P). Returns (out_pad, hn)."""
    B, T, D = x_btd.shape
    L = h0.shape[0]
    G = 3 * pad
    TB = T * bp

    # time-major, batch padded to one sublane tile; feature dim left unpadded.
    xt = jnp.transpose(x_btd, (1, 0, 2)).astype(jnp.float32)        # (T, B, D)
    x2d = (jnp.zeros((T, bp, D), jnp.float32).at[:, :B, :].set(xt)
           .reshape(TB, D))

    in_arrays = (x2d, h0, params["wi0"], params["wih"], params["whh"],
                 params["bi"], params["bh"], params["fcw"], params["fcb"])

    grid_spec = pltpu.PrefetchScalarGridSpec(
        num_scalar_prefetch=0,
        grid=(1,),
        in_specs=[_full(a.shape) for a in in_arrays],
        out_specs=[_full((bp, pad)), _full((L, bp, pad))],
        scratch_shapes=[
            pltpu.VMEM((TB, pad), jnp.float32),   # seq_scr
            pltpu.VMEM((TB, G), jnp.float32),     # gi_scr
        ],
    )

    out_pad, hn = pl.pallas_call(
        gru_stack_kernel,
        out_shape=(jax.ShapeDtypeStruct((bp, pad), jnp.float32),
                   jax.ShapeDtypeStruct((L, bp, pad), jnp.float32)),
        grid_spec=grid_spec,
        compiler_params=pltpu.CompilerParams(
            dimension_semantics=("arbitrary",)),
    )(*in_arrays)
    return out_pad, hn


def gru_model_forward(x, params, *, num_layers, output_size, future_num=0,
                      pad=PAD, bp=BP):
    """x: (B, T, input_size), batch_first — mirrors the PyTorch module."""
    B = x.shape[0]
    h0 = jnp.zeros((num_layers, bp, pad), jnp.float32)

    out_pad, hn = _run_stack(x, h0, params, pad=pad, bp=bp)
    out = out_pad[:B, :output_size]
    outputs = [out]
    for _ in range(future_num):
        # Autoregressive continuation (like PyTorch, requires out_size == in_size).
        out_pad, hn = _run_stack(out[:, None, :], hn, params, pad=pad, bp=bp)
        out = out_pad[:B, :output_size]
        outputs.append(out)
    return jnp.stack(outputs, axis=1) if future_num > 0 else outputs[0]


# ----------------------------------------------------------------------------
# Parameter initialization (mirrors nn.GRU / nn.Linear), packed + lane-padded
# ----------------------------------------------------------------------------
def init_params(key, input_size, hidden_size, output_size, num_layers,
                pad=PAD):
    H, D = hidden_size, input_size
    G = 3 * pad
    k = 1.0 / jnp.sqrt(jnp.float32(H))

    raw = []
    wi0 = jnp.zeros((D, G), jnp.float32)
    wih = jnp.zeros((num_layers, pad, G), jnp.float32)   # entry 0 unused
    whh = jnp.zeros((num_layers, pad, G), jnp.float32)
    bi = jnp.zeros((num_layers, 1, G), jnp.float32)
    bh = jnp.zeros((num_layers, 1, G), jnp.float32)

    for l in range(num_layers):
        d_in = D if l == 0 else H
        key, k1, k2, k3, k4 = jax.random.split(key, 5)
        w_ih = jax.random.uniform(k1, (3 * H, d_in), jnp.float32, -k, k)
        w_hh = jax.random.uniform(k2, (3 * H, H), jnp.float32, -k, k)
        b_ih = jax.random.uniform(k3, (3 * H,), jnp.float32, -k, k)
        b_hh = jax.random.uniform(k4, (3 * H,), jnp.float32, -k, k)
        raw.append((w_ih, w_hh, b_ih, b_hh))

        for g in range(3):  # gate order r, z, n — each in its own 128-lane block
            rows = slice(g * H, (g + 1) * H)
            cols = slice(g * pad, g * pad + H)
            if l == 0:
                wi0 = wi0.at[:, cols].set(w_ih[rows, :].T)
            else:
                wih = wih.at[l, :H, cols].set(w_ih[rows, :].T)
            whh = whh.at[l, :H, cols].set(w_hh[rows, :].T)
            bi = bi.at[l, 0, cols].set(b_ih[rows])
            bh = bh.at[l, 0, cols].set(b_hh[rows])

    key, k1, k2 = jax.random.split(key, 3)
    fc_w = jax.random.uniform(k1, (output_size, H), jnp.float32, -k, k)
    fc_b = jax.random.uniform(k2, (output_size,), jnp.float32, -k, k)
    fcw = jnp.zeros((pad, pad), jnp.float32).at[:H, :output_size].set(fc_w.T)
    fcb = jnp.zeros((1, pad), jnp.float32).at[0, :output_size].set(fc_b)

    params = {
        "wi0": wi0.astype(jnp.bfloat16),
        "wih": wih.astype(jnp.bfloat16),
        "whh": whh.astype(jnp.bfloat16),
        "bi": bi, "bh": bh,
        "fcw": fcw.astype(jnp.bfloat16),
        "fcb": fcb,
    }
    return params, raw, (fc_w, fc_b)


# ----------------------------------------------------------------------------
# Pure-JAX reference (PyTorch nn.GRU semantics) for correctness check
# ----------------------------------------------------------------------------
def gru_reference(x, raw, fc_raw, num_layers, hidden_size):
    H = hidden_size
    B, T, _ = x.shape
    hp = jax.lax.Precision.HIGHEST
    seq = x.astype(jnp.float32)
    for l in range(num_layers):
        w_ih, w_hh, b_ih, b_hh = raw[l]
        h = jnp.zeros((B, H), jnp.float32)
        outs = []
        for t in range(T):
            xt = seq[:, t, :]
            gi = jnp.dot(xt, w_ih.T, precision=hp) + b_ih
            gh = jnp.dot(h, w_hh.T, precision=hp) + b_hh
            r = jax.nn.sigmoid(gi[:, :H] + gh[:, :H])
            z = jax.nn.sigmoid(gi[:, H:2 * H] + gh[:, H:2 * H])
            n = jnp.tanh(gi[:, 2 * H:] + r * gh[:, 2 * H:])
            h = (1.0 - z) * n + z * h
            outs.append(h)
        seq = jnp.stack(outs, axis=1)
    fc_w, fc_b = fc_raw
    return jnp.dot(seq[:, -1, :], fc_w.T, precision=hp) + fc_b


# ----------------------------------------------------------------------------
# Main
# ----------------------------------------------------------------------------
if __name__ == "__main__":
    input_size, hidden_size, output_size, num_layers = 16, 32, 8, 2
    B, T = 2, 8

    key = jax.random.PRNGKey(0)
    key, kx = jax.random.split(key)
    x = jax.random.normal(kx, (B, T, input_size), jnp.float32)

    params, raw, fc_raw = init_params(key, input_size, hidden_size,
                                      output_size, num_layers)

    fwd = jax.jit(functools.partial(
        gru_model_forward, params=params, num_layers=num_layers,
        output_size=output_size, future_num=0))

    out = jax.block_until_ready(fwd(x))
    assert out.shape == (B, output_size), out.shape

    ref = gru_reference(x, raw, fc_raw, num_layers, hidden_size)
    err = float(jnp.max(jnp.abs(out - ref)))
    # bf16 MXU weights -> slightly looser tolerance than f32-HIGHEST reference.
    assert err < 5e-3, f"max abs err vs reference: {err}"

    print("KERNEL_OK")
</pallas_src>

<mosaic_0001>
module attributes {stable_mosaic.version = 11 : i64} {
  func.func @gru_stack_kernel(%arg0: i32, %arg1: memref<64x16xf32, #tpu.memory_space<vmem>>, %arg2: memref<2x8x128xf32, #tpu.memory_space<vmem>>, %arg3: memref<16x384xbf16, #tpu.memory_space<vmem>>, %arg4: memref<2x128x384xbf16, #tpu.memory_space<vmem>>, %arg5: memref<2x128x384xbf16, #tpu.memory_space<vmem>>, %arg6: memref<2x1x384xf32, #tpu.memory_space<vmem>>, %arg7: memref<2x1x384xf32, #tpu.memory_space<vmem>>, %arg8: memref<128x128xbf16, #tpu.memory_space<vmem>>, %arg9: memref<1x128xf32, #tpu.memory_space<vmem>>, %arg10: memref<8x128xf32, #tpu.memory_space<vmem>>, %arg11: memref<2x8x128xf32, #tpu.memory_space<vmem>>, %arg12: memref<64x128xf32, #tpu.memory_space<vmem>>, %arg13: memref<64x384xf32, #tpu.memory_space<vmem>>) attributes {dimension_semantics = [#tpu.dimension_semantics<arbitrary>], iteration_bounds = array<i64: 1>, scalar_prefetch = 0 : i64, scratch_operands = 2 : i64, tpu.core_type = #tpu.core_type<tc>, window_params = [{pipeline_mode = #tpu.pipeline_mode<synchronous>, transform_indices = @transform_0, window_bounds = array<i64: 64, 16>}, {pipeline_mode = #tpu.pipeline_mode<synchronous>, transform_indices = @transform_1, window_bounds = array<i64: 2, 8, 128>}, {pipeline_mode = #tpu.pipeline_mode<synchronous>, transform_indices = @transform_2, window_bounds = array<i64: 16, 384>}, {pipeline_mode = #tpu.pipeline_mode<synchronous>, transform_indices = @transform_3, window_bounds = array<i64: 2, 128, 384>}, {pipeline_mode = #tpu.pipeline_mode<synchronous>, transform_indices = @transform_4, window_bounds = array<i64: 2, 128, 384>}, {pipeline_mode = #tpu.pipeline_mode<synchronous>, transform_indices = @transform_5, window_bounds = array<i64: 2, 1, 384>}, {pipeline_mode = #tpu.pipeline_mode<synchronous>, transform_indices = @transform_6, window_bounds = array<i64: 2, 1, 384>}, {pipeline_mode = #tpu.pipeline_mode<synchronous>, transform_indices = @transform_7, window_bounds = array<i64: 128, 128>}, {pipeline_mode = #tpu.pipeline_mode<synchronous>, transform_indices = @transform_8, window_bounds = array<i64: 1, 128>}, {pipeline_mode = #tpu.pipeline_mode<synchronous>, transform_indices = @transform_9, window_bounds = array<i64: 8, 128>}, {pipeline_mode = #tpu.pipeline_mode<synchronous>, transform_indices = @transform_10, window_bounds = array<i64: 2, 8, 128>}]} {
    %c0 = arith.constant 0 : index
    %c0_0 = arith.constant 0 : index
    %0 = vector.load %arg1[%c0, %c0_0] : memref<64x16xf32, #tpu.memory_space<vmem>>, vector<64x16xf32>
    %c0_1 = arith.constant 0 : index
    %c0_2 = arith.constant 0 : index
    %1 = vector.load %arg3[%c0_1, %c0_2] : memref<16x384xbf16, #tpu.memory_space<vmem>>, vector<16x384xbf16>
    %2 = arith.truncf %0 : vector<64x16xf32> to vector<64x16xbf16>
    %cst = arith.constant dense<0.000000e+00> : vector<64x384xf32>
    %3 = tpu.matmul %2, %1, %cst {dimension_numbers = #tpu.dot_dimension_numbers<[1], [0], [0], [1], [0, 0, 1, 1], [], []>} : vector<64x16xbf16>, vector<16x384xbf16>, vector<64x384xf32> -> vector<64x384xf32>
    %c0_3 = arith.constant 0 : index
    %c0_4 = arith.constant 0 : index
    %c0_5 = arith.constant 0 : index
    %4 = vector.load %arg6[%c0_3, %c0_4, %c0_5] : memref<2x1x384xf32, #tpu.memory_space<vmem>>, vector<1x1x384xf32>
    %5 = vector.shape_cast %4 : vector<1x1x384xf32> to vector<1x384xf32>
    %6 = vector.broadcast %5 : vector<1x384xf32> to vector<64x384xf32>
    %7 = arith.addf %3, %6 : vector<64x384xf32>
    %c0_6 = arith.constant 0 : index
    %c0_7 = arith.constant 0 : index
    %8 = vector.load %arg13[%c0_6, %c0_7] : memref<64x384xf32, #tpu.memory_space<vmem>>, vector<64x384xf32>
    tpu.vector_store %arg13[%c0_6, %c0_7], %7 {strides = array<i32>} : memref<64x384xf32, #tpu.memory_space<vmem>>, vector<64x384xf32>,
    %c0_8 = arith.constant 0 : index
    %c0_9 = arith.constant 0 : index
    %c0_10 = arith.constant 0 : index
    %9 = vector.load %arg5[%c0_8, %c0_9, %c0_10] : memref<2x128x384xbf16, #tpu.memory_space<vmem>>, vector<1x128x384xbf16>
    %10 = vector.shape_cast %9 : vector<1x128x384xbf16> to vector<128x384xbf16>
    %c0_11 = arith.constant 0 : index
    %c0_12 = arith.constant 0 : index
    %c0_13 = arith.constant 0 : index
    %11 = vector.load %arg7[%c0_11, %c0_12, %c0_13] : memref<2x1x384xf32, #tpu.memory_space<vmem>>, vector<1x1x384xf32>
    %12 = vector.shape_cast %11 : vector<1x1x384xf32> to vector<1x384xf32>
    %13 = vector.shape_cast %12 : vector<1x384xf32> to vector<1x384xf32>
    %14 = vector.broadcast %13 : vector<1x384xf32> to vector<8x384xf32>
    %c0_14 = arith.constant 0 : index
    %c0_15 = arith.constant 0 : index
    %c0_16 = arith.constant 0 : index
    %15 = vector.load %arg2[%c0_14, %c0_15, %c0_16] : memref<2x8x128xf32, #tpu.memory_space<vmem>>, vector<1x8x128xf32>
    %16 = vector.shape_cast %15 : vector<1x8x128xf32> to vector<8x128xf32>
    %c0_i32 = arith.constant 0 : i32
    %17 = arith.truncf %16 : vector<8x128xf32> to vector<8x128xbf16>
    %cst_17 = arith.constant dense<0.000000e+00> : vector<8x384xf32>
    %18 = tpu.matmul %17, %10, %cst_17 {dimension_numbers = #tpu.dot_dimension_numbers<[1], [0], [0], [1], [0, 0, 1, 1], [], []>} : vector<8x128xbf16>, vector<128x384xbf16>, vector<8x384xf32> -> vector<8x384xf32>
    %19 = arith.addf %18, %14 : vector<8x384xf32>
    %c8_i32 = arith.constant 8 : i32
    %20 = arith.muli %c0_i32, %c8_i32 : i32
    %21 = arith.index_cast %20 : i32 to index
    %c0_18 = arith.constant 0 : index
    %22 = vector.load %arg13[%21, %c0_18] : memref<64x384xf32, #tpu.memory_space<vmem>>, vector<8x384xf32>
    %23 = vector.extract_strided_slice %22 {offsets = [0, 0], sizes = [8, 128], strides = [1, 1]} : vector<8x384xf32> to vector<8x128xf32>
    %24 = vector.extract_strided_slice %19 {offsets = [0, 0], sizes = [8, 128], strides = [1, 1]} : vector<8x384xf32> to vector<8x128xf32>
    %25 = arith.addf %23, %24 : vector<8x128xf32>
    %26 = arith.negf %25 : vector<8x128xf32>
    %27 = math.exp %26 : vector<8x128xf32>
    %cst_19 = arith.constant 1.000000e+00 : f32
    %28 = vector.broadcast %cst_19 : f32 to vector<8x128xf32>
    %29 = arith.addf %28, %27 : vector<8x128xf32>
    %30 = arith.divf %28, %29 : vector<8x128xf32>
    %31 = vector.extract_strided_slice %22 {offsets = [0, 128], sizes = [8, 128], strides = [1, 1]} : vector<8x384xf32> to vector<8x128xf32>
    %32 = vector.extract_strided_slice %19 {offsets = [0, 128], sizes = [8, 128], strides = [1, 1]} : vector<8x384xf32> to vector<8x128xf32>
    %33 = arith.addf %31, %32 : vector<8x128xf32>
    %34 = arith.negf %33 : vector<8x128xf32>
    %35 = math.exp %34 : vector<8x128xf32>
    %cst_20 = arith.constant 1.000000e+00 : f32
    %36 = vector.broadcast %cst_20 : f32 to vector<8x128xf32>
    %37 = arith.addf %36, %35 : vector<8x128xf32>
    %38 = arith.divf %36, %37 : vector<8x128xf32>
    %39 = vector.extract_strided_slice %22 {offsets = [0, 256], sizes = [8, 128], strides = [1, 1]} : vector<8x384xf32> to vector<8x128xf32>
    %40 = vector.extract_strided_slice %19 {offsets = [0, 256], sizes = [8, 128], strides = [1, 1]} : vector<8x384xf32> to vector<8x128xf32>
    %41 = arith.mulf %30, %40 : vector<8x128xf32>
    %42 = arith.addf %39, %41 : vector<8x128xf32>
    %43 = math.tanh %42 : vector<8x128xf32>
    %cst_21 = arith.constant 1.000000e+00 : f32
    %44 = vector.broadcast %cst_21 : f32 to vector<8x128xf32>
    %45 = arith.subf %44, %38 : vector<8x128xf32>
    %46 = arith.mulf %45, %43 : vector<8x128xf32>
    %47 = arith.mulf %38, %16 : vector<8x128xf32>
    %48 = arith.addf %46, %47 : vector<8x128xf32>
    %c8_i32_22 = arith.constant 8 : i32
    %49 = arith.muli %c0_i32, %c8_i32_22 : i32
    %50 = arith.index_cast %49 : i32 to index
    %c0_23 = arith.constant 0 : index
    %51 = vector.load %arg12[%50, %c0_23] : memref<64x128xf32, #tpu.memory_space<vmem>>, vector<8x128xf32>
    tpu.vector_store %arg12[%50, %c0_23], %48 {strides = array<i32>} : memref<64x128xf32, #tpu.memory_space<vmem>>, vector<8x128xf32>,
    %c1_i32 = arith.constant 1 : i32
    %52 = arith.truncf %48 : vector<8x128xf32> to vector<8x128xbf16>
    %cst_24 = arith.constant dense<0.000000e+00> : vector<8x384xf32>
    %53 = tpu.matmul %52, %10, %cst_24 {dimension_numbers = #tpu.dot_dimension_numbers<[1], [0], [0], [1], [0, 0, 1, 1], [], []>} : vector<8x128xbf16>, vector<128x384xbf16>, vector<8x384xf32> -> vector<8x384xf32>
    %54 = arith.addf %53, %14 : vector<8x384xf32>
    %c8_i32_25 = arith.constant 8 : i32
    %55 = arith.muli %c1_i32, %c8_i32_25 : i32
    %56 = arith.index_cast %55 : i32 to index
    %c0_26 = arith.constant 0 : index
    %57 = vector.load %arg13[%56, %c0_26] : memref<64x384xf32, #tpu.memory_space<vmem>>, vector<8x384xf32>
    %58 = vector.extract_strided_slice %57 {offsets = [0, 0], sizes = [8, 128], strides = [1, 1]} : vector<8x384xf32> to vector<8x128xf32>
    %59 = vector.extract_strided_slice %54 {offsets = [0, 0], sizes = [8, 128], strides = [1, 1]} : vector<8x384xf32> to vector<8x128xf32>
    %60 = arith.addf %58, %59 : vector<8x128xf32>
    %61 = arith.negf %60 : vector<8x128xf32>
    %62 = math.exp %61 : vector<8x128xf32>
    %cst_27 = arith.constant 1.000000e+00 : f32
    %63 = vector.broadcast %cst_27 : f32 to vector<8x128xf32>
    %64 = arith.addf %63, %62 : vector<8x128xf32>
    %65 = arith.divf %63, %64 : vector<8x128xf32>
    %66 = vector.extract_strided_slice %57 {offsets = [0, 128], sizes = [8, 128], strides = [1, 1]} : vector<8x384xf32> to vector<8x128xf32>
    %67 = vector.extract_strided_slice %54 {offsets = [0, 128], sizes = [8, 128], strides = [1, 1]} : vector<8x384xf32> to vector<8x128xf32>
    %68 = arith.addf %66, %67 : vector<8x128xf32>
    %69 = arith.negf %68 : vector<8x128xf32>
    %70 = math.exp %69 : vector<8x128xf32>
    %cst_28 = arith.constant 1.000000e+00 : f32
    %71 = vector.broadcast %cst_28 : f32 to vector<8x128xf32>
    %72 = arith.addf %71, %70 : vector<8x128xf32>
    %73 = arith.divf %71, %72 : vector<8x128xf32>
    %74 = vector.extract_strided_slice %57 {offsets = [0, 256], sizes = [8, 128], strides = [1, 1]} : vector<8x384xf32> to vector<8x128xf32>
    %75 = vector.extract_strided_slice %54 {offsets = [0, 256], sizes = [8, 128], strides = [1, 1]} : vector<8x384xf32> to vector<8x128xf32>
    %76 = arith.mulf %65, %75 : vector<8x128xf32>
    %77 = arith.addf %74, %76 : vector<8x128xf32>
    %78 = math.tanh %77 : vector<8x128xf32>
    %cst_29 = arith.constant 1.000000e+00 : f32
    %79 = vector.broadcast %cst_29 : f32 to vector<8x128xf32>
    %80 = arith.subf %79, %73 : vector<8x128xf32>
    %81 = arith.mulf %80, %78 : vector<8x128xf32>
    %82 = arith.mulf %73, %48 : vector<8x128xf32>
    %83 = arith.addf %81, %82 : vector<8x128xf32>
    %c8_i32_30 = arith.constant 8 : i32
    %84 = arith.muli %c1_i32, %c8_i32_30 : i32
    %85 = arith.index_cast %84 : i32 to index
    %c0_31 = arith.constant 0 : index
    %86 = vector.load %arg12[%85, %c0_31] : memref<64x128xf32, #tpu.memory_space<vmem>>, vector<8x128xf32>
    tpu.vector_store %arg12[%85, %c0_31], %83 {strides = array<i32>} : memref<64x128xf32, #tpu.memory_space<vmem>>, vector<8x128xf32>,
    %c2_i32 = arith.constant 2 : i32
    %87 = arith.truncf %83 : vector<8x128xf32> to vector<8x128xbf16>
    %cst_32 = arith.constant dense<0.000000e+00> : vector<8x384xf32>
    %88 = tpu.matmul %87, %10, %cst_32 {dimension_numbers = #tpu.dot_dimension_numbers<[1], [0], [0], [1], [0, 0, 1, 1], [], []>} : vector<8x128xbf16>, vector<128x384xbf16>, vector<8x384xf32> -> vector<8x384xf32>
    %89 = arith.addf %88, %14 : vector<8x384xf32>
    %c8_i32_33 = arith.constant 8 : i32
    %90 = arith.muli %c2_i32, %c8_i32_33 : i32
    %91 = arith.index_cast %90 : i32 to index
    %c0_34 = arith.constant 0 : index
    %92 = vector.load %arg13[%91, %c0_34] : memref<64x384xf32, #tpu.memory_space<vmem>>, vector<8x384xf32>
    %93 = vector.extract_strided_slice %92 {offsets = [0, 0], sizes = [8, 128], strides = [1, 1]} : vector<8x384xf32> to vector<8x128xf32>
    %94 = vector.extract_strided_slice %89 {offsets = [0, 0], sizes = [8, 128], strides = [1, 1]} : vector<8x384xf32> to vector<8x128xf32>
    %95 = arith.addf %93, %94 : vector<8x128xf32>
    %96 = arith.negf %95 : vector<8x128xf32>
    %97 = math.exp %96 : vector<8x128xf32>
    %cst_35 = arith.constant 1.000000e+00 : f32
    %98 = vector.broadcast %cst_35 : f32 to vector<8x128xf32>
    %99 = arith.addf %98, %97 : vector<8x128xf32>
    %100 = arith.divf %98, %99 : vector<8x128xf32>
    %101 = vector.extract_strided_slice %92 {offsets = [0, 128], sizes = [8, 128], strides = [1, 1]} : vector<8x384xf32> to vector<8x128xf32>
    %102 = vector.extract_strided_slice %89 {offsets = [0, 128], sizes = [8, 128], strides = [1, 1]} : vector<8x384xf32> to vector<8x128xf32>
    %103 = arith.addf %101, %102 : vector<8x128xf32>
    %104 = arith.negf %103 : vector<8x128xf32>
    %105 = math.exp %104 : vector<8x128xf32>
    %cst_36 = arith.constant 1.000000e+00 : f32
    %106 = vector.broadcast %cst_36 : f32 to vector<8x128xf32>
    %107 = arith.addf %106, %105 : vector<8x128xf32>
    %108 = arith.divf %106, %107 : vector<8x128xf32>
    %109 = vector.extract_strided_slice %92 {offsets = [0, 256], sizes = [8, 128], strides = [1, 1]} : vector<8x384xf32> to vector<8x128xf32>
    %110 = vector.extract_strided_slice %89 {offsets = [0, 256], sizes = [8, 128], strides = [1, 1]} : vector<8x384xf32> to vector<8x128xf32>
    %111 = arith.mulf %100, %110 : vector<8x128xf32>
    %112 = arith.addf %109, %111 : vector<8x128xf32>
    %113 = math.tanh %112 : vector<8x128xf32>
    %cst_37 = arith.constant 1.000000e+00 : f32
    %114 = vector.broadcast %cst_37 : f32 to vector<8x128xf32>
    %115 = arith.subf %114, %108 : vector<8x128xf32>
    %116 = arith.mulf %115, %113 : vector<8x128xf32>
    %117 = arith.mulf %108, %83 : vector<8x128xf32>
    %118 = arith.addf %116, %117 : vector<8x128xf32>
    %c8_i32_38 = arith.constant 8 : i32
    %119 = arith.muli %c2_i32, %c8_i32_38 : i32
    %120 = arith.index_cast %119 : i32 to index
    %c0_39 = arith.constant 0 : index
    %121 = vector.load %arg12[%120, %c0_39] : memref<64x128xf32, #tpu.memory_space<vmem>>, vector<8x128xf32>
    tpu.vector_store %arg12[%120, %c0_39], %118 {strides = array<i32>} : memref<64x128xf32, #tpu.memory_space<vmem>>, vector<8x128xf32>,
    %c3_i32 = arith.constant 3 : i32
    %122 = arith.truncf %118 : vector<8x128xf32> to vector<8x128xbf16>
    %cst_40 = arith.constant dense<0.000000e+00> : vector<8x384xf32>
    %123 = tpu.matmul %122, %10, %cst_40 {dimension_numbers = #tpu.dot_dimension_numbers<[1], [0], [0], [1], [0, 0, 1, 1], [], []>} : vector<8x128xbf16>, vector<128x384xbf16>, vector<8x384xf32> -> vector<8x384xf32>
    %124 = arith.addf %123, %14 : vector<8x384xf32>
    %c8_i32_41 = arith.constant 8 : i32
    %125 = arith.muli %c3_i32, %c8_i32_41 : i32
    %126 = arith.index_cast %125 : i32 to index
    %c0_42 = arith.constant 0 : index
    %127 = vector.load %arg13[%126, %c0_42] : memref<64x384xf32, #tpu.memory_space<vmem>>, vector<8x384xf32>
    %128 = vector.extract_strided_slice %127 {offsets = [0, 0], sizes = [8, 128], strides = [1, 1]} : vector<8x384xf32> to vector<8x128xf32>
    %129 = vector.extract_strided_slice %124 {offsets = [0, 0], sizes = [8, 128], strides = [1, 1]} : vector<8x384xf32> to vector<8x128xf32>
    %130 = arith.addf %128, %129 : vector<8x128xf32>
    %131 = arith.negf %130 : vector<8x128xf32>
    %132 = math.exp %131 : vector<8x128xf32>
    %cst_43 = arith.constant 1.000000e+00 : f32
    %133 = vector.broadcast %cst_43 : f32 to vector<8x128xf32>
    %134 = arith.addf %133, %132 : vector<8x128xf32>
    %135 = arith.divf %133, %134 : vector<8x128xf32>
    %136 = vector.extract_strided_slice %127 {offsets = [0, 128], sizes = [8, 128], strides = [1, 1]} : vector<8x384xf32> to vector<8x128xf32>
    %137 = vector.extract_strided_slice %124 {offsets = [0, 128], sizes = [8, 128], strides = [1, 1]} : vector<8x384xf32> to vector<8x128xf32>
    %138 = arith.addf %136, %137 : vector<8x128xf32>
    %139 = arith.negf %138 : vector<8x128xf32>
    %140 = math.exp %139 : vector<8x128xf32>
    %cst_44 = arith.constant 1.000000e+00 : f32
    %141 = vector.broadcast %cst_44 : f32 to vector<8x128xf32>
    %142 = arith.addf %141, %140 : vector<8x128xf32>
    %143 = arith.divf %141, %142 : vector<8x128xf32>
    %144 = vector.extract_strided_slice %127 {offsets = [0, 256], sizes = [8, 128], strides = [1, 1]} : vector<8x384xf32> to vector<8x128xf32>
    %145 = vector.extract_strided_slice %124 {offsets = [0, 256], sizes = [8, 128], strides = [1, 1]} : vector<8x384xf32> to vector<8x128xf32>
    %146 = arith.mulf %135, %145 : vector<8x128xf32>
    %147 = arith.addf %144, %146 : vector<8x128xf32>
    %148 = math.tanh %147 : vector<8x128xf32>
    %cst_45 = arith.constant 1.000000e+00 : f32
    %149 = vector.broadcast %cst_45 : f32 to vector<8x128xf32>
    %150 = arith.subf %149, %143 : vector<8x128xf32>
    %151 = arith.mulf %150, %148 : vector<8x128xf32>
    %152 = arith.mulf %143, %118 : vector<8x128xf32>
    %153 = arith.addf %151, %152 : vector<8x128xf32>
    %c8_i32_46 = arith.constant 8 : i32
    %154 = arith.muli %c3_i32, %c8_i32_46 : i32
    %155 = arith.index_cast %154 : i32 to index
    %c0_47 = arith.constant 0 : index
    %156 = vector.load %arg12[%155, %c0_47] : memref<64x128xf32, #tpu.memory_space<vmem>>, vector<8x128xf32>
    tpu.vector_store %arg12[%155, %c0_47], %153 {strides = array<i32>} : memref<64x128xf32, #tpu.memory_space<vmem>>, vector<8x128xf32>,
    %c4_i32 = arith.constant 4 : i32
    %157 = arith.truncf %153 : vector<8x128xf32> to vector<8x128xbf16>
    %cst_48 = arith.constant dense<0.000000e+00> : vector<8x384xf32>
    %158 = tpu.matmul %157, %10, %cst_48 {dimension_numbers = #tpu.dot_dimension_numbers<[1], [0], [0], [1], [0, 0, 1, 1], [], []>} : vector<8x128xbf16>, vector<128x384xbf16>, vector<8x384xf32> -> vector<8x384xf32>
    %159 = arith.addf %158, %14 : vector<8x384xf32>
    %c8_i32_49 = arith.constant 8 : i32
    %160 = arith.muli %c4_i32, %c8_i32_49 : i32
    %161 = arith.index_cast %160 : i32 to index
    %c0_50 = arith.constant 0 : index
    %162 = vector.load %arg13[%161, %c0_50] : memref<64x384xf32, #tpu.memory_space<vmem>>, vector<8x384xf32>
    %163 = vector.extract_strided_slice %162 {offsets = [0, 0], sizes = [8, 128], strides = [1, 1]} : vector<8x384xf32> to vector<8x128xf32>
    %164 = vector.extract_strided_slice %159 {offsets = [0, 0], sizes = [8, 128], strides = [1, 1]} : vector<8x384xf32> to vector<8x128xf32>
    %165 = arith.addf %163, %164 : vector<8x128xf32>
    %166 = arith.negf %165 : vector<8x128xf32>
    %167 = math.exp %166 : vector<8x128xf32>
    %cst_51 = arith.constant 1.000000e+00 : f32
    %168 = vector.broadcast %cst_51 : f32 to vector<8x128xf32>
    %169 = arith.addf %168, %167 : vector<8x128xf32>
    %170 = arith.divf %168, %169 : vector<8x128xf32>
    %171 = vector.extract_strided_slice %162 {offsets = [0, 128], sizes = [8, 128], strides = [1, 1]} : vector<8x384xf32> to vector<8x128xf32>
    %172 = vector.extract_strided_slice %159 {offsets = [0, 128], sizes = [8, 128], strides = [1, 1]} : vector<8x384xf32> to vector<8x128xf32>
    %173 = arith.addf %171, %172 : vector<8x128xf32>
    %174 = arith.negf %173 : vector<8x128xf32>
    %175 = math.exp %174 : vector<8x128xf32>
    %cst_52 = arith.constant 1.000000e+00 : f32
    %176 = vector.broadcast %cst_52 : f32 to vector<8x128xf32>
    %177 = arith.addf %176, %175 : vector<8x128xf32>
    %178 = arith.divf %176, %177 : vector<8x128xf32>
    %179 = vector.extract_strided_slice %162 {offsets = [0, 256], sizes = [8, 128], strides = [1, 1]} : vector<8x384xf32> to vector<8x128xf32>
    %180 = vector.extract_strided_slice %159 {offsets = [0, 256], sizes = [8, 128], strides = [1, 1]} : vector<8x384xf32> to vector<8x128xf32>
    %181 = arith.mulf %170, %180 : vector<8x128xf32>
    %182 = arith.addf %179, %181 : vector<8x128xf32>
    %183 = math.tanh %182 : vector<8x128xf32>
    %cst_53 = arith.constant 1.000000e+00 : f32
    %184 = vector.broadcast %cst_53 : f32 to vector<8x128xf32>
    %185 = arith.subf %184, %178 : vector<8x128xf32>
    %186 = arith.mulf %185, %183 : vector<8x128xf32>
    %187 = arith.mulf %178, %153 : vector<8x128xf32>
    %188 = arith.addf %186, %187 : vector<8x128xf32>
    %c8_i32_54 = arith.constant 8 : i32
    %189 = arith.muli %c4_i32, %c8_i32_54 : i32
    %190 = arith.index_cast %189 : i32 to index
    %c0_55 = arith.constant 0 : index
    %191 = vector.load %arg12[%190, %c0_55] : memref<64x128xf32, #tpu.memory_space<vmem>>, vector<8x128xf32>
    tpu.vector_store %arg12[%190, %c0_55], %188 {strides = array<i32>} : memref<64x128xf32, #tpu.memory_space<vmem>>, vector<8x128xf32>,
    %c5_i32 = arith.constant 5 : i32
    %192 = arith.truncf %188 : vector<8x128xf32> to vector<8x128xbf16>
    %cst_56 = arith.constant dense<0.000000e+00> : vector<8x384xf32>
    %193 = tpu.matmul %192, %10, %cst_56 {dimension_numbers = #tpu.dot_dimension_numbers<[1], [0], [0], [1], [0, 0, 1, 1], [], []>} : vector<8x128xbf16>, vector<128x384xbf16>, vector<8x384xf32> -> vector<8x384xf32>
    %194 = arith.addf %193, %14 : vector<8x384xf32>
    %c8_i32_57 = arith.constant 8 : i32
    %195 = arith.muli %c5_i32, %c8_i32_57 : i32
    %196 = arith.index_cast %195 : i32 to index
    %c0_58 = arith.constant 0 : index
    %197 = vector.load %arg13[%196, %c0_58] : memref<64x384xf32, #tpu.memory_space<vmem>>, vector<8x384xf32>
    %198 = vector.extract_strided_slice %197 {offsets = [0, 0], sizes = [8, 128], strides = [1, 1]} : vector<8x384xf32> to vector<8x128xf32>
    %199 = vector.extract_strided_slice %194 {offsets = [0, 0], sizes = [8, 128], strides = [1, 1]} : vector<8x384xf32> to vector<8x128xf32>
    %200 = arith.addf %198, %199 : vector<8x128xf32>
    %201 = arith.negf %200 : vector<8x128xf32>
    %202 = math.exp %201 : vector<8x128xf32>
    %cst_59 = arith.constant 1.000000e+00 : f32
    %203 = vector.broadcast %cst_59 : f32 to vector<8x128xf32>
    %204 = arith.addf %203, %202 : vector<8x128xf32>
    %205 = arith.divf %203, %204 : vector<8x128xf32>
    %206 = vector.extract_strided_slice %197 {offsets = [0, 128], sizes = [8, 128], strides = [1, 1]} : vector<8x384xf32> to vector<8x128xf32>
    %207 = vector.extract_strided_slice %194 {offsets = [0, 128], sizes = [8, 128], strides = [1, 1]} : vector<8x384xf32> to vector<8x128xf32>
    %208 = arith.addf %206, %207 : vector<8x128xf32>
    %209 = arith.negf %208 : vector<8x128xf32>
    %210 = math.exp %209 : vector<8x128xf32>
    %cst_60 = arith.constant 1.000000e+00 : f32
    %211 = vector.broadcast %cst_60 : f32 to vector<8x128xf32>
    %212 = arith.addf %211, %210 : vector<8x128xf32>
    %213 = arith.divf %211, %212 : vector<8x128xf32>
    %214 = vector.extract_strided_slice %197 {offsets = [0, 256], sizes = [8, 128], strides = [1, 1]} : vector<8x384xf32> to vector<8x128xf32>
    %215 = vector.extract_strided_slice %194 {offsets = [0, 256], sizes = [8, 128], strides = [1, 1]} : vector<8x384xf32> to vector<8x128xf32>
    %216 = arith.mulf %205, %215 : vector<8x128xf32>
    %217 = arith.addf %214, %216 : vector<8x128xf32>
    %218 = math.tanh %217 : vector<8x128xf32>
    %cst_61 = arith.constant 1.000000e+00 : f32
    %219 = vector.broadcast %cst_61 : f32 to vector<8x128xf32>
    %220 = arith.subf %219, %213 : vector<8x128xf32>
    %221 = arith.mulf %220, %218 : vector<8x128xf32>
    %222 = arith.mulf %213, %188 : vector<8x128xf32>
    %223 = arith.addf %221, %222 : vector<8x128xf32>
    %c8_i32_62 = arith.constant 8 : i32
    %224 = arith.muli %c5_i32, %c8_i32_62 : i32
    %225 = arith.index_cast %224 : i32 to index
    %c0_63 = arith.constant 0 : index
    %226 = vector.load %arg12[%225, %c0_63] : memref<64x128xf32, #tpu.memory_space<vmem>>, vector<8x128xf32>
    tpu.vector_store %arg12[%225, %c0_63], %223 {strides = array<i32>} : memref<64x128xf32, #tpu.memory_space<vmem>>, vector<8x128xf32>,
    %c6_i32 = arith.constant 6 : i32
    %227 = arith.truncf %223 : vector<8x128xf32> to vector<8x128xbf16>
    %cst_64 = arith.constant dense<0.000000e+00> : vector<8x384xf32>
    %228 = tpu.matmul %227, %10, %cst_64 {dimension_numbers = #tpu.dot_dimension_numbers<[1], [0], [0], [1], [0, 0, 1, 1], [], []>} : vector<8x128xbf16>, vector<128x384xbf16>, vector<8x384xf32> -> vector<8x384xf32>
    %229 = arith.addf %228, %14 : vector<8x384xf32>
    %c8_i32_65 = arith.constant 8 : i32
    %230 = arith.muli %c6_i32, %c8_i32_65 : i32
    %231 = arith.index_cast %230 : i32 to index
    %c0_66 = arith.constant 0 : index
    %232 = vector.load %arg13[%231, %c0_66] : memref<64x384xf32, #tpu.memory_space<vmem>>, vector<8x384xf32>
    %233 = vector.extract_strided_slice %232 {offsets = [0, 0], sizes = [8, 128], strides = [1, 1]} : vector<8x384xf32> to vector<8x128xf32>
    %234 = vector.extract_strided_slice %229 {offsets = [0, 0], sizes = [8, 128], strides = [1, 1]} : vector<8x384xf32> to vector<8x128xf32>
    %235 = arith.addf %233, %234 : vector<8x128xf32>
    %236 = arith.negf %235 : vector<8x128xf32>
    %237 = math.exp %236 : vector<8x128xf32>
    %cst_67 = arith.constant 1.000000e+00 : f32
    %238 = vector.broadcast %cst_67 : f32 to vector<8x128xf32>
    %239 = arith.addf %238, %237 : vector<8x128xf32>
    %240 = arith.divf %238, %239 : vector<8x128xf32>
    %241 = vector.extract_strided_slice %232 {offsets = [0, 128], sizes = [8, 128], strides = [1, 1]} : vector<8x384xf32> to vector<8x128xf32>
    %242 = vector.extract_strided_slice %229 {offsets = [0, 128], sizes = [8, 128], strides = [1, 1]} : vector<8x384xf32> to vector<8x128xf32>
    %243 = arith.addf %241, %242 : vector<8x128xf32>
    %244 = arith.negf %243 : vector<8x128xf32>
    %245 = math.exp %244 : vector<8x128xf32>
    %cst_68 = arith.constant 1.000000e+00 : f32
    %246 = vector.broadcast %cst_68 : f32 to vector<8x128xf32>
    %247 = arith.addf %246, %245 : vector<8x128xf32>
    %248 = arith.divf %246, %247 : vector<8x128xf32>
    %249 = vector.extract_strided_slice %232 {offsets = [0, 256], sizes = [8, 128], strides = [1, 1]} : vector<8x384xf32> to vector<8x128xf32>
    %250 = vector.extract_strided_slice %229 {offsets = [0, 256], sizes = [8, 128], strides = [1, 1]} : vector<8x384xf32> to vector<8x128xf32>
    %251 = arith.mulf %240, %250 : vector<8x128xf32>
    %252 = arith.addf %249, %251 : vector<8x128xf32>
    %253 = math.tanh %252 : vector<8x128xf32>
    %cst_69 = arith.constant 1.000000e+00 : f32
    %254 = vector.broadcast %cst_69 : f32 to vector<8x128xf32>
    %255 = arith.subf %254, %248 : vector<8x128xf32>
    %256 = arith.mulf %255, %253 : vector<8x128xf32>
    %257 = arith.mulf %248, %223 : vector<8x128xf32>
    %258 = arith.addf %256, %257 : vector<8x128xf32>
    %c8_i32_70 = arith.constant 8 : i32
    %259 = arith.muli %c6_i32, %c8_i32_70 : i32
    %260 = arith.index_cast %259 : i32 to index
    %c0_71 = arith.constant 0 : index
    %261 = vector.load %arg12[%260, %c0_71] : memref<64x128xf32, #tpu.memory_space<vmem>>, vector<8x128xf32>
    tpu.vector_store %arg12[%260, %c0_71], %258 {strides = array<i32>} : memref<64x128xf32, #tpu.memory_space<vmem>>, vector<8x128xf32>,
    %c7_i32 = arith.constant 7 : i32
    %262 = arith.truncf %258 : vector<8x128xf32> to vector<8x128xbf16>
    %cst_72 = arith.constant dense<0.000000e+00> : vector<8x384xf32>
    %263 = tpu.matmul %262, %10, %cst_72 {dimension_numbers = #tpu.dot_dimension_numbers<[1], [0], [0], [1], [0, 0, 1, 1], [], []>} : vector<8x128xbf16>, vector<128x384xbf16>, vector<8x384xf32> -> vector<8x384xf32>
    %264 = arith.addf %263, %14 : vector<8x384xf32>
    %c8_i32_73 = arith.constant 8 : i32
    %265 = arith.muli %c7_i32, %c8_i32_73 : i32
    %266 = arith.index_cast %265 : i32 to index
    %c0_74 = arith.constant 0 : index
    %267 = vector.load %arg13[%266, %c0_74] : memref<64x384xf32, #tpu.memory_space<vmem>>, vector<8x384xf32>
    %268 = vector.extract_strided_slice %267 {offsets = [0, 0], sizes = [8, 128], strides = [1, 1]} : vector<8x384xf32> to vector<8x128xf32>
    %269 = vector.extract_strided_slice %264 {offsets = [0, 0], sizes = [8, 128], strides = [1, 1]} : vector<8x384xf32> to vector<8x128xf32>
    %270 = arith.addf %268, %269 : vector<8x128xf32>
    %271 = arith.negf %270 : vector<8x128xf32>
    %272 = math.exp %271 : vector<8x128xf32>
    %cst_75 = arith.constant 1.000000e+00 : f32
    %273 = vector.broadcast %cst_75 : f32 to vector<8x128xf32>
    %274 = arith.addf %273, %272 : vector<8x128xf32>
    %275 = arith.divf %273, %274 : vector<8x128xf32>
    %276 = vector.extract_strided_slice %267 {offsets = [0, 128], sizes = [8, 128], strides = [1, 1]} : vector<8x384xf32> to vector<8x128xf32>
    %277 = vector.extract_strided_slice %264 {offsets = [0, 128], sizes = [8, 128], strides = [1, 1]} : vector<8x384xf32> to vector<8x128xf32>
    %278 = arith.addf %276, %277 : vector<8x128xf32>
    %279 = arith.negf %278 : vector<8x128xf32>
    %280 = math.exp %279 : vector<8x128xf32>
    %cst_76 = arith.constant 1.000000e+00 : f32
    %281 = vector.broadcast %cst_76 : f32 to vector<8x128xf32>
    %282 = arith.addf %281, %280 : vector<8x128xf32>
    %283 = arith.divf %281, %282 : vector<8x128xf32>
    %284 = vector.extract_strided_slice %267 {offsets = [0, 256], sizes = [8, 128], strides = [1, 1]} : vector<8x384xf32> to vector<8x128xf32>
    %285 = vector.extract_strided_slice %264 {offsets = [0, 256], sizes = [8, 128], strides = [1, 1]} : vector<8x384xf32> to vector<8x128xf32>
    %286 = arith.mulf %275, %285 : vector<8x128xf32>
    %287 = arith.addf %284, %286 : vector<8x128xf32>
    %288 = math.tanh %287 : vector<8x128xf32>
    %cst_77 = arith.constant 1.000000e+00 : f32
    %289 = vector.broadcast %cst_77 : f32 to vector<8x128xf32>
    %290 = arith.subf %289, %283 : vector<8x128xf32>
    %291 = arith.mulf %290, %288 : vector<8x128xf32>
    %292 = arith.mulf %283, %258 : vector<8x128xf32>
    %293 = arith.addf %291, %292 : vector<8x128xf32>
    %c8_i32_78 = arith.constant 8 : i32
    %294 = arith.muli %c7_i32, %c8_i32_78 : i32
    %295 = arith.index_cast %294 : i32 to index
    %c0_79 = arith.constant 0 : index
    %296 = vector.load %arg12[%295, %c0_79] : memref<64x128xf32, #tpu.memory_space<vmem>>, vector<8x128xf32>
    tpu.vector_store %arg12[%295, %c0_79], %293 {strides = array<i32>} : memref<64x128xf32, #tpu.memory_space<vmem>>, vector<8x128xf32>,
    %c8_i32_80 = arith.constant 8 : i32
    %c0_81 = arith.constant 0 : index
    %c0_82 = arith.constant 0 : index
    %c0_83 = arith.constant 0 : index
    %297 = vector.load %arg11[%c0_81, %c0_82, %c0_83] : memref<2x8x128xf32, #tpu.memory_space<vmem>>, vector<1x8x128xf32>
    %298 = vector.shape_cast %297 : vector<1x8x128xf32> to vector<8x128xf32>
    %299 = vector.shape_cast %293 : vector<8x128xf32> to vector<1x8x128xf32>
    tpu.vector_store %arg11[%c0_81, %c0_82, %c0_83], %299 {strides = array<i32>} : memref<2x8x128xf32, #tpu.memory_space<vmem>>, vector<1x8x128xf32>,
    %c0_84 = arith.constant 0 : index
    %c0_85 = arith.constant 0 : index
    %300 = vector.load %arg12[%c0_84, %c0_85] : memref<64x128xf32, #tpu.memory_space<vmem>>, vector<64x128xf32>
    %c1 = arith.constant 1 : index
    %c0_86 = arith.constant 0 : index
    %c0_87 = arith.constant 0 : index
    %301 = vector.load %arg4[%c1, %c0_86, %c0_87] : memref<2x128x384xbf16, #tpu.memory_space<vmem>>, vector<1x128x384xbf16>
    %302 = vector.shape_cast %301 : vector<1x128x384xbf16> to vector<128x384xbf16>
    %303 = arith.truncf %300 : vector<64x128xf32> to vector<64x128xbf16>
    %cst_88 = arith.constant dense<0.000000e+00> : vector<64x384xf32>
    %304 = tpu.matmul %303, %302, %cst_88 {dimension_numbers = #tpu.dot_dimension_numbers<[1], [0], [0], [1], [0, 0, 1, 1], [], []>} : vector<64x128xbf16>, vector<128x384xbf16>, vector<64x384xf32> -> vector<64x384xf32>
    %c1_89 = arith.constant 1 : index
    %c0_90 = arith.constant 0 : index
    %c0_91 = arith.constant 0 : index
    %305 = vector.load %arg6[%c1_89, %c0_90, %c0_91] : memref<2x1x384xf32, #tpu.memory_space<vmem>>, vector<1x1x384xf32>
    %306 = vector.shape_cast %305 : vector<1x1x384xf32> to vector<1x384xf32>
    %307 = vector.broadcast %306 : vector<1x384xf32> to vector<64x384xf32>
    %308 = arith.addf %304, %307 : vector<64x384xf32>
    %c0_92 = arith.constant 0 : index
    %c0_93 = arith.constant 0 : index
    %309 = vector.load %arg13[%c0_92, %c0_93] : memref<64x384xf32, #tpu.memory_space<vmem>>, vector<64x384xf32>
    tpu.vector_store %arg13[%c0_92, %c0_93], %308 {strides = array<i32>} : memref<64x384xf32, #tpu.memory_space<vmem>>, vector<64x384xf32>,
    %c1_94 = arith.constant 1 : index
    %c0_95 = arith.constant 0 : index
    %c0_96 = arith.constant 0 : index
    %310 = vector.load %arg5[%c1_94, %c0_95, %c0_96] : memref<2x128x384xbf16, #tpu.memory_space<vmem>>, vector<1x128x384xbf16>
    %311 = vector.shape_cast %310 : vector<1x128x384xbf16> to vector<128x384xbf16>
    %c1_97 = arith.constant 1 : index
    %c0_98 = arith.constant 0 : index
    %c0_99 = arith.constant 0 : index
    %312 = vector.load %arg7[%c1_97, %c0_98, %c0_99] : memref<2x1x384xf32, #tpu.memory_space<vmem>>, vector<1x1x384xf32>
    %313 = vector.shape_cast %312 : vector<1x1x384xf32> to vector<1x384xf32>
    %314 = vector.shape_cast %313 : vector<1x384xf32> to vector<1x384xf32>
    %315 = vector.broadcast %314 : vector<1x384xf32> to vector<8x384xf32>
    %c1_100 = arith.constant 1 : index
    %c0_101 = arith.constant 0 : index
    %c0_102 = arith.constant 0 : index
    %316 = vector.load %arg2[%c1_100, %c0_101, %c0_102] : memref<2x8x128xf32, #tpu.memory_space<vmem>>, vector<1x8x128xf32>
    %317 = vector.shape_cast %316 : vector<1x8x128xf32> to vector<8x128xf32>
    %c0_i32_103 = arith.constant 0 : i32
    %318 = arith.truncf %317 : vector<8x128xf32> to vector<8x128xbf16>
    %cst_104 = arith.constant dense<0.000000e+00> : vector<8x384xf32>
    %319 = tpu.matmul %318, %311, %cst_104 {dimension_numbers = #tpu.dot_dimension_numbers<[1], [0], [0], [1], [0, 0, 1, 1], [], []>} : vector<8x128xbf16>, vector<128x384xbf16>, vector<8x384xf32> -> vector<8x384xf32>
    %320 = arith.addf %319, %315 : vector<8x384xf32>
    %c8_i32_105 = arith.constant 8 : i32
    %321 = arith.muli %c0_i32_103, %c8_i32_105 : i32
    %322 = arith.index_cast %321 : i32 to index
    %c0_106 = arith.constant 0 : index
    %323 = vector.load %arg13[%322, %c0_106] : memref<64x384xf32, #tpu.memory_space<vmem>>, vector<8x384xf32>
    %324 = vector.extract_strided_slice %323 {offsets = [0, 0], sizes = [8, 128], strides = [1, 1]} : vector<8x384xf32> to vector<8x128xf32>
    %325 = vector.extract_strided_slice %320 {offsets = [0, 0], sizes = [8, 128], strides = [1, 1]} : vector<8x384xf32> to vector<8x128xf32>
    %326 = arith.addf %324, %325 : vector<8x128xf32>
    %327 = arith.negf %326 : vector<8x128xf32>
    %328 = math.exp %327 : vector<8x128xf32>
    %cst_107 = arith.constant 1.000000e+00 : f32
    %329 = vector.broadcast %cst_107 : f32 to vector<8x128xf32>
    %330 = arith.addf %329, %328 : vector<8x128xf32>
    %331 = arith.divf %329, %330 : vector<8x128xf32>
    %332 = vector.extract_strided_slice %323 {offsets = [0, 128], sizes = [8, 128], strides = [1, 1]} : vector<8x384xf32> to vector<8x128xf32>
    %333 = vector.extract_strided_slice %320 {offsets = [0, 128], sizes = [8, 128], strides = [1, 1]} : vector<8x384xf32> to vector<8x128xf32>
    %334 = arith.addf %332, %333 : vector<8x128xf32>
    %335 = arith.negf %334 : vector<8x128xf32>
    %336 = math.exp %335 : vector<8x128xf32>
    %cst_108 = arith.constant 1.000000e+00 : f32
    %337 = vector.broadcast %cst_108 : f32 to vector<8x128xf32>
    %338 = arith.addf %337, %336 : vector<8x128xf32>
    %339 = arith.divf %337, %338 : vector<8x128xf32>
    %340 = vector.extract_strided_slice %323 {offsets = [0, 256], sizes = [8, 128], strides = [1, 1]} : vector<8x384xf32> to vector<8x128xf32>
    %341 = vector.extract_strided_slice %320 {offsets = [0, 256], sizes = [8, 128], strides = [1, 1]} : vector<8x384xf32> to vector<8x128xf32>
    %342 = arith.mulf %331, %341 : vector<8x128xf32>
    %343 = arith.addf %340, %342 : vector<8x128xf32>
    %344 = math.tanh %343 : vector<8x128xf32>
    %cst_109 = arith.constant 1.000000e+00 : f32
    %345 = vector.broadcast %cst_109 : f32 to vector<8x128xf32>
    %346 = arith.subf %345, %339 : vector<8x128xf32>
    %347 = arith.mulf %346, %344 : vector<8x128xf32>
    %348 = arith.mulf %339, %317 : vector<8x128xf32>
    %349 = arith.addf %347, %348 : vector<8x128xf32>
    %c1_i32_110 = arith.constant 1 : i32
    %350 = arith.truncf %349 : vector<8x128xf32> to vector<8x128xbf16>
    %cst_111 = arith.constant dense<0.000000e+00> : vector<8x384xf32>
    %351 = tpu.matmul %350, %311, %cst_111 {dimension_numbers = #tpu.dot_dimension_numbers<[1], [0], [0], [1], [0, 0, 1, 1], [], []>} : vector<8x128xbf16>, vector<128x384xbf16>, vector<8x384xf32> -> vector<8x384xf32>
    %352 = arith.addf %351, %315 : vector<8x384xf32>
    %c8_i32_112 = arith.constant 8 : i32
    %353 = arith.muli %c1_i32_110, %c8_i32_112 : i32
    %354 = arith.index_cast %353 : i32 to index
    %c0_113 = arith.constant 0 : index
    %355 = vector.load %arg13[%354, %c0_113] : memref<64x384xf32, #tpu.memory_space<vmem>>, vector<8x384xf32>
    %356 = vector.extract_strided_slice %355 {offsets = [0, 0], sizes = [8, 128], strides = [1, 1]} : vector<8x384xf32> to vector<8x128xf32>
    %357 = vector.extract_strided_slice %352 {offsets = [0, 0], sizes = [8, 128], strides = [1, 1]} : vector<8x384xf32> to vector<8x128xf32>
    %358 = arith.addf %356, %357 : vector<8x128xf32>
    %359 = arith.negf %358 : vector<8x128xf32>
    %360 = math.exp %359 : vector<8x128xf32>
    %cst_114 = arith.constant 1.000000e+00 : f32
    %361 = vector.broadcast %cst_114 : f32 to vector<8x128xf32>
    %362 = arith.addf %361, %360 : vector<8x128xf32>
    %363 = arith.divf %361, %362 : vector<8x128xf32>
    %364 = vector.extract_strided_slice %355 {offsets = [0, 128], sizes = [8, 128], strides = [1, 1]} : vector<8x384xf32> to vector<8x128xf32>
    %365 = vector.extract_strided_slice %352 {offsets = [0, 128], sizes = [8, 128], strides = [1, 1]} : vector<8x384xf32> to vector<8x128xf32>
    %366 = arith.addf %364, %365 : vector<8x128xf32>
    %367 = arith.negf %366 : vector<8x128xf32>
    %368 = math.exp %367 : vector<8x128xf32>
    %cst_115 = arith.constant 1.000000e+00 : f32
    %369 = vector.broadcast %cst_115 : f32 to vector<8x128xf32>
    %370 = arith.addf %369, %368 : vector<8x128xf32>
    %371 = arith.divf %369, %370 : vector<8x128xf32>
    %372 = vector.extract_strided_slice %355 {offsets = [0, 256], sizes = [8, 128], strides = [1, 1]} : vector<8x384xf32> to vector<8x128xf32>
    %373 = vector.extract_strided_slice %352 {offsets = [0, 256], sizes = [8, 128], strides = [1, 1]} : vector<8x384xf32> to vector<8x128xf32>
    %374 = arith.mulf %363, %373 : vector<8x128xf32>
    %375 = arith.addf %372, %374 : vector<8x128xf32>
    %376 = math.tanh %375 : vector<8x128xf32>
    %cst_116 = arith.constant 1.000000e+00 : f32
    %377 = vector.broadcast %cst_116 : f32 to vector<8x128xf32>
    %378 = arith.subf %377, %371 : vector<8x128xf32>
    %379 = arith.mulf %378, %376 : vector<8x128xf32>
    %380 = arith.mulf %371, %349 : vector<8x128xf32>
    %381 = arith.addf %379, %380 : vector<8x128xf32>
    %c2_i32_117 = arith.constant 2 : i32
    %382 = arith.truncf %381 : vector<8x128xf32> to vector<8x128xbf16>
    %cst_118 = arith.constant dense<0.000000e+00> : vector<8x384xf32>
    %383 = tpu.matmul %382, %311, %cst_118 {dimension_numbers = #tpu.dot_dimension_numbers<[1], [0], [0], [1], [0, 0, 1, 1], [], []>} : vector<8x128xbf16>, vector<128x384xbf16>, vector<8x384xf32> -> vector<8x384xf32>
    %384 = arith.addf %383, %315 : vector<8x384xf32>
    %c8_i32_119 = arith.constant 8 : i32
    %385 = arith.muli %c2_i32_117, %c8_i32_119 : i32
    %386 = arith.index_cast %385 : i32 to index
    %c0_120 = arith.constant 0 : index
    %387 = vector.load %arg13[%386, %c0_120] : memref<64x384xf32, #tpu.memory_space<vmem>>, vector<8x384xf32>
    %388 = vector.extract_strided_slice %387 {offsets = [0, 0], sizes = [8, 128], strides = [1, 1]} : vector<8x384xf32> to vector<8x128xf32>
    %389 = vector.extract_strided_slice %384 {offsets = [0, 0], sizes = [8, 128], strides = [1, 1]} : vector<8x384xf32> to vector<8x128xf32>
    %390 = arith.addf %388, %389 : vector<8x128xf32>
    %391 = arith.negf %390 : vector<8x128xf32>
    %392 = math.exp %391 : vector<8x128xf32>
    %cst_121 = arith.constant 1.000000e+00 : f32
    %393 = vector.broadcast %cst_121 : f32 to vector<8x128xf32>
    %394 = arith.addf %393, %392 : vector<8x128xf32>
    %395 = arith.divf %393, %394 : vector<8x128xf32>
    %396 = vector.extract_strided_slice %387 {offsets = [0, 128], sizes = [8, 128], strides = [1, 1]} : vector<8x384xf32> to vector<8x128xf32>
    %397 = vector.extract_strided_slice %384 {offsets = [0, 128], sizes = [8, 128], strides = [1, 1]} : vector<8x384xf32> to vector<8x128xf32>
    %398 = arith.addf %396, %397 : vector<8x128xf32>
    %399 = arith.negf %398 : vector<8x128xf32>
    %400 = math.exp %399 : vector<8x128xf32>
    %cst_122 = arith.constant 1.000000e+00 : f32
    %401 = vector.broadcast %cst_122 : f32 to vector<8x128xf32>
    %402 = arith.addf %401, %400 : vector<8x128xf32>
    %403 = arith.divf %401, %402 : vector<8x128xf32>
    %404 = vector.extract_strided_slice %387 {offsets = [0, 256], sizes = [8, 128], strides = [1, 1]} : vector<8x384xf32> to vector<8x128xf32>
    %405 = vector.extract_strided_slice %384 {offsets = [0, 256], sizes = [8, 128], strides = [1, 1]} : vector<8x384xf32> to vector<8x128xf32>
    %406 = arith.mulf %395, %405 : vector<8x128xf32>
    %407 = arith.addf %404, %406 : vector<8x128xf32>
    %408 = math.tanh %407 : vector<8x128xf32>
    %cst_123 = arith.constant 1.000000e+00 : f32
    %409 = vector.broadcast %cst_123 : f32 to vector<8x128xf32>
    %410 = arith.subf %409, %403 : vector<8x128xf32>
    %411 = arith.mulf %410, %408 : vector<8x128xf32>
    %412 = arith.mulf %403, %381 : vector<8x128xf32>
    %413 = arith.addf %411, %412 : vector<8x128xf32>
    %c3_i32_124 = arith.constant 3 : i32
    %414 = arith.truncf %413 : vector<8x128xf32> to vector<8x128xbf16>
    %cst_125 = arith.constant dense<0.000000e+00> : vector<8x384xf32>
    %415 = tpu.matmul %414, %311, %cst_125 {dimension_numbers = #tpu.dot_dimension_numbers<[1], [0], [0], [1], [0, 0, 1, 1], [], []>} : vector<8x128xbf16>, vector<128x384xbf16>, vector<8x384xf32> -> vector<8x384xf32>
    %416 = arith.addf %415, %315 : vector<8x384xf32>
    %c8_i32_126 = arith.constant 8 : i32
    %417 = arith.muli %c3_i32_124, %c8_i32_126 : i32
    %418 = arith.index_cast %417 : i32 to index
    %c0_127 = arith.constant 0 : index
    %419 = vector.load %arg13[%418, %c0_127] : memref<64x384xf32, #tpu.memory_space<vmem>>, vector<8x384xf32>
    %420 = vector.extract_strided_slice %419 {offsets = [0, 0], sizes = [8, 128], strides = [1, 1]} : vector<8x384xf32> to vector<8x128xf32>
    %421 = vector.extract_strided_slice %416 {offsets = [0, 0], sizes = [8, 128], strides = [1, 1]} : vector<8x384xf32> to vector<8x128xf32>
    %422 = arith.addf %420, %421 : vector<8x128xf32>
    %423 = arith.negf %422 : vector<8x128xf32>
    %424 = math.exp %423 : vector<8x128xf32>
    %cst_128 = arith.constant 1.000000e+00 : f32
    %425 = vector.broadcast %cst_128 : f32 to vector<8x128xf32>
    %426 = arith.addf %425, %424 : vector<8x128xf32>
    %427 = arith.divf %425, %426 : vector<8x128xf32>
    %428 = vector.extract_strided_slice %419 {offsets = [0, 128], sizes = [8, 128], strides = [1, 1]} : vector<8x384xf32> to vector<8x128xf32>
    %429 = vector.extract_strided_slice %416 {offsets = [0, 128], sizes = [8, 128], strides = [1, 1]} : vector<8x384xf32> to vector<8x128xf32>
    %430 = arith.addf %428, %429 : vector<8x128xf32>
    %431 = arith.negf %430 : vector<8x128xf32>
    %432 = math.exp %431 : vector<8x128xf32>
    %cst_129 = arith.constant 1.000000e+00 : f32
    %433 = vector.broadcast %cst_129 : f32 to vector<8x128xf32>
    %434 = arith.addf %433, %432 : vector<8x128xf32>
    %435 = arith.divf %433, %434 : vector<8x128xf32>
    %436 = vector.extract_strided_slice %419 {offsets = [0, 256], sizes = [8, 128], strides = [1, 1]} : vector<8x384xf32> to vector<8x128xf32>
    %437 = vector.extract_strided_slice %416 {offsets = [0, 256], sizes = [8, 128], strides = [1, 1]} : vector<8x384xf32> to vector<8x128xf32>
    %438 = arith.mulf %427, %437 : vector<8x128xf32>
    %439 = arith.addf %436, %438 : vector<8x128xf32>
    %440 = math.tanh %439 : vector<8x128xf32>
    %cst_130 = arith.constant 1.000000e+00 : f32
    %441 = vector.broadcast %cst_130 : f32 to vector<8x128xf32>
    %442 = arith.subf %441, %435 : vector<8x128xf32>
    %443 = arith.mulf %442, %440 : vector<8x128xf32>
    %444 = arith.mulf %435, %413 : vector<8x128xf32>
    %445 = arith.addf %443, %444 : vector<8x128xf32>
    %c4_i32_131 = arith.constant 4 : i32
    %446 = arith.truncf %445 : vector<8x128xf32> to vector<8x128xbf16>
    %cst_132 = arith.constant dense<0.000000e+00> : vector<8x384xf32>
    %447 = tpu.matmul %446, %311, %cst_132 {dimension_numbers = #tpu.dot_dimension_numbers<[1], [0], [0], [1], [0, 0, 1, 1], [], []>} : vector<8x128xbf16>, vector<128x384xbf16>, vector<8x384xf32> -> vector<8x384xf32>
    %448 = arith.addf %447, %315 : vector<8x384xf32>
    %c8_i32_133 = arith.constant 8 : i32
    %449 = arith.muli %c4_i32_131, %c8_i32_133 : i32
    %450 = arith.index_cast %449 : i32 to index
    %c0_134 = arith.constant 0 : index
    %451 = vector.load %arg13[%450, %c0_134] : memref<64x384xf32, #tpu.memory_space<vmem>>, vector<8x384xf32>
    %452 = vector.extract_strided_slice %451 {offsets = [0, 0], sizes = [8, 128], strides = [1, 1]} : vector<8x384xf32> to vector<8x128xf32>
    %453 = vector.extract_strided_slice %448 {offsets = [0, 0], sizes = [8, 128], strides = [1, 1]} : vector<8x384xf32> to vector<8x128xf32>
    %454 = arith.addf %452, %453 : vector<8x128xf32>
    %455 = arith.negf %454 : vector<8x128xf32>
    %456 = math.exp %455 : vector<8x128xf32>
    %cst_135 = arith.constant 1.000000e+00 : f32
    %457 = vector.broadcast %cst_135 : f32 to vector<8x128xf32>
    %458 = arith.addf %457, %456 : vector<8x128xf32>
    %459 = arith.divf %457, %458 : vector<8x128xf32>
    %460 = vector.extract_strided_slice %451 {offsets = [0, 128], sizes = [8, 128], strides = [1, 1]} : vector<8x384xf32> to vector<8x128xf32>
    %461 = vector.extract_strided_slice %448 {offsets = [0, 128], sizes = [8, 128], strides = [1, 1]} : vector<8x384xf32> to vector<8x128xf32>
    %462 = arith.addf %460, %461 : vector<8x128xf32>
    %463 = arith.negf %462 : vector<8x128xf32>
    %464 = math.exp %463 : vector<8x128xf32>
    %cst_136 = arith.constant 1.000000e+00 : f32
    %465 = vector.broadcast %cst_136 : f32 to vector<8x128xf32>
    %466 = arith.addf %465, %464 : vector<8x128xf32>
    %467 = arith.divf %465, %466 : vector<8x128xf32>
    %468 = vector.extract_strided_slice %451 {offsets = [0, 256], sizes = [8, 128], strides = [1, 1]} : vector<8x384xf32> to vector<8x128xf32>
    %469 = vector.extract_strided_slice %448 {offsets = [0, 256], sizes = [8, 128], strides = [1, 1]} : vector<8x384xf32> to vector<8x128xf32>
    %470 = arith.mulf %459, %469 : vector<8x128xf32>
    %471 = arith.addf %468, %470 : vector<8x128xf32>
    %472 = math.tanh %471 : vector<8x128xf32>
    %cst_137 = arith.constant 1.000000e+00 : f32
    %473 = vector.broadcast %cst_137 : f32 to vector<8x128xf32>
    %474 = arith.subf %473, %467 : vector<8x128xf32>
    %475 = arith.mulf %474, %472 : vector<8x128xf32>
    %476 = arith.mulf %467, %445 : vector<8x128xf32>
    %477 = arith.addf %475, %476 : vector<8x128xf32>
    %c5_i32_138 = arith.constant 5 : i32
    %478 = arith.truncf %477 : vector<8x128xf32> to vector<8x128xbf16>
    %cst_139 = arith.constant dense<0.000000e+00> : vector<8x384xf32>
    %479 = tpu.matmul %478, %311, %cst_139 {dimension_numbers = #tpu.dot_dimension_numbers<[1], [0], [0], [1], [0, 0, 1, 1], [], []>} : vector<8x128xbf16>, vector<128x384xbf16>, vector<8x384xf32> -> vector<8x384xf32>
    %480 = arith.addf %479, %315 : vector<8x384xf32>
    %c8_i32_140 = arith.constant 8 : i32
    %481 = arith.muli %c5_i32_138, %c8_i32_140 : i32
    %482 = arith.index_cast %481 : i32 to index
    %c0_141 = arith.constant 0 : index
    %483 = vector.load %arg13[%482, %c0_141] : memref<64x384xf32, #tpu.memory_space<vmem>>, vector<8x384xf32>
    %484 = vector.extract_strided_slice %483 {offsets = [0, 0], sizes = [8, 128], strides = [1, 1]} : vector<8x384xf32> to vector<8x128xf32>
    %485 = vector.extract_strided_slice %480 {offsets = [0, 0], sizes = [8, 128], strides = [1, 1]} : vector<8x384xf32> to vector<8x128xf32>
    %486 = arith.addf %484, %485 : vector<8x128xf32>
    %487 = arith.negf %486 : vector<8x128xf32>
    %488 = math.exp %487 : vector<8x128xf32>
    %cst_142 = arith.constant 1.000000e+00 : f32
    %489 = vector.broadcast %cst_142 : f32 to vector<8x128xf32>
    %490 = arith.addf %489, %488 : vector<8x128xf32>
    %491 = arith.divf %489, %490 : vector<8x128xf32>
    %492 = vector.extract_strided_slice %483 {offsets = [0, 128], sizes = [8, 128], strides = [1, 1]} : vector<8x384xf32> to vector<8x128xf32>
    %493 = vector.extract_strided_slice %480 {offsets = [0, 128], sizes = [8, 128], strides = [1, 1]} : vector<8x384xf32> to vector<8x128xf32>
    %494 = arith.addf %492, %493 : vector<8x128xf32>
    %495 = arith.negf %494 : vector<8x128xf32>
    %496 = math.exp %495 : vector<8x128xf32>
    %cst_143 = arith.constant 1.000000e+00 : f32
    %497 = vector.broadcast %cst_143 : f32 to vector<8x128xf32>
    %498 = arith.addf %497, %496 : vector<8x128xf32>
    %499 = arith.divf %497, %498 : vector<8x128xf32>
    %500 = vector.extract_strided_slice %483 {offsets = [0, 256], sizes = [8, 128], strides = [1, 1]} : vector<8x384xf32> to vector<8x128xf32>
    %501 = vector.extract_strided_slice %480 {offsets = [0, 256], sizes = [8, 128], strides = [1, 1]} : vector<8x384xf32> to vector<8x128xf32>
    %502 = arith.mulf %491, %501 : vector<8x128xf32>
    %503 = arith.addf %500, %502 : vector<8x128xf32>
    %504 = math.tanh %503 : vector<8x128xf32>
    %cst_144 = arith.constant 1.000000e+00 : f32
    %505 = vector.broadcast %cst_144 : f32 to vector<8x128xf32>
    %506 = arith.subf %505, %499 : vector<8x128xf32>
    %507 = arith.mulf %506, %504 : vector<8x128xf32>
    %508 = arith.mulf %499, %477 : vector<8x128xf32>
    %509 = arith.addf %507, %508 : vector<8x128xf32>
    %c6_i32_145 = arith.constant 6 : i32
    %510 = arith.truncf %509 : vector<8x128xf32> to vector<8x128xbf16>
    %cst_146 = arith.constant dense<0.000000e+00> : vector<8x384xf32>
    %511 = tpu.matmul %510, %311, %cst_146 {dimension_numbers = #tpu.dot_dimension_numbers<[1], [0], [0], [1], [0, 0, 1, 1], [], []>} : vector<8x128xbf16>, vector<128x384xbf16>, vector<8x384xf32> -> vector<8x384xf32>
    %512 = arith.addf %511, %315 : vector<8x384xf32>
    %c8_i32_147 = arith.constant 8 : i32
    %513 = arith.muli %c6_i32_145, %c8_i32_147 : i32
    %514 = arith.index_cast %513 : i32 to index
    %c0_148 = arith.constant 0 : index
    %515 = vector.load %arg13[%514, %c0_148] : memref<64x384xf32, #tpu.memory_space<vmem>>, vector<8x384xf32>
    %516 = vector.extract_strided_slice %515 {offsets = [0, 0], sizes = [8, 128], strides = [1, 1]} : vector<8x384xf32> to vector<8x128xf32>
    %517 = vector.extract_strided_slice %512 {offsets = [0, 0], sizes = [8, 128], strides = [1, 1]} : vector<8x384xf32> to vector<8x128xf32>
    %518 = arith.addf %516, %517 : vector<8x128xf32>
    %519 = arith.negf %518 : vector<8x128xf32>
    %520 = math.exp %519 : vector<8x128xf32>
    %cst_149 = arith.constant 1.000000e+00 : f32
    %521 = vector.broadcast %cst_149 : f32 to vector<8x128xf32>
    %522 = arith.addf %521, %520 : vector<8x128xf32>
    %523 = arith.divf %521, %522 : vector<8x128xf32>
    %524 = vector.extract_strided_slice %515 {offsets = [0, 128], sizes = [8, 128], strides = [1, 1]} : vector<8x384xf32> to vector<8x128xf32>
    %525 = vector.extract_strided_slice %512 {offsets = [0, 128], sizes = [8, 128], strides = [1, 1]} : vector<8x384xf32> to vector<8x128xf32>
    %526 = arith.addf %524, %525 : vector<8x128xf32>
    %527 = arith.negf %526 : vector<8x128xf32>
    %528 = math.exp %527 : vector<8x128xf32>
    %cst_150 = arith.constant 1.000000e+00 : f32
    %529 = vector.broadcast %cst_150 : f32 to vector<8x128xf32>
    %530 = arith.addf %529, %528 : vector<8x128xf32>
    %531 = arith.divf %529, %530 : vector<8x128xf32>
    %532 = vector.extract_strided_slice %515 {offsets = [0, 256], sizes = [8, 128], strides = [1, 1]} : vector<8x384xf32> to vector<8x128xf32>
    %533 = vector.extract_strided_slice %512 {offsets = [0, 256], sizes = [8, 128], strides = [1, 1]} : vector<8x384xf32> to vector<8x128xf32>
    %534 = arith.mulf %523, %533 : vector<8x128xf32>
    %535 = arith.addf %532, %534 : vector<8x128xf32>
    %536 = math.tanh %535 : vector<8x128xf32>
    %cst_151 = arith.constant 1.000000e+00 : f32
    %537 = vector.broadcast %cst_151 : f32 to vector<8x128xf32>
    %538 = arith.subf %537, %531 : vector<8x128xf32>
    %539 = arith.mulf %538, %536 : vector<8x128xf32>
    %540 = arith.mulf %531, %509 : vector<8x128xf32>
    %541 = arith.addf %539, %540 : vector<8x128xf32>
    %c7_i32_152 = arith.constant 7 : i32
    %542 = arith.truncf %541 : vector<8x128xf32> to vector<8x128xbf16>
    %cst_153 = arith.constant dense<0.000000e+00> : vector<8x384xf32>
    %543 = tpu.matmul %542, %311, %cst_153 {dimension_numbers = #tpu.dot_dimension_numbers<[1], [0], [0], [1], [0, 0, 1, 1], [], []>} : vector<8x128xbf16>, vector<128x384xbf16>, vector<8x384xf32> -> vector<8x384xf32>
    %544 = arith.addf %543, %315 : vector<8x384xf32>
    %c8_i32_154 = arith.constant 8 : i32
    %545 = arith.muli %c7_i32_152, %c8_i32_154 : i32
    %546 = arith.index_cast %545 : i32 to index
    %c0_155 = arith.constant 0 : index
    %547 = vector.load %arg13[%546, %c0_155] : memref<64x384xf32, #tpu.memory_space<vmem>>, vector<8x384xf32>
    %548 = vector.extract_strided_slice %547 {offsets = [0, 0], sizes = [8, 128], strides = [1, 1]} : vector<8x384xf32> to vector<8x128xf32>
    %549 = vector.extract_strided_slice %544 {offsets = [0, 0], sizes = [8, 128], strides = [1, 1]} : vector<8x384xf32> to vector<8x128xf32>
    %550 = arith.addf %548, %549 : vector<8x128xf32>
    %551 = arith.negf %550 : vector<8x128xf32>
    %552 = math.exp %551 : vector<8x128xf32>
    %cst_156 = arith.constant 1.000000e+00 : f32
    %553 = vector.broadcast %cst_156 : f32 to vector<8x128xf32>
    %554 = arith.addf %553, %552 : vector<8x128xf32>
    %555 = arith.divf %553, %554 : vector<8x128xf32>
    %556 = vector.extract_strided_slice %547 {offsets = [0, 128], sizes = [8, 128], strides = [1, 1]} : vector<8x384xf32> to vector<8x128xf32>
    %557 = vector.extract_strided_slice %544 {offsets = [0, 128], sizes = [8, 128], strides = [1, 1]} : vector<8x384xf32> to vector<8x128xf32>
    %558 = arith.addf %556, %557 : vector<8x128xf32>
    %559 = arith.negf %558 : vector<8x128xf32>
    %560 = math.exp %559 : vector<8x128xf32>
    %cst_157 = arith.constant 1.000000e+00 : f32
    %561 = vector.broadcast %cst_157 : f32 to vector<8x128xf32>
    %562 = arith.addf %561, %560 : vector<8x128xf32>
    %563 = arith.divf %561, %562 : vector<8x128xf32>
    %564 = vector.extract_strided_slice %547 {offsets = [0, 256], sizes = [8, 128], strides = [1, 1]} : vector<8x384xf32> to vector<8x128xf32>
    %565 = vector.extract_strided_slice %544 {offsets = [0, 256], sizes = [8, 128], strides = [1, 1]} : vector<8x384xf32> to vector<8x128xf32>
    %566 = arith.mulf %555, %565 : vector<8x128xf32>
    %567 = arith.addf %564, %566 : vector<8x128xf32>
    %568 = math.tanh %567 : vector<8x128xf32>
    %cst_158 = arith.constant 1.000000e+00 : f32
    %569 = vector.broadcast %cst_158 : f32 to vector<8x128xf32>
    %570 = arith.subf %569, %563 : vector<8x128xf32>
    %571 = arith.mulf %570, %568 : vector<8x128xf32>
    %572 = arith.mulf %563, %541 : vector<8x128xf32>
    %573 = arith.addf %571, %572 : vector<8x128xf32>
    %c8_i32_159 = arith.constant 8 : i32
    %c1_160 = arith.constant 1 : index
    %c0_161 = arith.constant 0 : index
    %c0_162 = arith.constant 0 : index
    %574 = vector.load %arg11[%c1_160, %c0_161, %c0_162] : memref<2x8x128xf32, #tpu.memory_space<vmem>>, vector<1x8x128xf32>
    %575 = vector.shape_cast %574 : vector<1x8x128xf32> to vector<8x128xf32>
    %576 = vector.shape_cast %573 : vector<8x128xf32> to vector<1x8x128xf32>
    tpu.vector_store %arg11[%c1_160, %c0_161, %c0_162], %576 {strides = array<i32>} : memref<2x8x128xf32, #tpu.memory_space<vmem>>, vector<1x8x128xf32>,
    %577 = arith.truncf %573 : vector<8x128xf32> to vector<8x128xbf16>
    %c0_163 = arith.constant 0 : index
    %c0_164 = arith.constant 0 : index
    %578 = vector.load %arg8[%c0_163, %c0_164] : memref<128x128xbf16, #tpu.memory_space<vmem>>, vector<128x128xbf16>
    %cst_165 = arith.constant dense<0.000000e+00> : vector<8x128xf32>
    %579 = tpu.matmul %577, %578, %cst_165 {dimension_numbers = #tpu.dot_dimension_numbers<[1], [0], [0], [1], [0, 0, 1, 1], [], []>} : vector<8x128xbf16>, vector<128x128xbf16>, vector<8x128xf32> -> vector<8x128xf32>
    %c0_166 = arith.constant 0 : index
    %c0_167 = arith.constant 0 : index
    %580 = vector.load %arg9[%c0_166, %c0_167] : memref<1x128xf32, #tpu.memory_space<vmem>>, vector<1x128xf32>
    %581 = vector.broadcast %580 : vector<1x128xf32> to vector<8x128xf32>
    %582 = arith.addf %579, %581 : vector<8x128xf32>
    %c0_168 = arith.constant 0 : index
    %c0_169 = arith.constant 0 : index
    %583 = vector.load %arg10[%c0_168, %c0_169] : memref<8x128xf32, #tpu.memory_space<vmem>>, vector<8x128xf32>
    tpu.vector_store %arg10[%c0_168, %c0_169], %582 {strides = array<i32>} : memref<8x128xf32, #tpu.memory_space<vmem>>, vector<8x128xf32>,
    return
  }
  func.func @transform_0(%arg0: i32) -> (i32, i32) {
    %c0_i32 = arith.constant 0 : i32
    %c0_i32_0 = arith.constant 0 : i32
    %c0_i32_1 = arith.constant 0 : i32
    return %c0_i32, %c0_i32_0 : i32, i32
  }
  func.func @transform_1(%arg0: i32) -> (i32, i32, i32) {
    %c0_i32 = arith.constant 0 : i32
    %c0_i32_0 = arith.constant 0 : i32
    %c0_i32_1 = arith.constant 0 : i32
    %c0_i32_2 = arith.constant 0 : i32
    return %c0_i32, %c0_i32_0, %c0_i32_1 : i32, i32, i32
  }
  func.func @transform_2(%arg0: i32) -> (i32, i32) {
    %c0_i32 = arith.constant 0 : i32
    %c0_i32_0 = arith.constant 0 : i32
    %c0_i32_1 = arith.constant 0 : i32
    return %c0_i32, %c0_i32_0 : i32, i32
  }
  func.func @transform_3(%arg0: i32) -> (i32, i32, i32) {
    %c0_i32 = arith.constant 0 : i32
    %c0_i32_0 = arith.constant 0 : i32
    %c0_i32_1 = arith.constant 0 : i32
    %c0_i32_2 = arith.constant 0 : i32
    return %c0_i32, %c0_i32_0, %c0_i32_1 : i32, i32, i32
  }
  func.func @transform_4(%arg0: i32) -> (i32, i32, i32) {
    %c0_i32 = arith.constant 0 : i32
    %c0_i32_0 = arith.constant 0 : i32
    %c0_i32_1 = arith.constant 0 : i32
    %c0_i32_2 = arith.constant 0 : i32
    return %c0_i32, %c0_i32_0, %c0_i32_1 : i32, i32, i32
  }
  func.func @transform_5(%arg0: i32) -> (i32, i32, i32) {
    %c0_i32 = arith.constant 0 : i32
    %c0_i32_0 = arith.constant 0 : i32
    %c0_i32_1 = arith.constant 0 : i32
    %c0_i32_2 = arith.constant 0 : i32
    return %c0_i32, %c0_i32_0, %c0_i32_1 : i32, i32, i32
  }
  func.func @transform_6(%arg0: i32) -> (i32, i32, i32) {
    %c0_i32 = arith.constant 0 : i32
    %c0_i32_0 = arith.constant 0 : i32
    %c0_i32_1 = arith.constant 0 : i32
    %c0_i32_2 = arith.constant 0 : i32
    return %c0_i32, %c0_i32_0, %c0_i32_1 : i32, i32, i32
  }
  func.func @transform_7(%arg0: i32) -> (i32, i32) {
    %c0_i32 = arith.constant 0 : i32
    %c0_i32_0 = arith.constant 0 : i32
    %c0_i32_1 = arith.constant 0 : i32
    return %c0_i32, %c0_i32_0 : i32, i32
  }
  func.func @transform_8(%arg0: i32) -> (i32, i32) {
    %c0_i32 = arith.constant 0 : i32
    %c0_i32_0 = arith.constant 0 : i32
    %c0_i32_1 = arith.constant 0 : i32
    return %c0_i32, %c0_i32_0 : i32, i32
  }
  func.func @transform_9(%arg0: i32) -> (i32, i32) {
    %c0_i32 = arith.constant 0 : i32
    %c0_i32_0 = arith.constant 0 : i32
    %c0_i32_1 = arith.constant 0 : i32
    return %c0_i32, %c0_i32_0 : i32, i32
  }
  func.func @transform_10(%arg0: i32) -> (i32, i32, i32) {
    %c0_i32 = arith.constant 0 : i32
    %c0_i32_0 = arith.constant 0 : i32
    %c0_i32_1 = arith.constant 0 : i32
    %c0_i32_2 = arith.constant 0 : i32
    return %c0_i32, %c0_i32_0, %c0_i32_1 : i32, i32, i32
  }
}

</mosaic_0001>

<bundles_post_ra>
// kernel: gru_model_forward.1
= control target key start
LH: loop header
LB: loop body
LE: loop exit
PB: predicated region body
PF: predicated region fallthrough
CT: control target
= control target key end

     0   :  { %v5450_v2 = vmov 0   ;;  %vm85_vm0 = vcmask 130048   ;;  %v5452_v22 = vmov 0.0   ;;  %vm3895_vm1 = vmmov 0   ;;  %s5439_s0 = inlined_call_operand.vmem [shape: f32[64,16], index: 0, kind: input, shape index: {}]   ;;  %s5440_s1 = inlined_call_operand.vmem [shape: f32[2,8,128], index: 1, kind: input, shape index: {}]   ;;  %s5441_s2 = inlined_call_operand.vmem [shape: bf16[16,384], index: 2, kind: input, shape index: {}]   ;;  %s5442_s3 = inlined_call_operand.vmem [shape: bf16[2,128,384], index: 3, kind: input, shape index: {}]   ;;  %s5443_s4 = inlined_call_operand.vmem [shape: bf16[2,128,384], index: 4, kind: input, shape index: {}]   ;;  %s5444_s5 = inlined_call_operand.vmem [shape: f32[2,1,384], index: 5, kind: input, shape index: {}]   ;;  %s5445_s6 = inlined_call_operand.vmem [shape: f32[2,1,384], index: 6, kind: input, shape index: {}]   ;;  %s5446_s7 = inlined_call_operand.vmem [shape: bf16[128,128], index: 7, kind: input, shape index: {}]   ;;  %s5447_s8 = inlined_call_operand.vmem [shape: f32[1,128], index: 8, kind: input, shape index: {}]   ;;  %s5448_s9 = inlined_call_operand.vmem [shape: f32[8,128], index: 9, kind: output, shape index: {0}]   ;;  %s5449_s10 = inlined_call_operand.hbm [shape: f32[2,8,128], index: 10, kind: output, shape index: {1}]  }
   0x1   :  { %v3553_v0 = vld [vmem:[%s5441_s2 + $0x4] ss:$12 sps:$4 sm:$0xff]   ;;  %v3555_v1 = vld [vmem:[%s5441_s2] ss:$12 sps:$4 sm:$0xff]   ;;  %130 = vmatprep.mubr.bf16.mxu0 %v5450_v2  ;;  %v3981_v8 = vld [vmem:[%s5443_s4 + $0x1c] ss:$12 sps:$4 sm:$0xff]  }
   0x2   :  { %v36_v3 = vld [vmem:[%s5439_s0] sm:$0xff]  ;;  %v37_v4 = vld [vmem:[%s5439_s0 + $0x8] sm:$0xff]  ;;  %98 = vmatprep.subr.bf16.mxu0 %v3553_v0  ;;  %v38_v10 = vld [vmem:[%s5439_s0 + $0x10] sm:$0xff] }
   0x3   :  { %v48_v5 = vpack.c.bf16 %v37_v4, %v36_v3  ;;  %v3970_v6 = vld [vmem:[%s5443_s4 + $0x4] ss:$12 sps:$4 sm:$0xff]   ;;  %99 = vmatpush1.bf16.msra.mxu0 %v3555_v1  ;;  %v3975_v7 = vld [vmem:[%s5443_s4] ss:$12 sps:$4 sm:$0xff]   ;;  %v39_v11 = vld [vmem:[%s5439_s0 + $0x18] sm:$0xff] }
   0x4   :  { %439 = vmatprep.subr.bf16.mxu0 %v3970_v6  ;;  %v3988_v9 = vld [vmem:[%s5443_s4 + $0x18] ss:$12 sps:$4 sm:$0xff]   ;;  %v4002_v12 = vld [vmem:[%s5443_s4 + $0x34] ss:$12 sps:$4 sm:$0xff]   ;;  %v49_v13 = vpack.c.bf16 %v39_v11, %v38_v10  ;;  %v4008_v14 = vld [vmem:[%s5443_s4 + $0x30] ss:$12 sps:$4 sm:$0xff]  }
   0x5   :  { %3175 = vmatprep.mubr.msk.bf16.mxu1 %vm85_vm0, %v48_v5  ;;  %v4014_v15 = vld [vmem:[%s5443_s4 + $0x4c] ss:$12 sps:$4 sm:$0xff]   ;;  %v3574_v16 = vld [vmem:[%s5441_s2 + $0x8] ss:$12 sps:$4 sm:$0xff]   ;;  %v40_v18 = vld [vmem:[%s5439_s0 + $0x20] sm:$0xff] }
   0x6   :  { %2815 = vmatmul.mubr.msk.bf16.vlgmr.msra.gmra.mrb[0].mxu0 %vm85_vm0, %v48_v5  ;;  %v4022_v17 = vld [vmem:[%s5443_s4 + $0x48] ss:$12 sps:$4 sm:$0xff]   ;;  %3173 = vmatprep.subr.bf16.mxu1 %v3574_v16  ;;  %v4037_v20 = vld [vmem:[%s5443_s4 + $0x64] ss:$12 sps:$4 sm:$0xff]   ;;  %v4048_v24 = vld [vmem:[%s5443_s4 + $0x60] ss:$12 sps:$4 sm:$0xff]  }
   0x7   :  { %440 = vmatpush1.bf16.msra.mxu0 %v3975_v7  ;;  %140 = vmatprep.mubr.bf16.mxu0 %v5450_v2  ;;  %v41_v19 = vld [vmem:[%s5439_s0 + $0x28] sm:$0xff]  ;;  %v4067_v27 = vld [vmem:[%s5443_s4 + $0x78] ss:$12 sps:$4 sm:$0xff]   ;;  %v42_v28 = vld [vmem:[%s5439_s0 + $0x30] sm:$0xff] }
   0x8   :  { %441 = vmatprep.subr.bf16.mxu0 %v3981_v8  ;;  %3174 = vmatpush3.bf16.msra.mxu1 %v3574_v16  ;;  %v4042_v21 = vld [vmem:[%s5443_s4 + $0x8] ss:$12 sps:$4 sm:$0xff]   ;;  %v50_v23 = vpack.c.bf16 %v41_v19, %v40_v18  ;;  %v4062_v26 = vld [vmem:[%s5443_s4 + $0x20] ss:$12 sps:$4 sm:$0xff]   ;;  %v43_v29 = vld [vmem:[%s5439_s0 + $0x38] sm:$0xff] }
   0x9   :  { %3183 = vmatprep.subr.bf16.mxu1 %v5452_v22  ;;  %v4054_v25 = vld [vmem:[%s5443_s4 + $0x7c] ss:$12 sps:$4 sm:$0xff]   ;;  %v4083_v30 = vld [vmem:[%s5443_s4 + $0x94] ss:$12 sps:$4 sm:$0xff]   ;;  %v4090_v31 = vld [vmem:[%s5443_s4 + $0x38] ss:$12 sps:$4 sm:$0xff]   ;;  %v51_v32 = vpack.c.bf16 %v43_v29, %v42_v28 }
   0xa   :  { %v4095_v33 = vld [vmem:[%s5443_s4 + $0x90] ss:$12 sps:$4 sm:$0xff]   ;;  %v4101_v34 = vld [vmem:[%s5443_s4 + $0xac] ss:$12 sps:$4 sm:$0xff]   ;;  %v4115_v36 = vld [vmem:[%s5443_s4 + $0xa8] ss:$12 sps:$4 sm:$0xff]  }
   0xb   :  { %442 = vmatpush1.bf16.msra.mxu0 %v3988_v9  ;;  %3176 = vmatmul.mubr.msk.bf16.vlgmr.msra.gmra.mrb[0].mxu1 %vm85_vm0, %v49_v13  ;;  %v4106_v35 = vld [vmem:[%s5443_s4 + $0x50] ss:$12 sps:$4 sm:$0xff]   ;;  %v4120_v37 = vld [vmem:[%s5440_s1] sm:$0xff]  ;;  %v4129_v38 = vld [vmem:[%s5443_s4 + $0x68] ss:$12 sps:$4 sm:$0xff]  }
   0xc   :  { %443 = vmatprep.subr.bf16.mxu0 %v4002_v12  ;;  %3184 = vmatpush3.bf16.msra.mxu1 %v4042_v21  ;;  %v310_v39 = vpack.c.bf16 %v4120_v37, %v4120_v37  ;;  %v4141_v40 = vld [vmem:[%s5443_s4 + $0x80] ss:$12 sps:$4 sm:$0xff]   ;;  %v4150_v41 = vld [vmem:[%s5443_s4 + $0x98] ss:$12 sps:$4 sm:$0xff]   ;;  %v4160_v42 = vld [vmem:[%s5443_s4 + $0xb0] ss:$12 sps:$4 sm:$0xff]  }
   0xd   :  { %3185 = vmatprep.subr.bf16.mxu1 %v5452_v22  ;;  %3179 = vmatprep.mubr.msk.bf16.mxu1 %vm85_vm0, %v50_v23 }
   0xe   :  { %2816 = vmatmul.mubr.msk.bf16.gmra.mrb[4].mxu0 %vm85_vm0, %v49_v13 }
   0xf   :  { %444 = vmatpush1.bf16.msra.mxu0 %v4008_v14  ;;  %150 = vmatprep.mubr.bf16.mxu0 %v5450_v2 }
  0x10   :  { %445 = vmatprep.subr.bf16.mxu0 %v4014_v15  ;;  %3186 = vmatpush3.bf16.msra.mxu1 %v4062_v26 }
  0x11   :  { %3187 = vmatprep.subr.bf16.mxu1 %v5452_v22 }
  0x13   :  { %446 = vmatpush1.bf16.msra.mxu0 %v4022_v17  ;;  %3180 = vmatmul.mubr.msk.bf16.gmra.mrb[4].mxu1 %vm85_vm0, %v51_v32 }
  0x14   :  { %447 = vmatprep.subr.bf16.mxu0 %v4037_v20  ;;  %3188 = vmatpush3.bf16.msra.mxu1 %v4090_v31 }
  0x15   :  { %3189 = vmatprep.subr.bf16.mxu1 %v5452_v22  ;;  %3199 = vmatprep.mubr.msk.bf16.mxu1 %vm3895_vm1, %v5452_v22 }
  0x16   :  { %2817 = vmatmul.mubr.msk.bf16.gmra.mrb[8].mxu0 %vm85_vm0, %v50_v23 }
  0x17   :  { %448 = vmatpush1.bf16.msra.mxu0 %v4048_v24  ;;  %160 = vmatprep.mubr.bf16.mxu0 %v5450_v2 }
  0x18   :  { %449 = vmatprep.subr.bf16.mxu0 %v4054_v25  ;;  %3190 = vmatpush3.bf16.msra.mxu1 %v4106_v35 }
  0x19   :  { %3191 = vmatprep.subr.bf16.mxu1 %v5452_v22 }
  0x1b   :  { %450 = vmatpush1.bf16.msra.mxu0 %v4067_v27 }
  0x1c   :  { %451 = vmatprep.subr.bf16.mxu0 %v4083_v30  ;;  %3192 = vmatpush3.bf16.msra.mxu1 %v4129_v38 }
  0x1d   :  { %3193 = vmatprep.subr.bf16.mxu1 %v5452_v22 }
  0x1e   :  { %2818 = vmatmul.mubr.msk.bf16.gmra.mrb[12].mxu0 %vm85_vm0, %v51_v32 }
  0x1f   :  { %452 = vmatpush1.bf16.msra.mxu0 %v4095_v33  ;;  %471 = vmatprep.mubr.bf16.mxu0 %v5450_v2 }
  0x20   :  { %453 = vmatprep.subr.bf16.mxu0 %v4101_v34  ;;  %3194 = vmatpush3.bf16.msra.mxu1 %v4141_v40 }
  0x21   :  { %3195 = vmatprep.subr.bf16.mxu1 %v5452_v22 }
  0x23   :  { %454 = vmatpush1.bf16.msra.mxu0 %v4115_v36 }
  0x24   :  { %546 = vmatprep.subr.bf16.mxu0 %v3970_v6  ;;  %3196 = vmatpush3.bf16.msra.mxu1 %v4150_v41 }
  0x25   :  { %3197 = vmatprep.subr.bf16.mxu1 %v5452_v22 }
  0x26   :  { %472 = vmatmul.mubr.bf16.vlgmr.msra.gmra.mrb[16].mxu0 %v310_v39 }
  0x27   :  { %547 = vmatpush1.bf16.msra.mxu0 %v3975_v7  ;;  %578 = vmatprep.mubr.bf16.mxu0 %v5450_v2 }
  0x28   :  { %548 = vmatprep.subr.bf16.mxu0 %v3981_v8  ;;  %3198 = vmatpush3.bf16.msra.mxu1 %v4160_v42 }
  0x29   :  { %3203 = vmatprep.subr.bf16.mxu1 %v5452_v22 }
  0x2b   :  { %549 = vmatpush1.bf16.msra.mxu0 %v3988_v9  ;;  %3200 = vmatmul.mubr.bf16.vlgmr.msra.gmra.mrb[8].mxu1 %v310_v39 }
  0x2c   :  { %550 = vmatprep.subr.bf16.mxu0 %v4002_v12 }
  0x2f   :  { %551 = vmatpush1.bf16.msra.mxu0 %v4008_v14 }
  0x30   :  { %552 = vmatprep.subr.bf16.mxu0 %v4014_v15 }
  0x33   :  { %553 = vmatpush1.bf16.msra.mxu0 %v4022_v17 }
  0x34   :  { %16 = vsyncpa [#allocation5], 0  ;;  %3204 = vmatpush3.bf16.msra.mxu1 %v4042_v21  ;;  %554 = vmatprep.subr.bf16.mxu0 %v4037_v20  ;;  %v54_v43 = vlaneseq  ;;  %v52_v46 = vld [vmem:[%s5444_s5] sm:$0x7] }
  0x35   :  { %3205 = vmatprep.subr.bf16.mxu1 %v5452_v22  ;;  %3219 = vmatprep.mubr.msk.bf16.mxu1 %vm3895_vm1, %v5452_v22 }
  0x36   :  { %v55_v44 = vshrl.u32 %v54_v43, 7 }
  0x37   :  { %555 = vmatpush1.bf16.msra.mxu0 %v4048_v24 }
  0x38   :  { %3206 = vmatpush3.bf16.msra.mxu1 %v4062_v26  ;;  %556 = vmatprep.subr.bf16.mxu0 %v4054_v25  ;;  %v4198_v45 = vsub.s32 0, %v55_v44  ;;  %v4203_v47 = vsub.s32 1, %v55_v44  ;;  %v4211_v56 = vsub.s32 2, %v55_v44 }
  0x39   :  { %3207 = vmatprep.subr.bf16.mxu1 %v5452_v22 }
  0x3a   :  { %5458 = vst [vmem:[#allocation7_spill] sm:$0xff] %v4198_v45  ;;  %5459 = vst [vmem:[#allocation8_spill] sm:$0xff] %v4203_v47  ;;  %v57_v49 = vrot.slane %v52_v46, %v4198_v45  ;;  %v61_v51 = vrot.slane %v52_v46, %v4203_v47  ;;  %v4218_v62 = vrot.slane %v52_v46, %v4211_v56 }
  0x3b   :  { %557 = vmatpush1.bf16.msra.mxu0 %v4067_v27 }
  0x3c   :  { %3208 = vmatpush3.bf16.msra.mxu1 %v4090_v31  ;;  %558 = vmatprep.subr.bf16.mxu0 %v4083_v30 }
  0x3d   :  { %3209 = vmatprep.subr.bf16.mxu1 %v5452_v22 }
  0x3f   :  { %559 = vmatpush1.bf16.msra.mxu0 %v4095_v33 }
  0x40   :  { %3210 = vmatpush3.bf16.msra.mxu1 %v4106_v35  ;;  %560 = vmatprep.subr.bf16.mxu0 %v4101_v34 }
  0x41   :  { %3211 = vmatprep.subr.bf16.mxu1 %v5452_v22 }
  0x43   :  { %561 = vmatpush1.bf16.msra.mxu0 %v4115_v36 }
  0x44   :  { %3212 = vmatpush3.bf16.msra.mxu1 %v4129_v38  ;;  %653 = vmatprep.subr.bf16.mxu0 %v3970_v6 }
  0x45   :  { %3213 = vmatprep.subr.bf16.mxu1 %v5452_v22 }
  0x48   :  { %3214 = vmatpush3.bf16.msra.mxu1 %v4141_v40 }
  0x49   :  { %3215 = vmatprep.subr.bf16.mxu1 %v5452_v22 }
  0x4c   :  { %3216 = vmatpush3.bf16.msra.mxu1 %v4150_v41 }
  0x4d   :  { %3217 = vmatprep.subr.bf16.mxu1 %v5452_v22 }
  0x50   :  { %3218 = vmatpush3.bf16.msra.mxu1 %v4160_v42 }
  0x51   :  { %3223 = vmatprep.subr.bf16.mxu1 %v5452_v22 }
  0xd9   :  { %v132_v48 = vpop.f32.mrb[0].mxu0 }
  0xda   :  { %v134_v50 = vpop.f32.mrb[1].mxu0  ;;  %v133_v2 = vadd.f32 %v132_v48, %v57_v49 }
  0xdb   :  { %v136_v52 = vpop.f32.mrb[2].mxu0 }
  0xdc   :  { %v4207_v53 = vadd.f32 %v136_v52, %v57_v49  ;;  %v138_v54 = vpop.f32.mrb[3].mxu0 }
  0xdd   :  { %v4209_v55 = vadd.f32 %v138_v54, %v61_v51 }
  0xde   :  { %v3177_v3 = vpop.f32.mrb[0].mxu1 }
  0xdf   :  { %v4225_v4 = vadd.f32 %v3177_v3, %v4218_v62  ;;  %v205_v5 = vpop.f32.mrb[1].mxu1 }
  0xe0   :  { %v3178_v10 = vpop.f32.mrb[2].mxu1 }
  0xe1   :  { %v142_v57 = vpop.f32.mrb[4].mxu0  ;;  %v4228_v13 = vadd.f32 %v3178_v10, %v4218_v62  ;;  %v208_v16 = vpop.f32.mrb[3].mxu1 }
  0xe2   :  { %v4213_v58 = vadd.f32 %v142_v57, %v57_v49  ;;  %v144_v59 = vpop.f32.mrb[5].mxu0  ;;  %v4233_v23 = vadd.f32 %v208_v16, %v4218_v62 }
  0xe3   :  { %v4215_v60 = vadd.f32 %v144_v59, %v61_v51  ;;  %v146_v61 = vpop.f32.mrb[6].mxu0 }
  0xe4   :  { %v4220_v63 = vadd.f32 %v146_v61, %v57_v49  ;;  %v148_v0 = vpop.f32.mrb[7].mxu0 }
  0xe5   :  { %v4222_v1 = vadd.f32 %v148_v0, %v61_v51 }
  0xe6   :  { %v3181_v44 = vpop.f32.mrb[4].mxu1 }
  0xe7   :  { %v4242_v46 = vadd.f32 %v3181_v44, %v4218_v62  ;;  %v221_v52 = vpop.f32.mrb[5].mxu1 }
  0xe8   :  { %v4245_v54 = vadd.f32 %v221_v52, %v4218_v62  ;;  %v3182_v57 = vpop.f32.mrb[6].mxu1 }
  0xe9   :  { %v152_v11 = vpop.f32.mrb[8].mxu0  ;;  %5462 = vst [vmem:[#allocation11_spill] sm:$0xff] %v4242_v46  ;;  %v4248_v61 = vadd.f32 %v3182_v57, %v4218_v62  ;;  %v224_v0 = vpop.f32.mrb[7].mxu1 }
  0xea   :  { %v4230_v18 = vadd.f32 %v152_v11, %v57_v49  ;;  %v154_v19 = vpop.f32.mrb[9].mxu0  ;;  %v4253_v11 = vadd.f32 %v224_v0, %v4218_v62 }
  0xeb   :  { %v4235_v28 = vadd.f32 %v154_v19, %v61_v51  ;;  %v156_v29 = vpop.f32.mrb[10].mxu0  ;;  %5463 = vst [vmem:[#allocation12_spill] sm:$0xff] %v4248_v61  ;;  %v135_v61 = vadd.f32 %v134_v50, %v61_v51 }
  0xec   :  { %v4237_v32 = vadd.f32 %v156_v29, %v57_v49  ;;  %v158_v39 = vpop.f32.mrb[11].mxu0  ;;  %5465 = vst [vmem:[#allocation14_spill] sm:$0xff] %v4253_v11  ;;  %v292_v29 = vld [vmem:[%s5445_s6] sm:$0x7] }
  0xed   :  { %v4239_v43 = vadd.f32 %v158_v39, %v61_v51  ;;  %v4265_v57 = vrot.slane %v292_v29, %v4198_v45 }
  0xee   :  { %5460 = vst [vmem:[#allocation9_spill] sm:$0xff] %v4237_v32 }
  0xef   :  { %5461 = vst [vmem:[#allocation10_spill] sm:$0xff] %v4239_v43 }
  0xf1   :  { %v162_v59 = vpop.f32.mrb[12].mxu0 }
  0xf2   :  { %v4250_v3 = vadd.f32 %v162_v59, %v57_v49  ;;  %v164_v10 = vpop.f32.mrb[13].mxu0  ;;  %v4268_v59 = vrot.slane %v292_v29, %v4203_v47 }
  0xf3   :  { %v4255_v16 = vadd.f32 %v164_v10, %v61_v51  ;;  %v166_v19 = vpop.f32.mrb[14].mxu0 }
  0xf4   :  { %5464 = vst [vmem:[#allocation13_spill] sm:$0xff] %v4250_v3  ;;  %v4260_v39 = vadd.f32 %v166_v19, %v57_v49  ;;  %v168_v44 = vpop.f32.mrb[15].mxu0  ;;  %v4273_v49 = vrot.slane %v292_v29, %v4211_v56 }
  0xf5   :  { %5466 = vst [vmem:[#allocation15_spill] sm:$0xff] %v4255_v16  ;;  %v4262_v52 = vadd.f32 %v168_v44, %v61_v51 }
  0xf6   :  { %5467 = vst [vmem:[#allocation16_spill] sm:$0xff] %v4260_v39 }
  0xf7   :  { %5468 = vst [vmem:[#allocation17_spill] sm:$0xff] %v4262_v52 }
  0xf9   :  { %v473_v0 = vpop.f32.mrb[16].mxu0 }
  0xfa   :  { %v474_v10 = vadd.f32 %v473_v0, %v4265_v57  ;;  %v475_v22 = vpop.f32.mrb[17].mxu0 }
  0xfb   :  { %v476_v46 = vadd.f32 %v475_v22, %v4268_v59  ;;  %v477_v16 = vpop.f32.mrb[18].mxu0 }
  0xfc   :  { %v523_v19 = vadd.f32 %v474_v10, %v133_v2  ;;  %v478_v39 = vpop.f32.mrb[19].mxu0 }
  0xfd   :  { %v530_v3 = vadd.f32 %v476_v46, %v135_v61  ;;  %v206_v46 = vadd.f32 %v205_v5, %v4218_v62  ;;  %v5470_v62 = vmov 0  }
  0xfe   :  { %v2847_v44 = vmul.f32 -1.442695, %v523_v19  ;;  %v514_v45 = vpop.f32.mrb[8].mxu1 }
  0xff   :  { %v2848_v52 = vmul.f32 -1.442695, %v530_v3  ;;  %v3201_v11 = vpop.f32.mrb[9].mxu1  ;;  %v515_v2 = vadd.f32 %v514_v45, %v4273_v49  ;;  %v5469_v45 = vmov 0.0  }
 0x100   :  { %3661 = vpow2.f32 %v2847_v44  ;;  %v517_v47 = vpop.f32.mrb[10].mxu1 }
 0x101   :  { %3663 = vpow2.f32 %v2848_v52  ;;  %v3202_v43 = vpop.f32.mrb[11].mxu1 }
 0x10a   :  { %v3662_v32 = vpop.eup %3661 }
 0x10b   :  { %v527_v48 = vadd.f32 1.0, %v3662_v32  ;;  %v3664_v50 = vpop.eup %3663 }
 0x10c   :  { %v534_v22 = vadd.f32 1.0, %v3664_v50 }
 0x10d   :  { %3665 = vrcp.f32 %v527_v48 }
 0x10e   :  { %3667 = vrcp.f32 %v534_v22 }
 0x117   :  { %v3666_v51 = vpop.eup %3665 }
 0x118   :  { %v537_v61 = vmul.f32 %v3666_v51, %v515_v2  ;;  %v3668_v11 = vpop.eup %3667 }
 0x119   :  { %v540_v47 = vsub.f32 1.0, %v3668_v11  ;;  %v542_v32 = vmul.f32 %v3668_v11, %v4120_v37 }
 0x11a   :  { %v538_v3 = vadd.f32 %v537_v61, %v206_v46 }
 0x11c   :  { %3669 = vtanh.f32 %v538_v3 }
 0x126   :  { %v3670_v43 = vpop.eup %3669 }
 0x127   :  { %v541_v16 = vmul.f32 %v3670_v43, %v540_v47 }
 0x129   :  { %v4278_v39 = vadd.f32 %v542_v32, %v541_v16 }
 0x12b   :  { %v545_v29 = vpack.c.bf16 %v4278_v39, %v4278_v39 }
 0x12d   :  { %579 = vmatmul.mubr.bf16.vlgmr.msra.gmra.mrb[20].mxu0 %v545_v29  ;;  %3220 = vmatmul.mubr.bf16.vlgmr.msra.gmra.mrb[12].mxu1 %v545_v29 }
 0x12e   :  { %654 = vmatpush1.bf16.msra.mxu0 %v3975_v7  ;;  %3224 = vmatpush3.bf16.msra.mxu1 %v4042_v21 }
 0x12f   :  { %655 = vmatprep.subr.bf16.mxu0 %v3981_v8  ;;  %3225 = vmatprep.subr.bf16.mxu1 %v5469_v45 }
 0x130   :  { %685 = vmatprep.mubr.bf16.mxu0 %v5470_v62  ;;  %3239 = vmatprep.mubr.msk.bf16.mxu1 %vm3895_vm1, %v5469_v45 }
 0x132   :  { %656 = vmatpush1.bf16.msra.mxu0 %v3988_v9  ;;  %3226 = vmatpush3.bf16.msra.mxu1 %v4062_v26 }
 0x133   :  { %657 = vmatprep.subr.bf16.mxu0 %v4002_v12  ;;  %3227 = vmatprep.subr.bf16.mxu1 %v5469_v45 }
 0x136   :  { %658 = vmatpush1.bf16.msra.mxu0 %v4008_v14  ;;  %3228 = vmatpush3.bf16.msra.mxu1 %v4090_v31 }
 0x137   :  { %659 = vmatprep.subr.bf16.mxu0 %v4014_v15  ;;  %3229 = vmatprep.subr.bf16.mxu1 %v5469_v45 }
 0x13a   :  { %660 = vmatpush1.bf16.msra.mxu0 %v4022_v17  ;;  %3230 = vmatpush3.bf16.msra.mxu1 %v4106_v35 }
 0x13b   :  { %661 = vmatprep.subr.bf16.mxu0 %v4037_v20  ;;  %3231 = vmatprep.subr.bf16.mxu1 %v5469_v45 }
 0x13e   :  { %662 = vmatpush1.bf16.msra.mxu0 %v4048_v24  ;;  %3232 = vmatpush3.bf16.msra.mxu1 %v4129_v38 }
 0x13f   :  { %663 = vmatprep.subr.bf16.mxu0 %v4054_v25  ;;  %3233 = vmatprep.subr.bf16.mxu1 %v5469_v45 }
 0x142   :  { %664 = vmatpush1.bf16.msra.mxu0 %v4067_v27  ;;  %3234 = vmatpush3.bf16.msra.mxu1 %v4141_v40 }
 0x143   :  { %665 = vmatprep.subr.bf16.mxu0 %v4083_v30  ;;  %3235 = vmatprep.subr.bf16.mxu1 %v5469_v45 }
 0x146   :  { %666 = vmatpush1.bf16.msra.mxu0 %v4095_v33  ;;  %3236 = vmatpush3.bf16.msra.mxu1 %v4150_v41 }
 0x147   :  { %667 = vmatprep.subr.bf16.mxu0 %v4101_v34  ;;  %3237 = vmatprep.subr.bf16.mxu1 %v5469_v45 }
 0x14a   :  { %668 = vmatpush1.bf16.msra.mxu0 %v4115_v36  ;;  %3238 = vmatpush3.bf16.msra.mxu1 %v4160_v42 }
 0x14b   :  { %760 = vmatprep.subr.bf16.mxu0 %v3970_v6  ;;  %3243 = vmatprep.subr.bf16.mxu1 %v5469_v45 }
 0x200   :  { %v580_v37 = vpop.f32.mrb[20].mxu0  ;;  %v621_v5 = vpop.f32.mrb[12].mxu1 }
 0x201   :  { %v581_v52 = vadd.f32 %v580_v37, %v4265_v57  ;;  %v582_v0 = vpop.f32.mrb[21].mxu0  ;;  %v3221_v10 = vpop.f32.mrb[13].mxu1  ;;  %v622_v16 = vadd.f32 %v621_v5, %v4273_v49 }
 0x202   :  { %v583_v19 = vadd.f32 %v582_v0, %v4268_v59  ;;  %v584_v44 = vpop.f32.mrb[22].mxu0  ;;  %v624_v48 = vpop.f32.mrb[14].mxu1 }
 0x203   :  { %v630_v50 = vadd.f32 %v581_v52, %v4207_v53  ;;  %v585_v22 = vpop.f32.mrb[23].mxu0  ;;  %v3222_v2 = vpop.f32.mrb[15].mxu1 }
 0x204   :  { %v637_v51 = vadd.f32 %v583_v19, %v4209_v55 }
 0x205   :  { %v2849_v46 = vmul.f32 -1.442695, %v630_v50 }
 0x206   :  { %v2850_v61 = vmul.f32 -1.442695, %v637_v51 }
 0x207   :  { %3671 = vpow2.f32 %v2849_v46 }
 0x208   :  { %3673 = vpow2.f32 %v2850_v61 }
 0x211   :  { %v3672_v3 = vpop.eup %3671 }
 0x212   :  { %v634_v11 = vadd.f32 1.0, %v3672_v3  ;;  %v3674_v47 = vpop.eup %3673 }
 0x213   :  { %v641_v43 = vadd.f32 1.0, %v3674_v47 }
 0x214   :  { %3675 = vrcp.f32 %v634_v11 }
 0x215   :  { %3677 = vrcp.f32 %v641_v43 }
 0x21e   :  { %v3676_v32 = vpop.eup %3675 }
 0x21f   :  { %v644_v29 = vmul.f32 %v3676_v32, %v622_v16  ;;  %v3678_v37 = vpop.eup %3677 }
 0x220   :  { %v647_v52 = vsub.f32 1.0, %v3678_v37  ;;  %v649_v10 = vmul.f32 %v3678_v37, %v4278_v39 }
 0x221   :  { %v645_v53 = vadd.f32 %v644_v29, %v4233_v23 }
 0x223   :  { %3679 = vtanh.f32 %v645_v53 }
 0x22d   :  { %v3680_v55 = vpop.eup %3679 }
 0x22e   :  { %v648_v0 = vmul.f32 %v3680_v55, %v647_v52 }
 0x230   :  { %v4324_v19 = vadd.f32 %v649_v10, %v648_v0 }
 0x232   :  { %v652_v44 = vpack.c.bf16 %v4324_v19, %v4324_v19 }
 0x234   :  { %686 = vmatmul.mubr.bf16.vlgmr.msra.gmra.mrb[24].mxu0 %v652_v44  ;;  %3240 = vmatmul.mubr.bf16.vlgmr.msra.gmra.mrb[16].mxu1 %v652_v44 }
 0x235   :  { %761 = vmatpush1.bf16.msra.mxu0 %v3975_v7  ;;  %3244 = vmatpush3.bf16.msra.mxu1 %v4042_v21 }
 0x236   :  { %762 = vmatprep.subr.bf16.mxu0 %v3981_v8  ;;  %3245 = vmatprep.subr.bf16.mxu1 %v5469_v45 }
 0x237   :  { %792 = vmatprep.mubr.bf16.mxu0 %v5470_v62  ;;  %3259 = vmatprep.mubr.msk.bf16.mxu1 %vm3895_vm1, %v5469_v45 }
 0x239   :  { %763 = vmatpush1.bf16.msra.mxu0 %v3988_v9  ;;  %3246 = vmatpush3.bf16.msra.mxu1 %v4062_v26 }
 0x23a   :  { %764 = vmatprep.subr.bf16.mxu0 %v4002_v12  ;;  %3247 = vmatprep.subr.bf16.mxu1 %v5469_v45 }
 0x23d   :  { %765 = vmatpush1.bf16.msra.mxu0 %v4008_v14  ;;  %3248 = vmatpush3.bf16.msra.mxu1 %v4090_v31 }
 0x23e   :  { %766 = vmatprep.subr.bf16.mxu0 %v4014_v15  ;;  %3249 = vmatprep.subr.bf16.mxu1 %v5469_v45 }
 0x241   :  { %767 = vmatpush1.bf16.msra.mxu0 %v4022_v17  ;;  %3250 = vmatpush3.bf16.msra.mxu1 %v4106_v35 }
 0x242   :  { %768 = vmatprep.subr.bf16.mxu0 %v4037_v20  ;;  %3251 = vmatprep.subr.bf16.mxu1 %v5469_v45 }
 0x245   :  { %769 = vmatpush1.bf16.msra.mxu0 %v4048_v24  ;;  %3252 = vmatpush3.bf16.msra.mxu1 %v4129_v38 }
 0x246   :  { %770 = vmatprep.subr.bf16.mxu0 %v4054_v25  ;;  %3253 = vmatprep.subr.bf16.mxu1 %v5469_v45 }
 0x249   :  { %771 = vmatpush1.bf16.msra.mxu0 %v4067_v27  ;;  %3254 = vmatpush3.bf16.msra.mxu1 %v4141_v40 }
 0x24a   :  { %772 = vmatprep.subr.bf16.mxu0 %v4083_v30  ;;  %3255 = vmatprep.subr.bf16.mxu1 %v5469_v45 }
 0x24d   :  { %773 = vmatpush1.bf16.msra.mxu0 %v4095_v33  ;;  %3256 = vmatpush3.bf16.msra.mxu1 %v4150_v41 }
 0x24e   :  { %774 = vmatprep.subr.bf16.mxu0 %v4101_v34  ;;  %3257 = vmatprep.subr.bf16.mxu1 %v5469_v45 }
 0x251   :  { %775 = vmatpush1.bf16.msra.mxu0 %v4115_v36  ;;  %3258 = vmatpush3.bf16.msra.mxu1 %v4160_v42 }
 0x252   :  { %867 = vmatprep.subr.bf16.mxu0 %v3970_v6  ;;  %3263 = vmatprep.subr.bf16.mxu1 %v5469_v45 }
 0x307   :  { %v687_v23 = vpop.f32.mrb[24].mxu0  ;;  %v728_v5 = vpop.f32.mrb[16].mxu1 }
 0x308   :  { %v688_v48 = vadd.f32 %v687_v23, %v4265_v57  ;;  %v689_v50 = vpop.f32.mrb[25].mxu0  ;;  %v3241_v22 = vpop.f32.mrb[17].mxu1  ;;  %v729_v52 = vadd.f32 %v728_v5, %v4273_v49 }
 0x309   :  { %v690_v2 = vadd.f32 %v689_v50, %v4268_v59  ;;  %v691_v51 = vpop.f32.mrb[26].mxu0  ;;  %v731_v46 = vpop.f32.mrb[18].mxu1 }
 0x30a   :  { %v737_v61 = vadd.f32 %v688_v48, %v4213_v58  ;;  %v692_v3 = vpop.f32.mrb[27].mxu0  ;;  %v3242_v11 = vpop.f32.mrb[19].mxu1 }
 0x30b   :  { %v744_v47 = vadd.f32 %v690_v2, %v4215_v60 }
 0x30c   :  { %v2851_v43 = vmul.f32 -1.442695, %v737_v61 }
 0x30d   :  { %v2852_v16 = vmul.f32 -1.442695, %v744_v47 }
 0x30e   :  { %3681 = vpow2.f32 %v2851_v43 }
 0x30f   :  { %3683 = vpow2.f32 %v2852_v16 }
 0x318   :  { %v3682_v32 = vpop.eup %3681 }
 0x319   :  { %v741_v29 = vadd.f32 1.0, %v3682_v32  ;;  %v3684_v53 = vpop.eup %3683 }
 0x31a   :  { %v748_v37 = vadd.f32 1.0, %v3684_v53 }
 0x31b   :  { %3685 = vrcp.f32 %v741_v29 }
 0x31c   :  { %3687 = vrcp.f32 %v748_v37 }
 0x325   :  { %v3686_v55 = vpop.eup %3685 }
 0x326   :  { %v751_v0 = vmul.f32 %v3686_v55, %v729_v52  ;;  %v3688_v10 = vpop.eup %3687 }
 0x327   :  { %v754_v44 = vsub.f32 1.0, %v3688_v10  ;;  %v756_v48 = vmul.f32 %v3688_v10, %v4324_v19  ;;  %v4440_v10 = vld [vmem:[%s5443_s4 + $0x18] ss:$12 sps:$4 sm:$0xff]  }
 0x328   :  { %v752_v58 = vadd.f32 %v751_v0, %v4225_v4 }
 0x32a   :  { %3689 = vtanh.f32 %v752_v58  ;;  %v4423_v58 = vld [vmem:[%s5443_s4] ss:$12 sps:$4 sm:$0xff]  }
 0x334   :  { %v3690_v60 = vpop.eup %3689 }
 0x335   :  { %v755_v23 = vmul.f32 %v3690_v60, %v754_v44  ;;  %v4454_v44 = vld [vmem:[%s5443_s4 + $0x30] ss:$12 sps:$4 sm:$0xff]   ;;  %v4468_v60 = vld [vmem:[%s5443_s4 + $0x48] ss:$12 sps:$4 sm:$0xff]  }
 0x337   :  { %v4370_v50 = vadd.f32 %v756_v48, %v755_v23 }
 0x339   :  { %v759_v22 = vpack.c.bf16 %v4370_v50, %v4370_v50 }
 0x33b   :  { %793 = vmatmul.mubr.bf16.vlgmr.msra.gmra.mrb[28].mxu0 %v759_v22  ;;  %3260 = vmatmul.mubr.bf16.vlgmr.msra.gmra.mrb[20].mxu1 %v759_v22 }
 0x33c   :  { %868 = vmatpush1.bf16.msra.mxu0 %v3975_v7  ;;  %3264 = vmatpush3.bf16.msra.mxu1 %v4042_v21 }
 0x33d   :  { %869 = vmatprep.subr.bf16.mxu0 %v3981_v8  ;;  %3265 = vmatprep.subr.bf16.mxu1 %v5469_v45 }
 0x33e   :  { %899 = vmatprep.mubr.bf16.mxu0 %v5470_v62  ;;  %3279 = vmatprep.mubr.msk.bf16.mxu1 %vm3895_vm1, %v5469_v45 }
 0x340   :  { %870 = vmatpush1.bf16.msra.mxu0 %v3988_v9  ;;  %3266 = vmatpush3.bf16.msra.mxu1 %v4062_v26 }
 0x341   :  { %871 = vmatprep.subr.bf16.mxu0 %v4002_v12  ;;  %3267 = vmatprep.subr.bf16.mxu1 %v5469_v45 }
 0x344   :  { %872 = vmatpush1.bf16.msra.mxu0 %v4008_v14  ;;  %3268 = vmatpush3.bf16.msra.mxu1 %v4090_v31 }
 0x345   :  { %873 = vmatprep.subr.bf16.mxu0 %v4014_v15  ;;  %3269 = vmatprep.subr.bf16.mxu1 %v5469_v45 }
 0x348   :  { %874 = vmatpush1.bf16.msra.mxu0 %v4022_v17  ;;  %3270 = vmatpush3.bf16.msra.mxu1 %v4106_v35 }
 0x349   :  { %875 = vmatprep.subr.bf16.mxu0 %v4037_v20  ;;  %3271 = vmatprep.subr.bf16.mxu1 %v5469_v45 }
 0x34c   :  { %876 = vmatpush1.bf16.msra.mxu0 %v4048_v24  ;;  %3272 = vmatpush3.bf16.msra.mxu1 %v4129_v38 }
 0x34d   :  { %877 = vmatprep.subr.bf16.mxu0 %v4054_v25  ;;  %3273 = vmatprep.subr.bf16.mxu1 %v5469_v45 }
 0x350   :  { %878 = vmatpush1.bf16.msra.mxu0 %v4067_v27  ;;  %3274 = vmatpush3.bf16.msra.mxu1 %v4141_v40 }
 0x351   :  { %879 = vmatprep.subr.bf16.mxu0 %v4083_v30  ;;  %3275 = vmatprep.subr.bf16.mxu1 %v5469_v45 }
 0x354   :  { %880 = vmatpush1.bf16.msra.mxu0 %v4095_v33  ;;  %3276 = vmatpush3.bf16.msra.mxu1 %v4150_v41 }
 0x355   :  { %881 = vmatprep.subr.bf16.mxu0 %v4101_v34  ;;  %3277 = vmatprep.subr.bf16.mxu1 %v5469_v45 }
 0x358   :  { %882 = vmatpush1.bf16.msra.mxu0 %v4115_v36  ;;  %3278 = vmatpush3.bf16.msra.mxu1 %v4160_v42 }
 0x359   :  { %974 = vmatprep.subr.bf16.mxu0 %v3970_v6  ;;  %3283 = vmatprep.subr.bf16.mxu1 %v5469_v45 }
 0x40e   :  { %v794_v7 = vpop.f32.mrb[28].mxu0  ;;  %v835_v8 = vpop.f32.mrb[20].mxu1 }
 0x40f   :  { %v795_v9 = vadd.f32 %v794_v7, %v4265_v57  ;;  %v796_v12 = vpop.f32.mrb[29].mxu0  ;;  %v3261_v14 = vpop.f32.mrb[21].mxu1  ;;  %v836_v43 = vadd.f32 %v835_v8, %v4273_v49 }
 0x410   :  { %v797_v15 = vadd.f32 %v796_v12, %v4268_v59  ;;  %v798_v17 = vpop.f32.mrb[30].mxu0  ;;  %v838_v20 = vpop.f32.mrb[22].mxu1 }
 0x411   :  { %v844_v4 = vadd.f32 %v795_v9, %v4220_v63  ;;  %v799_v5 = vpop.f32.mrb[31].mxu0  ;;  %v3262_v2 = vpop.f32.mrb[23].mxu1 }
 0x412   :  { %v851_v51 = vadd.f32 %v797_v15, %v4222_v1 }
 0x413   :  { %v2853_v46 = vmul.f32 -1.442695, %v844_v4 }
 0x414   :  { %v2854_v6 = vmul.f32 -1.442695, %v851_v51 }
 0x415   :  { %3691 = vpow2.f32 %v2853_v46 }
 0x416   :  { %3693 = vpow2.f32 %v2854_v6 }
 0x41f   :  { %v3692_v61 = vpop.eup %3691 }
 0x420   :  { %v848_v3 = vadd.f32 1.0, %v3692_v61  ;;  %v3694_v11 = vpop.eup %3693 }
 0x421   :  { %v855_v47 = vadd.f32 1.0, %v3694_v11  ;;  %v4527_v11 = vld [vmem:[%s5443_s4 + $0x20] ss:$12 sps:$4 sm:$0xff]  }
 0x422   :  { %3695 = vrcp.f32 %v848_v3 }
 0x423   :  { %3697 = vrcp.f32 %v855_v47  ;;  %v4536_v47 = vld [vmem:[%s5443_s4 + $0x38] ss:$12 sps:$4 sm:$0xff]  }
 0x42c   :  { %v3696_v16 = vpop.eup %3695 }
 0x42d   :  { %v858_v32 = vmul.f32 %v3696_v16, %v836_v43  ;;  %v3698_v29 = vpop.eup %3697  ;;  %v4545_v43 = vld [vmem:[%s5443_s4 + $0x50] ss:$12 sps:$4 sm:$0xff]   ;;  %v4553_v16 = vld [vmem:[%s5443_s4 + $0x60] ss:$12 sps:$4 sm:$0xff]  }
 0x42e   :  { %v861_v53 = vsub.f32 1.0, %v3698_v29  ;;  %v863_v52 = vmul.f32 %v3698_v29, %v4370_v50  ;;  %v4572_v29 = vld [vmem:[%s5443_s4 + $0x78] ss:$12 sps:$4 sm:$0xff]  }
 0x42f   :  { %v859_v63 = vadd.f32 %v858_v32, %v4228_v13  ;;  %v4430_v13 = vld [vmem:[%s5443_s4 + $0x1c] ss:$12 sps:$4 sm:$0xff]  }
 0x430   :  { %v4559_v32 = vld [vmem:[%s5443_s4 + $0x68] ss:$12 sps:$4 sm:$0xff]  }
 0x431   :  { %3699 = vtanh.f32 %v859_v63  ;;  %v4565_v63 = vld [vmem:[%s5443_s4 + $0x7c] ss:$12 sps:$4 sm:$0xff]  }
 0x43b   :  { %v3700_v1 = vpop.eup %3699 }
 0x43c   :  { %v862_v37 = vmul.f32 %v3700_v1, %v861_v53  ;;  %v4579_v53 = vld [vmem:[%s5443_s4 + $0x94] ss:$12 sps:$4 sm:$0xff]   ;;  %v4586_v1 = vld [vmem:[%s5443_s4 + $0x90] ss:$12 sps:$4 sm:$0xff]  }
 0x43e   :  { %v4416_v55 = vadd.f32 %v863_v52, %v862_v37  ;;  %v4600_v37 = vld [vmem:[%s5443_s4 + $0xa8] ss:$12 sps:$4 sm:$0xff]  }
 0x440   :  { %v866_v0 = vpack.c.bf16 %v4416_v55, %v4416_v55 }
 0x442   :  { %900 = vmatmul.mubr.bf16.vlgmr.msra.gmra.mrb[32].mxu0 %v866_v0  ;;  %3280 = vmatmul.mubr.bf16.vlgmr.msra.gmra.mrb[24].mxu1 %v866_v0 }
 0x443   :  { %975 = vmatpush1.bf16.msra.mxu0 %v4423_v58  ;;  %3284 = vmatpush3.bf16.msra.mxu1 %v4042_v21  ;;  %v4447_v21 = vld [vmem:[%s5443_s4 + $0x34] ss:$12 sps:$4 sm:$0xff]  }
 0x444   :  { %976 = vmatprep.subr.bf16.mxu0 %v4430_v13  ;;  %3285 = vmatprep.subr.bf16.mxu1 %v5469_v45 }
 0x445   :  { %1006 = vmatprep.mubr.bf16.mxu0 %v5470_v62  ;;  %3299 = vmatprep.mubr.msk.bf16.mxu1 %vm3895_vm1, %v5469_v45 }
 0x447   :  { %977 = vmatpush1.bf16.msra.mxu0 %v4440_v10  ;;  %3286 = vmatpush3.bf16.msra.mxu1 %v4062_v26  ;;  %v4461_v26 = vld [vmem:[%s5443_s4 + $0x4c] ss:$12 sps:$4 sm:$0xff]  }
 0x448   :  { %978 = vmatprep.subr.bf16.mxu0 %v4447_v21  ;;  %3287 = vmatprep.subr.bf16.mxu1 %v5469_v45 }
 0x44b   :  { %979 = vmatpush1.bf16.msra.mxu0 %v4454_v44  ;;  %3288 = vmatpush3.bf16.msra.mxu1 %v4090_v31  ;;  %v4475_v31 = vld [vmem:[%s5443_s4 + $0x64] ss:$12 sps:$4 sm:$0xff]  }
 0x44c   :  { %980 = vmatprep.subr.bf16.mxu0 %v4461_v26  ;;  %3289 = vmatprep.subr.bf16.mxu1 %v5469_v45 }
 0x44f   :  { %981 = vmatpush1.bf16.msra.mxu0 %v4468_v60  ;;  %3290 = vmatpush3.bf16.msra.mxu1 %v4106_v35 }
 0x450   :  { %982 = vmatprep.subr.bf16.mxu0 %v4475_v31  ;;  %3291 = vmatprep.subr.bf16.mxu1 %v5469_v45 }
 0x453   :  { %983 = vmatpush1.bf16.msra.mxu0 %v4048_v24  ;;  %3292 = vmatpush3.bf16.msra.mxu1 %v4129_v38  ;;  %v4496_v24 = vld [vmem:[%s5443_s4 + $0x4] ss:$12 sps:$4 sm:$0xff]  }
 0x454   :  { %984 = vmatprep.subr.bf16.mxu0 %v4054_v25  ;;  %3293 = vmatprep.subr.bf16.mxu1 %v5469_v45 }
 0x457   :  { %985 = vmatpush1.bf16.msra.mxu0 %v4067_v27  ;;  %3294 = vmatpush3.bf16.msra.mxu1 %v4141_v40 }
 0x458   :  { %986 = vmatprep.subr.bf16.mxu0 %v4083_v30  ;;  %3295 = vmatprep.subr.bf16.mxu1 %v5469_v45 }
 0x45b   :  { %987 = vmatpush1.bf16.msra.mxu0 %v4095_v33  ;;  %3296 = vmatpush3.bf16.msra.mxu1 %v4150_v41 }
 0x45c   :  { %988 = vmatprep.subr.bf16.mxu0 %v4101_v34  ;;  %3297 = vmatprep.subr.bf16.mxu1 %v5469_v45 }
 0x45f   :  { %989 = vmatpush1.bf16.msra.mxu0 %v4115_v36  ;;  %3298 = vmatpush3.bf16.msra.mxu1 %v4160_v42 }
 0x460   :  { %1081 = vmatprep.subr.bf16.mxu0 %v4496_v24  ;;  %3303 = vmatprep.subr.bf16.mxu1 %v5469_v45 }
 0x515   :  { %v901_v25 = vpop.f32.mrb[32].mxu0  ;;  %v942_v27 = vpop.f32.mrb[24].mxu1 }
 0x516   :  { %v902_v30 = vadd.f32 %v901_v25, %v4265_v57  ;;  %v903_v33 = vpop.f32.mrb[33].mxu0  ;;  %v3281_v34 = vpop.f32.mrb[25].mxu1  ;;  %v943_v20 = vadd.f32 %v942_v27, %v4273_v49 }
 0x517   :  { %v904_v35 = vadd.f32 %v903_v33, %v4268_v59  ;;  %v905_v36 = vpop.f32.mrb[34].mxu0  ;;  %v945_v38 = vpop.f32.mrb[26].mxu1 }
 0x518   :  { %v951_v23 = vadd.f32 %v902_v30, %v4230_v18  ;;  %v906_v48 = vpop.f32.mrb[35].mxu0  ;;  %v3282_v22 = vpop.f32.mrb[27].mxu1 }
 0x519   :  { %v958_v7 = vadd.f32 %v904_v35, %v4235_v28  ;;  %v5471_v35 = vld [vmem:[#allocation9_spill] sm:$0xff]  ;;  %v5472_v48 = vld [vmem:[#allocation10_spill] sm:$0xff] }
 0x51a   :  { %v2855_v8 = vmul.f32 -1.442695, %v951_v23 }
 0x51b   :  { %v2856_v9 = vmul.f32 -1.442695, %v958_v7 }
 0x51c   :  { %3701 = vpow2.f32 %v2855_v8 }
 0x51d   :  { %3703 = vpow2.f32 %v2856_v9 }
 0x526   :  { %v3702_v12 = vpop.eup %3701 }
 0x527   :  { %v955_v14 = vadd.f32 1.0, %v3702_v12  ;;  %v3704_v15 = vpop.eup %3703 }
 0x528   :  { %v962_v17 = vadd.f32 1.0, %v3704_v15 }
 0x529   :  { %3705 = vrcp.f32 %v955_v14 }
 0x52a   :  { %3707 = vrcp.f32 %v962_v17 }
 0x533   :  { %v3706_v4 = vpop.eup %3705 }
 0x534   :  { %v965_v5 = vmul.f32 %v3706_v4, %v943_v20  ;;  %v3708_v2 = vpop.eup %3707  ;;  %v5473_v20 = vld [vmem:[#allocation14_spill] sm:$0xff] }
 0x535   :  { %v968_v51 = vsub.f32 1.0, %v3708_v2  ;;  %v970_v6 = vmul.f32 %v3708_v2, %v4416_v55 }
 0x536   :  { %v966_v18 = vadd.f32 %v965_v5, %v4245_v54  ;;  %v4515_v54 = vld [vmem:[%s5443_s4 + $0x8] ss:$12 sps:$4 sm:$0xff]  }
 0x538   :  { %3709 = vtanh.f32 %v966_v18 }
 0x542   :  { %v3710_v28 = vpop.eup %3709 }
 0x543   :  { %v969_v46 = vmul.f32 %v3710_v28, %v968_v51 }
 0x545   :  { %v4507_v61 = vadd.f32 %v970_v6, %v969_v46 }
 0x547   :  { %v973_v3 = vpack.c.bf16 %v4507_v61, %v4507_v61 }
 0x549   :  { %1007 = vmatmul.mubr.bf16.vlgmr.msra.gmra.mrb[36].mxu0 %v973_v3  ;;  %3300 = vmatmul.mubr.bf16.vlgmr.msra.gmra.mrb[28].mxu1 %v973_v3 }
 0x54a   :  { %1082 = vmatpush1.bf16.msra.mxu0 %v4423_v58  ;;  %3304 = vmatpush3.bf16.msra.mxu1 %v4515_v54 }
 0x54b   :  { %1083 = vmatprep.subr.bf16.mxu0 %v4430_v13  ;;  %3305 = vmatprep.subr.bf16.mxu1 %v5469_v45 }
 0x54c   :  { %1113 = vmatprep.mubr.bf16.mxu0 %v5470_v62  ;;  %3319 = vmatprep.mubr.msk.bf16.mxu1 %vm3895_vm1, %v5469_v45 }
 0x54e   :  { %1084 = vmatpush1.bf16.msra.mxu0 %v4440_v10  ;;  %3306 = vmatpush3.bf16.msra.mxu1 %v4527_v11 }
 0x54f   :  { %1085 = vmatprep.subr.bf16.mxu0 %v4447_v21  ;;  %3307 = vmatprep.subr.bf16.mxu1 %v5469_v45 }
 0x552   :  { %1086 = vmatpush1.bf16.msra.mxu0 %v4454_v44  ;;  %3308 = vmatpush3.bf16.msra.mxu1 %v4536_v47 }
 0x553   :  { %1087 = vmatprep.subr.bf16.mxu0 %v4461_v26  ;;  %3309 = vmatprep.subr.bf16.mxu1 %v5469_v45 }
 0x556   :  { %1088 = vmatpush1.bf16.msra.mxu0 %v4468_v60  ;;  %3310 = vmatpush3.bf16.msra.mxu1 %v4545_v43 }
 0x557   :  { %1089 = vmatprep.subr.bf16.mxu0 %v4475_v31  ;;  %3311 = vmatprep.subr.bf16.mxu1 %v5469_v45 }
 0x55a   :  { %1090 = vmatpush1.bf16.msra.mxu0 %v4553_v16  ;;  %3312 = vmatpush3.bf16.msra.mxu1 %v4559_v32 }
 0x55b   :  { %1091 = vmatprep.subr.bf16.mxu0 %v4565_v63  ;;  %3313 = vmatprep.subr.bf16.mxu1 %v5469_v45 }
 0x55e   :  { %1092 = vmatpush1.bf16.msra.mxu0 %v4572_v29  ;;  %3314 = vmatpush3.bf16.msra.mxu1 %v4141_v40  ;;  %v4593_v40 = vld [vmem:[%s5443_s4 + $0xac] ss:$12 sps:$4 sm:$0xff]  }
 0x55f   :  { %1093 = vmatprep.subr.bf16.mxu0 %v4579_v53  ;;  %3315 = vmatprep.subr.bf16.mxu1 %v5469_v45 }
 0x562   :  { %1094 = vmatpush1.bf16.msra.mxu0 %v4586_v1  ;;  %3316 = vmatpush3.bf16.msra.mxu1 %v4150_v41 }
 0x563   :  { %1095 = vmatprep.subr.bf16.mxu0 %v4593_v40  ;;  %3317 = vmatprep.subr.bf16.mxu1 %v5469_v45 }
 0x566   :  { %1096 = vmatpush1.bf16.msra.mxu0 %v4600_v37  ;;  %3318 = vmatpush3.bf16.msra.mxu1 %v4160_v42 }
 0x567   :  { %1188 = vmatprep.subr.bf16.mxu0 %v4496_v24  ;;  %3323 = vmatprep.subr.bf16.mxu1 %v5469_v45 }
 0x61c   :  { %v1008_v41 = vpop.f32.mrb[36].mxu0  ;;  %v1049_v52 = vpop.f32.mrb[28].mxu1 }
 0x61d   :  { %v1009_v0 = vadd.f32 %v1008_v41, %v4265_v57  ;;  %v1010_v25 = vpop.f32.mrb[37].mxu0  ;;  %v3301_v27 = vpop.f32.mrb[29].mxu1  ;;  %v1050_v14 = vadd.f32 %v1049_v52, %v4273_v49 }
 0x61e   :  { %v1011_v30 = vadd.f32 %v1010_v25, %v4268_v59  ;;  %v1012_v33 = vpop.f32.mrb[38].mxu0  ;;  %v1052_v34 = vpop.f32.mrb[30].mxu1 }
 0x61f   :  { %v1058_v36 = vadd.f32 %v1009_v0, %v5471_v35  ;;  %v1013_v38 = vpop.f32.mrb[39].mxu0  ;;  %v3302_v23 = vpop.f32.mrb[31].mxu1  ;;  %v5476_v34 = vld [vmem:[#allocation11_spill] sm:$0xff] }
 0x620   :  { %v1065_v42 = vadd.f32 %v1011_v30, %v5472_v48 }
 0x621   :  { %v2857_v22 = vmul.f32 -1.442695, %v1058_v36 }
 0x622   :  { %v2858_v24 = vmul.f32 -1.442695, %v1065_v42 }
 0x623   :  { %3711 = vpow2.f32 %v2857_v22 }
 0x624   :  { %3713 = vpow2.f32 %v2858_v24  ;;  %v3589_v24 = vld [vmem:[%s5442_s3 + $0xc0] ss:$12 sps:$4 sm:$0xff]  }
 0x62d   :  { %v3712_v7 = vpop.eup %3711 }
 0x62e   :  { %v1062_v8 = vadd.f32 1.0, %v3712_v7  ;;  %v3714_v9 = vpop.eup %3713 }
 0x62f   :  { %v1069_v12 = vadd.f32 1.0, %v3714_v9  ;;  %v3596_v9 = vld [vmem:[%s5442_s3 + $0xe0] ss:$12 sps:$4 sm:$0xff]  }
 0x630   :  { %3715 = vrcp.f32 %v1062_v8  ;;  %v3595_v8 = vld [vmem:[%s5442_s3 + $0xdc] ss:$12 sps:$4 sm:$0xff]  }
 0x631   :  { %3717 = vrcp.f32 %v1069_v12  ;;  %v1336_v12 = vpack.c.bf16 %v4324_v19, %v4278_v39  ;;  %v3597_v39 = vld [vmem:[%s5442_s3 + $0xf0] ss:$12 sps:$4 sm:$0xff]   ;;  %v3603_v19 = vld [vmem:[%s5442_s3 + $0x10c] ss:$12 sps:$4 sm:$0xff]  }
 0x63a   :  { %v3716_v15 = vpop.eup %3715 }
 0x63b   :  { %v1072_v17 = vmul.f32 %v3716_v15, %v1050_v14  ;;  %v3718_v5 = vpop.eup %3717  ;;  %v3593_v14 = vld [vmem:[%s5442_s3 + $0xd8] ss:$12 sps:$4 sm:$0xff]   ;;  %v3599_v15 = vld [vmem:[%s5442_s3 + $0xf4] ss:$12 sps:$4 sm:$0xff]  }
 0x63c   :  { %v1075_v18 = vsub.f32 1.0, %v3718_v5  ;;  %v1077_v28 = vmul.f32 %v3718_v5, %v4507_v61  ;;  %v3607_v5 = vld [vmem:[%s5442_s3 + $0x124] ss:$12 sps:$4 sm:$0xff]  }
 0x63d   :  { %v1073_v4 = vadd.f32 %v1072_v17, %v5473_v20  ;;  %v3600_v17 = vld [vmem:[%s5442_s3 + $0xf8] ss:$12 sps:$4 sm:$0xff]   ;;  %v3604_v20 = vld [vmem:[%s5442_s3 + $0x110] ss:$12 sps:$4 sm:$0xff]  }
 0x63f   :  { %3719 = vtanh.f32 %v1073_v4  ;;  %v3601_v4 = vld [vmem:[%s5442_s3 + $0x108] ss:$12 sps:$4 sm:$0xff]  }
 0x649   :  { %v3720_v2 = vpop.eup %3719 }
 0x64a   :  { %v1076_v51 = vmul.f32 %v3720_v2, %v1075_v18  ;;  %v3608_v18 = vld [vmem:[%s5442_s3 + $0x128] ss:$12 sps:$4 sm:$0xff]   ;;  %v3605_v2 = vld [vmem:[%s5442_s3 + $0x120] ss:$12 sps:$4 sm:$0xff]  }
 0x64c   :  { %v4613_v46 = vadd.f32 %v1077_v28, %v1076_v51  ;;  %v3611_v51 = vld [vmem:[%s5442_s3 + $0x13c] ss:$12 sps:$4 sm:$0xff]   ;;  %v3612_v28 = vld [vmem:[%s5442_s3 + $0x140] ss:$12 sps:$4 sm:$0xff]  }
 0x64e   :  { %v1080_v6 = vpack.c.bf16 %v4613_v46, %v4613_v46 }
 0x650   :  { %1114 = vmatmul.mubr.bf16.vlgmr.msra.gmra.mrb[40].mxu0 %v1080_v6  ;;  %3320 = vmatmul.mubr.bf16.vlgmr.msra.gmra.mrb[32].mxu1 %v1080_v6  ;;  %v3609_v6 = vld [vmem:[%s5442_s3 + $0x138] ss:$12 sps:$4 sm:$0xff]  }
 0x651   :  { %1189 = vmatpush1.bf16.msra.mxu0 %v4423_v58  ;;  %3324 = vmatpush3.bf16.msra.mxu1 %v4515_v54  ;;  %v3842_v58 = vld [vmem:[%s5443_s4 + $0x80] ss:$12 sps:$4 sm:$0xff]  }
 0x652   :  { %1190 = vmatprep.subr.bf16.mxu0 %v4430_v13  ;;  %3325 = vmatprep.subr.bf16.mxu1 %v5469_v45  ;;  %v3843_v13 = vld [vmem:[%s5443_s4 + $0x98] ss:$12 sps:$4 sm:$0xff]  }
 0x653   :  { %1220 = vmatprep.mubr.bf16.mxu0 %v5470_v62  ;;  %3339 = vmatprep.mubr.msk.bf16.mxu1 %vm3895_vm1, %v5469_v45 }
 0x655   :  { %1191 = vmatpush1.bf16.msra.mxu0 %v4440_v10  ;;  %3326 = vmatpush3.bf16.msra.mxu1 %v4527_v11  ;;  %v3844_v10 = vld [vmem:[%s5443_s4 + $0xb0] ss:$12 sps:$4 sm:$0xff]  }
 0x656   :  { %1192 = vmatprep.subr.bf16.mxu0 %v4447_v21  ;;  %3327 = vmatprep.subr.bf16.mxu1 %v5469_v45  ;;  %v3591_v21 = vld [vmem:[%s5442_s3 + $0xc4] ss:$12 sps:$4 sm:$0xff]  }
 0x659   :  { %1193 = vmatpush1.bf16.msra.mxu0 %v4454_v44  ;;  %3328 = vmatpush3.bf16.msra.mxu1 %v4536_v47  ;;  %v3592_v44 = vld [vmem:[%s5442_s3 + $0xc8] ss:$12 sps:$4 sm:$0xff]  }
 0x65a   :  { %1194 = vmatprep.subr.bf16.mxu0 %v4461_v26  ;;  %3329 = vmatprep.subr.bf16.mxu1 %v5469_v45 }
 0x65d   :  { %1195 = vmatpush1.bf16.msra.mxu0 %v4468_v60  ;;  %3330 = vmatpush3.bf16.msra.mxu1 %v4545_v43 }
 0x65e   :  { %1196 = vmatprep.subr.bf16.mxu0 %v4475_v31  ;;  %3331 = vmatprep.subr.bf16.mxu1 %v5469_v45 }
 0x661   :  { %1197 = vmatpush1.bf16.msra.mxu0 %v4553_v16  ;;  %3332 = vmatpush3.bf16.msra.mxu1 %v4559_v32  ;;  %v5474_v16 = vld [vmem:[#allocation13_spill] sm:$0xff] }
 0x662   :  { %1198 = vmatprep.subr.bf16.mxu0 %v4565_v63  ;;  %3333 = vmatprep.subr.bf16.mxu1 %v5469_v45 }
 0x665   :  { %1199 = vmatpush1.bf16.msra.mxu0 %v4572_v29  ;;  %3334 = vmatpush3.bf16.msra.mxu1 %v3842_v58  ;;  %v3615_v58 = vld [vmem:[%s5442_s3 + $0x154] ss:$12 sps:$4 sm:$0xff]  }
 0x666   :  { %1200 = vmatprep.subr.bf16.mxu0 %v4579_v53  ;;  %3335 = vmatprep.subr.bf16.mxu1 %v5469_v45  ;;  %v5475_v53 = vld [vmem:[#allocation15_spill] sm:$0xff] }
 0x669   :  { %1201 = vmatpush1.bf16.msra.mxu0 %v4586_v1  ;;  %3336 = vmatpush3.bf16.msra.mxu1 %v3843_v13  ;;  %v3616_v13 = vld [vmem:[%s5442_s3 + $0x158] ss:$12 sps:$4 sm:$0xff]  }
 0x66a   :  { %1202 = vmatprep.subr.bf16.mxu0 %v4593_v40  ;;  %3337 = vmatprep.subr.bf16.mxu1 %v5469_v45 }
 0x66d   :  { %1203 = vmatpush1.bf16.msra.mxu0 %v4600_v37  ;;  %3338 = vmatpush3.bf16.msra.mxu1 %v3844_v10  ;;  %v3613_v10 = vld [vmem:[%s5442_s3 + $0x150] ss:$12 sps:$4 sm:$0xff]  }
 0x66e   :  { %1486 = vmatprep.subr.bf16.mxu0 %v3591_v21  ;;  %3343 = vmatprep.subr.bf16.mxu1 %v3592_v44  ;;  %v3619_v21 = vld [vmem:[%s5442_s3 + $0x16c] ss:$12 sps:$4 sm:$0xff]  }
 0x723   :  { %v1115_v26 = vpop.f32.mrb[40].mxu0  ;;  %v1156_v60 = vpop.f32.mrb[32].mxu1 }
 0x724   :  { %v1116_v31 = vadd.f32 %v1115_v26, %v4265_v57  ;;  %v1117_v3 = vpop.f32.mrb[41].mxu0  ;;  %v3321_v54 = vpop.f32.mrb[33].mxu1  ;;  %v1157_v27 = vadd.f32 %v1156_v60, %v4273_v49  ;;  %v3617_v26 = vld [vmem:[%s5442_s3 + $0x168] ss:$12 sps:$4 sm:$0xff]   ;;  %v1337_v60 = vpack.c.bf16 %v4416_v55, %v4370_v50  ;;  %v4753_v50 = vld [vmem:[%s5443_s4 + $0xc4] ss:$12 sps:$4 sm:$0xff]  }
 0x725   :  { %v1118_v11 = vadd.f32 %v1117_v3, %v4268_v59  ;;  %v1119_v47 = vpop.f32.mrb[42].mxu0  ;;  %v1159_v43 = vpop.f32.mrb[34].mxu1  ;;  %v4758_v55 = vld [vmem:[%s5443_s4 + $0xc0] ss:$12 sps:$4 sm:$0xff]   ;;  %v4782_v54 = vld [vmem:[%s5443_s4 + $0xf0] ss:$12 sps:$4 sm:$0xff]  }
 0x726   :  { %v1165_v32 = vadd.f32 %v1116_v31, %v5474_v16  ;;  %v1120_v63 = vpop.f32.mrb[43].mxu0  ;;  %v3322_v29 = vpop.f32.mrb[35].mxu1  ;;  %v1338_v31 = vpack.c.bf16 %v4613_v46, %v4507_v61  ;;  %v4765_v61 = vld [vmem:[%s5443_s4 + $0xdc] ss:$12 sps:$4 sm:$0xff]   ;;  %v4777_v3 = vld [vmem:[%s5443_s4 + $0xf4] ss:$12 sps:$4 sm:$0xff]  }
 0x727   :  { %v1172_v1 = vadd.f32 %v1118_v11, %v5475_v53  ;;  %v4789_v11 = vld [vmem:[%s5443_s4 + $0x10c] ss:$12 sps:$4 sm:$0xff]   ;;  %v4794_v47 = vld [vmem:[%s5443_s4 + $0x108] ss:$12 sps:$4 sm:$0xff]   ;;  %v4801_v43 = vld [vmem:[%s5443_s4 + $0x124] ss:$12 sps:$4 sm:$0xff]  }
 0x728   :  { %v2859_v40 = vmul.f32 -1.442695, %v1165_v32  ;;  %v4806_v16 = vld [vmem:[%s5443_s4 + $0x120] ss:$12 sps:$4 sm:$0xff]   ;;  %v4813_v32 = vld [vmem:[%s5443_s4 + $0x13c] ss:$12 sps:$4 sm:$0xff]  }
 0x729   :  { %v2860_v37 = vmul.f32 -1.442695, %v1172_v1  ;;  %v4818_v63 = vld [vmem:[%s5443_s4 + $0x138] ss:$12 sps:$4 sm:$0xff]   ;;  %v4825_v29 = vld [vmem:[%s5443_s4 + $0x154] ss:$12 sps:$4 sm:$0xff]  }
 0x72a   :  { %3721 = vpow2.f32 %v2859_v40  ;;  %v4830_v53 = vld [vmem:[%s5443_s4 + $0x150] ss:$12 sps:$4 sm:$0xff]   ;;  %v4835_v1 = vld [vmem:[%s5443_s4 + $0xc8] ss:$12 sps:$4 sm:$0xff]   ;;  %v4840_v40 = vld [vmem:[%s5443_s4 + $0x16c] ss:$12 sps:$4 sm:$0xff]  }
 0x72b   :  { %3723 = vpow2.f32 %v2860_v37  ;;  %v4848_v37 = vld [vmem:[%s5443_s4 + $0x168] ss:$12 sps:$4 sm:$0xff]  }
 0x734   :  { %v3722_v41 = vpop.eup %3721 }
 0x735   :  { %v1169_v52 = vadd.f32 1.0, %v3722_v41  ;;  %v3724_v0 = vpop.eup %3723  ;;  %v4853_v41 = vld [vmem:[%s5443_s4 + $0xe0] ss:$12 sps:$4 sm:$0xff]  }
 0x736   :  { %v1176_v25 = vadd.f32 1.0, %v3724_v0  ;;  %v4870_v0 = vld [vmem:[%s5443_s4 + $0x110] ss:$12 sps:$4 sm:$0xff]  }
 0x737   :  { %3725 = vrcp.f32 %v1169_v52  ;;  %v4864_v52 = vld [vmem:[%s5443_s4 + $0xf8] ss:$12 sps:$4 sm:$0xff]  }
 0x738   :  { %3727 = vrcp.f32 %v1176_v25  ;;  %v4877_v25 = vld [vmem:[%s5443_s4 + $0x128] ss:$12 sps:$4 sm:$0xff]  }
 0x741   :  { %v3726_v30 = vpop.eup %3725 }
 0x742   :  { %v1179_v33 = vmul.f32 %v3726_v30, %v1157_v27  ;;  %v3728_v36 = vpop.eup %3727  ;;  %v4884_v27 = vld [vmem:[%s5443_s4 + $0x140] ss:$12 sps:$4 sm:$0xff]   ;;  %v4891_v30 = vld [vmem:[%s5443_s4 + $0x158] ss:$12 sps:$4 sm:$0xff]  }
 0x743   :  { %v1182_v38 = vsub.f32 1.0, %v3728_v36  ;;  %v1184_v42 = vmul.f32 %v3728_v36, %v4613_v46  ;;  %v4770_v46 = vld [vmem:[%s5443_s4 + $0xd8] ss:$12 sps:$4 sm:$0xff]  }
 0x744   :  { %v1180_v35 = vadd.f32 %v1179_v33, %v5476_v34  ;;  %v4898_v33 = vld [vmem:[%s5443_s4 + $0x170] ss:$12 sps:$4 sm:$0xff]  }
 0x746   :  { %3729 = vtanh.f32 %v1180_v35 }
 0x750   :  { %v3730_v23 = vpop.eup %3729 }
 0x751   :  { %v1183_v48 = vmul.f32 %v3730_v23, %v1182_v38 }
 0x753   :  { %v4669_v22 = vadd.f32 %v1184_v42, %v1183_v48 }
 0x755   :  { %v1187_v7 = vpack.c.bf16 %v4669_v22, %v4669_v22 }
 0x757   :  { %1221 = vmatmul.mubr.bf16.vlgmr.msra.gmra.mrb[44].mxu0 %v1187_v7  ;;  %3340 = vmatmul.mubr.bf16.vlgmr.msra.gmra.mrb[36].mxu1 %v1187_v7  ;;  %v5477_v7 = vld [vmem:[#allocation16_spill] sm:$0xff] }
 0x758   :  { %1487 = vmatpush1.bf16.msra.mxu0 %v3589_v24  ;;  %3344 = vmatpush3.bf16.msra.mxu1 %v3592_v44  ;;  %v3620_v44 = vld [vmem:[%s5442_s3 + $0x170] ss:$12 sps:$4 sm:$0xff]  }
 0x759   :  { %3359 = vmatprep.mubr.bf16.mxu1 %v1336_v12  ;;  %1488 = vmatprep.subr.bf16.mxu0 %v3595_v8 }
 0x75a   :  { %3345 = vmatprep.subr.bf16.mxu1 %v3596_v9  ;;  %1518 = vmatprep.mubr.bf16.mxu0 %v5470_v62 }
 0x75c   :  { %1489 = vmatpush1.bf16.msra.mxu0 %v3593_v14  ;;  %3346 = vmatpush3.bf16.msra.mxu1 %v3596_v9  ;;  %v5478_v14 = vld [vmem:[#allocation17_spill] sm:$0xff] }
 0x75d   :  { %1490 = vmatprep.subr.bf16.mxu0 %v3599_v15  ;;  %3347 = vmatprep.subr.bf16.mxu1 %v3600_v17 }
 0x760   :  { %1491 = vmatpush1.bf16.msra.mxu0 %v3597_v39  ;;  %3348 = vmatpush3.bf16.msra.mxu1 %v3600_v17 }
 0x761   :  { %1492 = vmatprep.subr.bf16.mxu0 %v3603_v19  ;;  %3349 = vmatprep.subr.bf16.mxu1 %v3604_v20 }
 0x764   :  { %1493 = vmatpush1.bf16.msra.mxu0 %v3601_v4  ;;  %3350 = vmatpush3.bf16.msra.mxu1 %v3604_v20 }
 0x765   :  { %1494 = vmatprep.subr.bf16.mxu0 %v3607_v5  ;;  %3351 = vmatprep.subr.bf16.mxu1 %v3608_v18 }
 0x768   :  { %1495 = vmatpush1.bf16.msra.mxu0 %v3605_v2  ;;  %3352 = vmatpush3.bf16.msra.mxu1 %v3608_v18 }
 0x769   :  { %1496 = vmatprep.subr.bf16.mxu0 %v3611_v51  ;;  %3353 = vmatprep.subr.bf16.mxu1 %v3612_v28 }
 0x76c   :  { %1497 = vmatpush1.bf16.msra.mxu0 %v3609_v6  ;;  %3354 = vmatpush3.bf16.msra.mxu1 %v3612_v28  ;;  %v5479_v28 = vld [vmem:[#allocation12_spill] sm:$0xff] }
 0x76d   :  { %1498 = vmatprep.subr.bf16.mxu0 %v3615_v58  ;;  %3355 = vmatprep.subr.bf16.mxu1 %v3616_v13 }
 0x770   :  { %1499 = vmatpush1.bf16.msra.mxu0 %v3613_v10  ;;  %3356 = vmatpush3.bf16.msra.mxu1 %v3616_v13 }
 0x771   :  { %1500 = vmatprep.subr.bf16.mxu0 %v3619_v21  ;;  %3357 = vmatprep.subr.bf16.mxu1 %v3620_v44 }
 0x774   :  { %1501 = vmatpush1.bf16.msra.mxu0 %v3617_v26  ;;  %3358 = vmatpush3.bf16.msra.mxu1 %v3620_v44 }
 0x775   :  { %3367 = vmatprep.subr.bf16.mxu1 %v5469_v45  ;;  %1830 = vmatprep.subr.bf16.mxu0 %v4753_v50 }
 0x777   :  { %1519 = vmatmul.mubr.bf16.vlgmr.msra.gmra.mrb[48].mxu0 %v1336_v12  ;;  %3360 = vmatmul.mubr.bf16.vlgmr.msra.gmra.mrb[40].mxu1 %v1337_v60 }
 0x778   :  { %3363 = vmatprep.mubr.bf16.mxu1 %v1338_v31  ;;  %1528 = vmatprep.mubr.bf16.mxu0 %v5470_v62 }
 0x779   :  { %1831 = vmatpush1.bf16.msra.mxu0 %v4758_v55  ;;  %3368 = vmatpush3.bf16.msra.mxu1 %v4835_v1 }
 0x77a   :  { %1832 = vmatprep.subr.bf16.mxu0 %v4765_v61  ;;  %3369 = vmatprep.subr.bf16.mxu1 %v5469_v45 }
 0x77d   :  { %1833 = vmatpush1.bf16.msra.mxu0 %v4770_v46  ;;  %3370 = vmatpush3.bf16.msra.mxu1 %v4853_v41 }
 0x77e   :  { %1834 = vmatprep.subr.bf16.mxu0 %v4777_v3  ;;  %3371 = vmatprep.subr.bf16.mxu1 %v5469_v45 }
 0x77f   :  { %1529 = vmatmul.mubr.bf16.gmra.mrb[52].mxu0 %v1337_v60 }
 0x780   :  { %1538 = vmatprep.mubr.bf16.mxu0 %v5470_v62 }
 0x781   :  { %1835 = vmatpush1.bf16.msra.mxu0 %v4782_v54  ;;  %3372 = vmatpush3.bf16.msra.mxu1 %v4864_v52 }
 0x782   :  { %1836 = vmatprep.subr.bf16.mxu0 %v4789_v11  ;;  %3373 = vmatprep.subr.bf16.mxu1 %v5469_v45 }
 0x785   :  { %1837 = vmatpush1.bf16.msra.mxu0 %v4794_v47  ;;  %3374 = vmatpush3.bf16.msra.mxu1 %v4870_v0 }
 0x786   :  { %1838 = vmatprep.subr.bf16.mxu0 %v4801_v43  ;;  %3375 = vmatprep.subr.bf16.mxu1 %v5469_v45 }
 0x787   :  { %1539 = vmatmul.mubr.bf16.gmra.mrb[56].mxu0 %v1338_v31 }
 0x788   :  { %1548 = vmatprep.mubr.bf16.mxu0 %v5470_v62 }
 0x789   :  { %1839 = vmatpush1.bf16.msra.mxu0 %v4806_v16  ;;  %3376 = vmatpush3.bf16.msra.mxu1 %v4877_v25 }
 0x78a   :  { %1840 = vmatprep.subr.bf16.mxu0 %v4813_v32  ;;  %3377 = vmatprep.subr.bf16.mxu1 %v5469_v45 }
 0x78d   :  { %1841 = vmatpush1.bf16.msra.mxu0 %v4818_v63  ;;  %3378 = vmatpush3.bf16.msra.mxu1 %v4884_v27 }
 0x78e   :  { %1842 = vmatprep.subr.bf16.mxu0 %v4825_v29  ;;  %3379 = vmatprep.subr.bf16.mxu1 %v5469_v45 }
 0x791   :  { %1843 = vmatpush1.bf16.msra.mxu0 %v4830_v53  ;;  %3380 = vmatpush3.bf16.msra.mxu1 %v4891_v30 }
 0x792   :  { %1844 = vmatprep.subr.bf16.mxu0 %v4840_v40  ;;  %3381 = vmatprep.subr.bf16.mxu1 %v5469_v45 }
 0x795   :  { %1845 = vmatpush1.bf16.msra.mxu0 %v4848_v37  ;;  %3382 = vmatpush3.bf16.msra.mxu1 %v4898_v33 }
 0x796   :  { %1936 = vmatprep.subr.bf16.mxu0 %v4753_v50  ;;  %3387 = vmatprep.subr.bf16.mxu1 %v5469_v45 }
 0x82a   :  { %v1222_v34 = vpop.f32.mrb[44].mxu0  ;;  %v1263_v35 = vpop.f32.mrb[36].mxu1 }
 0x82b   :  { %v1223_v36 = vadd.f32 %v1222_v34, %v4265_v57  ;;  %v1224_v38 = vpop.f32.mrb[45].mxu0  ;;  %v3341_v23 = vpop.f32.mrb[37].mxu1  ;;  %v1264_v5 = vadd.f32 %v1263_v35, %v4273_v49 }
 0x82c   :  { %v1225_v48 = vadd.f32 %v1224_v38, %v4268_v59  ;;  %v1226_v42 = vpop.f32.mrb[46].mxu0  ;;  %v1266_v24 = vpop.f32.mrb[38].mxu1 }
 0x82d   :  { %v1272_v8 = vadd.f32 %v1223_v36, %v5477_v7  ;;  %v1227_v9 = vpop.f32.mrb[47].mxu0  ;;  %v3342_v12 = vpop.f32.mrb[39].mxu1 }
 0x82e   :  { %v1279_v15 = vadd.f32 %v1225_v48, %v5478_v14  ;;  %v4947_v14 = vld [vmem:[%s5440_s1 + $0x8] sm:$0xff] }
 0x82f   :  { %v2861_v17 = vmul.f32 -1.442695, %v1272_v8 }
 0x830   :  { %v2862_v39 = vmul.f32 -1.442695, %v1279_v15  ;;  %v1701_v15 = vpack.c.bf16 %v4947_v14, %v4947_v14 }
 0x831   :  { %3731 = vpow2.f32 %v2861_v17 }
 0x832   :  { %3733 = vpow2.f32 %v2862_v39 }
 0x83b   :  { %v3732_v19 = vpop.eup %3731 }
 0x83c   :  { %v1276_v20 = vadd.f32 1.0, %v3732_v19  ;;  %v3734_v57 = vpop.eup %3733 }
 0x83d   :  { %v1283_v4 = vadd.f32 1.0, %v3734_v57 }
 0x83e   :  { %3735 = vrcp.f32 %v1276_v20  ;;  %v2895_v20 = vld [vmem:[%s5444_s5 + $0x3] sm:$0x7] }
 0x83f   :  { %3737 = vrcp.f32 %v1283_v4 }
 0x848   :  { %v3736_v59 = vpop.eup %3735 }
 0x849   :  { %v1286_v18 = vmul.f32 %v3736_v59, %v1264_v5  ;;  %v3738_v60 = vpop.eup %3737  ;;  %v2952_v5 = vld [vmem:[%s5445_s6 + $0x3] sm:$0x7] }
 0x84a   :  { %v4908_v2 = vpop.f32.mrb[48].mxu0  ;;  %v4910_v51 = vpop.f32.mrb[40].mxu1  ;;  %v1289_v36 = vsub.f32 1.0, %v3738_v60  ;;  %v1291_v48 = vmul.f32 %v3738_v60, %v4669_v22 }
 0x84b   :  { %v1287_v6 = vadd.f32 %v1286_v18, %v5479_v28  ;;  %v4913_v58 = vpop.f32.mrb[49].mxu0  ;;  %v4915_v13 = vpop.f32.mrb[41].mxu1  ;;  %v5491_v28 = vld [vmem:[#allocation7_spill] sm:$0xff] }
 0x84c   :  { %v4917_v10 = vpop.f32.mrb[50].mxu0  ;;  %v4919_v21 = vpop.f32.mrb[42].mxu1  ;;  %v5014_v60 = vrot.slane %v2952_v5, %v5491_v28 }
 0x84d   :  { %3739 = vtanh.f32 %v1287_v6  ;;  %v4921_v44 = vpop.f32.mrb[51].mxu0  ;;  %v4923_v49 = vpop.f32.mrb[43].mxu1  ;;  %v5011_v6 = vrot.slane %v2895_v20, %v5491_v28 }
 0x852   :  { %v4925_v26 = vpop.f32.mrb[52].mxu0 }
 0x853   :  { %v4927_v31 = vpop.f32.mrb[53].mxu0 }
 0x854   :  { %v4929_v34 = vpop.f32.mrb[54].mxu0 }
 0x855   :  { %v4931_v35 = vpop.f32.mrb[55].mxu0 }
 0x857   :  { %v3740_v38 = vpop.eup %3739 }
 0x858   :  { %v1290_v23 = vmul.f32 %v3740_v38, %v1289_v36  ;;  %v5492_v36 = vld [vmem:[#allocation8_spill] sm:$0xff] }
 0x859   :  { %v5017_v38 = vrot.slane %v2895_v20, %v5492_v36 }
 0x85a   :  { %v4934_v42 = vpop.f32.mrb[56].mxu0  ;;  %v1292_v24 = vadd.f32 %v1291_v48, %v1290_v23  ;;  %v5020_v23 = vrot.slane %v2952_v5, %v5492_v36 }
 0x85b   :  { %v4936_v7 = vpop.f32.mrb[57].mxu0 }
 0x85c   :  { %5480 = vst [vmem:[#allocation9_spill] sm:$0xff] %v4936_v7  ;;  %v4938_v8 = vpop.f32.mrb[58].mxu0  ;;  %1294 = vst [vmem:[#allocation4] sm:$0xff] %v1292_v24  ;;  %v1339_v9 = vpack.c.bf16 %v1292_v24, %v4669_v22 }
 0x85d   :  { %5481 = vst [vmem:[#allocation10_spill] sm:$0xff] %v4938_v8  ;;  %v4941_v12 = vpop.f32.mrb[59].mxu0 }
 0x85e   :  { %5482 = vst [vmem:[#allocation14_spill] sm:$0xff] %v4941_v12  ;;  %1549 = vmatmul.mubr.bf16.gmra.mrb[60].mxu0 %v1339_v9  ;;  %3364 = vmatmul.mubr.bf16.gmra.mrb[44].mxu1 %v1339_v9  ;;  %v1521_v9 = vadd.f32 %v4908_v2, %v5011_v6 }
 0x85f   :  { %1862 = vmatprep.mubr.bf16.mxu0 %v5470_v62  ;;  %3383 = vmatprep.mubr.msk.bf16.mxu1 %vm3895_vm1, %v5469_v45 }
 0x866   :  { %1863 = vmatmul.mubr.bf16.vlgmr.msra.gmra.mrb[64].mxu0 %v1701_v15  ;;  %3384 = vmatmul.mubr.bf16.vlgmr.msra.gmra.mrb[48].mxu1 %v1701_v15 }
 0x867   :  { %1937 = vmatpush1.bf16.msra.mxu0 %v4758_v55  ;;  %3388 = vmatpush3.bf16.msra.mxu1 %v4835_v1 }
 0x868   :  { %1938 = vmatprep.subr.bf16.mxu0 %v4765_v61  ;;  %3389 = vmatprep.subr.bf16.mxu1 %v5469_v45 }
 0x869   :  { %1968 = vmatprep.mubr.bf16.mxu0 %v5470_v62  ;;  %3403 = vmatprep.mubr.msk.bf16.mxu1 %vm3895_vm1, %v5469_v45 }
 0x86b   :  { %1939 = vmatpush1.bf16.msra.mxu0 %v4770_v46  ;;  %3390 = vmatpush3.bf16.msra.mxu1 %v4853_v41 }
 0x86c   :  { %1940 = vmatprep.subr.bf16.mxu0 %v4777_v3  ;;  %3391 = vmatprep.subr.bf16.mxu1 %v5469_v45 }
 0x86f   :  { %1941 = vmatpush1.bf16.msra.mxu0 %v4782_v54  ;;  %3392 = vmatpush3.bf16.msra.mxu1 %v4864_v52 }
 0x870   :  { %1942 = vmatprep.subr.bf16.mxu0 %v4789_v11  ;;  %3393 = vmatprep.subr.bf16.mxu1 %v5469_v45 }
 0x873   :  { %1943 = vmatpush1.bf16.msra.mxu0 %v4794_v47  ;;  %3394 = vmatpush3.bf16.msra.mxu1 %v4870_v0 }
 0x874   :  { %1944 = vmatprep.subr.bf16.mxu0 %v4801_v43  ;;  %3395 = vmatprep.subr.bf16.mxu1 %v5469_v45 }
 0x877   :  { %1945 = vmatpush1.bf16.msra.mxu0 %v4806_v16  ;;  %3396 = vmatpush3.bf16.msra.mxu1 %v4877_v25 }
 0x878   :  { %1946 = vmatprep.subr.bf16.mxu0 %v4813_v32  ;;  %3397 = vmatprep.subr.bf16.mxu1 %v5469_v45 }
 0x87b   :  { %1947 = vmatpush1.bf16.msra.mxu0 %v4818_v63  ;;  %3398 = vmatpush3.bf16.msra.mxu1 %v4884_v27 }
 0x87c   :  { %1948 = vmatprep.subr.bf16.mxu0 %v4825_v29  ;;  %3399 = vmatprep.subr.bf16.mxu1 %v5469_v45 }
 0x87f   :  { %1949 = vmatpush1.bf16.msra.mxu0 %v4830_v53  ;;  %3400 = vmatpush3.bf16.msra.mxu1 %v4891_v30 }
 0x880   :  { %1950 = vmatprep.subr.bf16.mxu0 %v4840_v40  ;;  %3401 = vmatprep.subr.bf16.mxu1 %v5469_v45 }
 0x883   :  { %1951 = vmatpush1.bf16.msra.mxu0 %v4848_v37  ;;  %3402 = vmatpush3.bf16.msra.mxu1 %v4898_v33 }
 0x884   :  { %2042 = vmatprep.subr.bf16.mxu0 %v4753_v50  ;;  %3407 = vmatprep.subr.bf16.mxu1 %v5469_v45 }
 0x931   :  { %v4988_v22 = vpop.f32.mrb[60].mxu0  ;;  %v4990_v17 = vpop.f32.mrb[44].mxu1 }
 0x932   :  { %5483 = vst [vmem:[#allocation13_spill] sm:$0xff] %v4988_v22  ;;  %5484 = vst [vmem:[#allocation15_spill] sm:$0xff] %v4990_v17  ;;  %v4992_v39 = vpop.f32.mrb[61].mxu0  ;;  %v4994_v19 = vpop.f32.mrb[45].mxu1 }
 0x933   :  { %5485 = vst [vmem:[#allocation11_spill] sm:$0xff] %v4992_v39  ;;  %5486 = vst [vmem:[#allocation16_spill] sm:$0xff] %v4994_v19  ;;  %v4999_v57 = vpop.f32.mrb[62].mxu0  ;;  %v5001_v4 = vpop.f32.mrb[46].mxu1 }
 0x934   :  { %5487 = vst [vmem:[#allocation17_spill] sm:$0xff] %v4999_v57  ;;  %5488 = vst [vmem:[#allocation12_spill] sm:$0xff] %v5001_v4  ;;  %v5006_v59 = vpop.f32.mrb[63].mxu0  ;;  %v5008_v18 = vpop.f32.mrb[47].mxu1  ;;  %v1523_v57 = vadd.f32 %v4913_v58, %v5017_v38  ;;  %v5032_v58 = vrot.slane %v2895_v20, %v4211_v56  ;;  %v1525_v20 = vadd.f32 %v4917_v10, %v5011_v6 }
 0x935   :  { %5489 = vst [vmem:[#allocation18_spill] sm:$0xff] %v5006_v59  ;;  %5490 = vst [vmem:[#allocation19_spill] sm:$0xff] %v5008_v18 }
 0x939   :  { %v1864_v48 = vpop.f32.mrb[64].mxu0  ;;  %v1905_v24 = vpop.f32.mrb[48].mxu1 }
 0x93a   :  { %v1865_v15 = vadd.f32 %v1864_v48, %v5014_v60  ;;  %v1866_v4 = vpop.f32.mrb[65].mxu0  ;;  %v3385_v59 = vpop.f32.mrb[49].mxu1 }
 0x93b   :  { %v1867_v28 = vadd.f32 %v1866_v4, %v5020_v23  ;;  %v1868_v17 = vpop.f32.mrb[66].mxu0  ;;  %v1908_v39 = vpop.f32.mrb[50].mxu1  ;;  %v5029_v59 = vrot.slane %v2952_v5, %v4211_v56 }
 0x93c   :  { %v1914_v22 = vadd.f32 %v1865_v15, %v1521_v9  ;;  %v1869_v18 = vpop.f32.mrb[67].mxu0  ;;  %v3386_v36 = vpop.f32.mrb[51].mxu1 }
 0x93d   :  { %v1921_v12 = vadd.f32 %v1867_v28, %v1523_v57  ;;  %v1906_v39 = vadd.f32 %v1905_v24, %v5029_v59  ;;  %v1527_v36 = vadd.f32 %v4921_v44, %v5017_v38 }
 0x93e   :  { %v2978_v8 = vmul.f32 -1.442695, %v1914_v22  ;;  %v1594_v22 = vadd.f32 %v4915_v13, %v5032_v58 }
 0x93f   :  { %v2979_v19 = vmul.f32 -1.442695, %v1921_v12 }
 0x940   :  { %3741 = vpow2.f32 %v2978_v8 }
 0x941   :  { %3743 = vpow2.f32 %v2979_v19 }
 0x94a   :  { %v3742_v2 = vpop.eup %3741 }
 0x94b   :  { %v1918_v7 = vadd.f32 1.0, %v3742_v2  ;;  %v3744_v48 = vpop.eup %3743 }
 0x94c   :  { %v1925_v17 = vadd.f32 1.0, %v3744_v48 }
 0x94d   :  { %3745 = vrcp.f32 %v1918_v7 }
 0x94e   :  { %3747 = vrcp.f32 %v1925_v17 }
 0x957   :  { %v3746_v4 = vpop.eup %3745 }
 0x958   :  { %v1928_v8 = vmul.f32 %v3746_v4, %v1906_v39  ;;  %v3748_v19 = vpop.eup %3747 }
 0x959   :  { %v1931_v7 = vsub.f32 1.0, %v3748_v19  ;;  %v1933_v18 = vmul.f32 %v3748_v19, %v4947_v14 }
 0x95a   :  { %v1929_v12 = vadd.f32 %v1928_v8, %v1594_v22 }
 0x95c   :  { %3749 = vtanh.f32 %v1929_v12 }
 0x966   :  { %v3750_v57 = vpop.eup %3749 }
 0x967   :  { %v1932_v5 = vmul.f32 %v3750_v57, %v1931_v7 }
 0x969   :  { %v5038_v9 = vadd.f32 %v1933_v18, %v1932_v5 }
 0x96b   :  { %v1935_v56 = vpack.c.bf16 %v5038_v9, %v5038_v9 }
 0x96d   :  { %1969 = vmatmul.mubr.bf16.vlgmr.msra.gmra.mrb[68].mxu0 %v1935_v56  ;;  %3404 = vmatmul.mubr.bf16.vlgmr.msra.gmra.mrb[52].mxu1 %v1935_v56  ;;  %v1597_v56 = vadd.f32 %v4923_v49, %v5032_v58 }
 0x96e   :  { %2043 = vmatpush1.bf16.msra.mxu0 %v4758_v55  ;;  %3408 = vmatpush3.bf16.msra.mxu1 %v4835_v1 }
 0x96f   :  { %2044 = vmatprep.subr.bf16.mxu0 %v4765_v61  ;;  %3409 = vmatprep.subr.bf16.mxu1 %v5469_v45 }
 0x970   :  { %2074 = vmatprep.mubr.bf16.mxu0 %v5470_v62  ;;  %3423 = vmatprep.mubr.msk.bf16.mxu1 %vm3895_vm1, %v5469_v45 }
 0x972   :  { %2045 = vmatpush1.bf16.msra.mxu0 %v4770_v46  ;;  %3410 = vmatpush3.bf16.msra.mxu1 %v4853_v41 }
 0x973   :  { %2046 = vmatprep.subr.bf16.mxu0 %v4777_v3  ;;  %3411 = vmatprep.subr.bf16.mxu1 %v5469_v45 }
 0x976   :  { %2047 = vmatpush1.bf16.msra.mxu0 %v4782_v54  ;;  %3412 = vmatpush3.bf16.msra.mxu1 %v4864_v52 }
 0x977   :  { %2048 = vmatprep.subr.bf16.mxu0 %v4789_v11  ;;  %3413 = vmatprep.subr.bf16.mxu1 %v5469_v45 }
 0x97a   :  { %2049 = vmatpush1.bf16.msra.mxu0 %v4794_v47  ;;  %3414 = vmatpush3.bf16.msra.mxu1 %v4870_v0 }
 0x97b   :  { %2050 = vmatprep.subr.bf16.mxu0 %v4801_v43  ;;  %3415 = vmatprep.subr.bf16.mxu1 %v5469_v45 }
 0x97e   :  { %2051 = vmatpush1.bf16.msra.mxu0 %v4806_v16  ;;  %3416 = vmatpush3.bf16.msra.mxu1 %v4877_v25 }
 0x97f   :  { %2052 = vmatprep.subr.bf16.mxu0 %v4813_v32  ;;  %3417 = vmatprep.subr.bf16.mxu1 %v5469_v45 }
 0x982   :  { %2053 = vmatpush1.bf16.msra.mxu0 %v4818_v63  ;;  %3418 = vmatpush3.bf16.msra.mxu1 %v4884_v27 }
 0x983   :  { %2054 = vmatprep.subr.bf16.mxu0 %v4825_v29  ;;  %3419 = vmatprep.subr.bf16.mxu1 %v5469_v45 }
 0x986   :  { %2055 = vmatpush1.bf16.msra.mxu0 %v4830_v53  ;;  %3420 = vmatpush3.bf16.msra.mxu1 %v4891_v30 }
 0x987   :  { %2056 = vmatprep.subr.bf16.mxu0 %v4840_v40  ;;  %3421 = vmatprep.subr.bf16.mxu1 %v5469_v45 }
 0x98a   :  { %2057 = vmatpush1.bf16.msra.mxu0 %v4848_v37  ;;  %3422 = vmatpush3.bf16.msra.mxu1 %v4898_v33 }
 0x98b   :  { %2148 = vmatprep.subr.bf16.mxu0 %v4753_v50  ;;  %3427 = vmatprep.subr.bf16.mxu1 %v5469_v45 }
 0xa40   :  { %v1970_v13 = vpop.f32.mrb[68].mxu0  ;;  %v2011_v14 = vpop.f32.mrb[52].mxu1 }
 0xa41   :  { %v1971_v24 = vadd.f32 %v1970_v13, %v5014_v60  ;;  %v1972_v15 = vpop.f32.mrb[69].mxu0  ;;  %v3405_v28 = vpop.f32.mrb[53].mxu1  ;;  %v2012_v18 = vadd.f32 %v2011_v14, %v5029_v59  ;;  %v1531_v14 = vadd.f32 %v4925_v26, %v5011_v6 }
 0xa42   :  { %v1973_v2 = vadd.f32 %v1972_v15, %v5020_v23  ;;  %v1974_v48 = vpop.f32.mrb[70].mxu0  ;;  %v2014_v17 = vpop.f32.mrb[54].mxu1 }
 0xa43   :  { %v2020_v39 = vadd.f32 %v1971_v24, %v1525_v20  ;;  %v1975_v4 = vpop.f32.mrb[71].mxu0  ;;  %v3406_v22 = vpop.f32.mrb[55].mxu1 }
 0xa44   :  { %v2027_v8 = vadd.f32 %v1973_v2, %v1527_v36 }
 0xa45   :  { %v2980_v12 = vmul.f32 -1.442695, %v2020_v39 }
 0xa46   :  { %v2981_v19 = vmul.f32 -1.442695, %v2027_v8  ;;  %v1533_v8 = vadd.f32 %v4927_v31, %v5017_v38 }
 0xa47   :  { %3751 = vpow2.f32 %v2980_v12 }
 0xa48   :  { %3753 = vpow2.f32 %v2981_v19 }
 0xa51   :  { %v3752_v10 = vpop.eup %3751 }
 0xa52   :  { %v2024_v7 = vadd.f32 1.0, %v3752_v10  ;;  %v3754_v57 = vpop.eup %3753 }
 0xa53   :  { %v2031_v5 = vadd.f32 1.0, %v3754_v57 }
 0xa54   :  { %3755 = vrcp.f32 %v2024_v7 }
 0xa55   :  { %3757 = vrcp.f32 %v2031_v5 }
 0xa5e   :  { %v3756_v44 = vpop.eup %3755 }
 0xa5f   :  { %v2034_v13 = vmul.f32 %v3756_v44, %v2012_v18  ;;  %v3758_v24 = vpop.eup %3757 }
 0xa60   :  { %v2037_v15 = vsub.f32 1.0, %v3758_v24  ;;  %v2039_v2 = vmul.f32 %v3758_v24, %v5038_v9 }
 0xa61   :  { %v2035_v20 = vadd.f32 %v2034_v13, %v1597_v56 }
 0xa63   :  { %3759 = vtanh.f32 %v2035_v20 }
 0xa6d   :  { %v3760_v28 = vpop.eup %3759 }
 0xa6e   :  { %v2038_v36 = vmul.f32 %v3760_v28, %v2037_v15  ;;  %v1602_v28 = vadd.f32 %v4910_v51, %v5032_v58 }
 0xa70   :  { %v5087_v48 = vadd.f32 %v2039_v2, %v2038_v36 }
 0xa72   :  { %v2041_v17 = vpack.c.bf16 %v5087_v48, %v5087_v48 }
 0xa74   :  { %2075 = vmatmul.mubr.bf16.vlgmr.msra.gmra.mrb[72].mxu0 %v2041_v17  ;;  %3424 = vmatmul.mubr.bf16.vlgmr.msra.gmra.mrb[56].mxu1 %v2041_v17 }
 0xa75   :  { %2149 = vmatpush1.bf16.msra.mxu0 %v4758_v55  ;;  %3428 = vmatpush3.bf16.msra.mxu1 %v4835_v1 }
 0xa76   :  { %2150 = vmatprep.subr.bf16.mxu0 %v4765_v61  ;;  %3429 = vmatprep.subr.bf16.mxu1 %v5469_v45 }
 0xa77   :  { %2180 = vmatprep.mubr.bf16.mxu0 %v5470_v62  ;;  %3443 = vmatprep.mubr.msk.bf16.mxu1 %vm3895_vm1, %v5469_v45 }
 0xa79   :  { %2151 = vmatpush1.bf16.msra.mxu0 %v4770_v46  ;;  %3430 = vmatpush3.bf16.msra.mxu1 %v4853_v41 }
 0xa7a   :  { %2152 = vmatprep.subr.bf16.mxu0 %v4777_v3  ;;  %3431 = vmatprep.subr.bf16.mxu1 %v5469_v45 }
 0xa7d   :  { %2153 = vmatpush1.bf16.msra.mxu0 %v4782_v54  ;;  %3432 = vmatpush3.bf16.msra.mxu1 %v4864_v52 }
 0xa7e   :  { %2154 = vmatprep.subr.bf16.mxu0 %v4789_v11  ;;  %3433 = vmatprep.subr.bf16.mxu1 %v5469_v45 }
 0xa81   :  { %2155 = vmatpush1.bf16.msra.mxu0 %v4794_v47  ;;  %3434 = vmatpush3.bf16.msra.mxu1 %v4870_v0 }
 0xa82   :  { %2156 = vmatprep.subr.bf16.mxu0 %v4801_v43  ;;  %3435 = vmatprep.subr.bf16.mxu1 %v5469_v45 }
 0xa85   :  { %2157 = vmatpush1.bf16.msra.mxu0 %v4806_v16  ;;  %3436 = vmatpush3.bf16.msra.mxu1 %v4877_v25 }
 0xa86   :  { %2158 = vmatprep.subr.bf16.mxu0 %v4813_v32  ;;  %3437 = vmatprep.subr.bf16.mxu1 %v5469_v45 }
 0xa89   :  { %2159 = vmatpush1.bf16.msra.mxu0 %v4818_v63  ;;  %3438 = vmatpush3.bf16.msra.mxu1 %v4884_v27 }
 0xa8a   :  { %2160 = vmatprep.subr.bf16.mxu0 %v4825_v29  ;;  %3439 = vmatprep.subr.bf16.mxu1 %v5469_v45 }
 0xa8d   :  { %2161 = vmatpush1.bf16.msra.mxu0 %v4830_v53  ;;  %3440 = vmatpush3.bf16.msra.mxu1 %v4891_v30 }
 0xa8e   :  { %2162 = vmatprep.subr.bf16.mxu0 %v4840_v40  ;;  %3441 = vmatprep.subr.bf16.mxu1 %v5469_v45 }
 0xa91   :  { %2163 = vmatpush1.bf16.msra.mxu0 %v4848_v37  ;;  %3442 = vmatpush3.bf16.msra.mxu1 %v4898_v33 }
 0xa92   :  { %2254 = vmatprep.subr.bf16.mxu0 %v4753_v50  ;;  %3447 = vmatprep.subr.bf16.mxu1 %v5469_v45 }
 0xb47   :  { %v2076_v49 = vpop.f32.mrb[72].mxu0  ;;  %v2117_v9 = vpop.f32.mrb[56].mxu1 }
 0xb48   :  { %v2077_v39 = vadd.f32 %v2076_v49, %v5014_v60  ;;  %v2078_v4 = vpop.f32.mrb[73].mxu0  ;;  %v3425_v22 = vpop.f32.mrb[57].mxu1  ;;  %v2118_v15 = vadd.f32 %v2117_v9, %v5029_v59  ;;  %v1535_v9 = vadd.f32 %v4929_v34, %v5011_v6 }
 0xb49   :  { %v2079_v12 = vadd.f32 %v2078_v4, %v5020_v23  ;;  %v2080_v19 = vpop.f32.mrb[74].mxu0  ;;  %v2120_v10 = vpop.f32.mrb[58].mxu1 }
 0xb4a   :  { %v2126_v7 = vadd.f32 %v2077_v39, %v1531_v14  ;;  %v2081_v57 = vpop.f32.mrb[75].mxu0  ;;  %v3426_v5 = vpop.f32.mrb[59].mxu1 }
 0xb4b   :  { %v2133_v18 = vadd.f32 %v2079_v12, %v1533_v8 }
 0xb4c   :  { %v2982_v44 = vmul.f32 -1.442695, %v2126_v7  ;;  %v1537_v7 = vadd.f32 %v4931_v35, %v5017_v38 }
 0xb4d   :  { %v2983_v56 = vmul.f32 -1.442695, %v2133_v18 }
 0xb4e   :  { %3761 = vpow2.f32 %v2982_v44 }
 0xb4f   :  { %3763 = vpow2.f32 %v2983_v56 }
 0xb58   :  { %v3762_v26 = vpop.eup %3761 }
 0xb59   :  { %v2130_v13 = vadd.f32 1.0, %v3762_v26  ;;  %v3764_v20 = vpop.eup %3763 }
 0xb5a   :  { %v2137_v24 = vadd.f32 1.0, %v3764_v20 }
 0xb5b   :  { %3765 = vrcp.f32 %v2130_v13 }
 0xb5c   :  { %3767 = vrcp.f32 %v2137_v24 }
 0xb65   :  { %v3766_v31 = vpop.eup %3765 }
 0xb66   :  { %v2140_v36 = vmul.f32 %v3766_v31, %v2118_v15  ;;  %v3768_v17 = vpop.eup %3767 }
 0xb67   :  { %v2143_v49 = vsub.f32 1.0, %v3768_v17  ;;  %v2145_v4 = vmul.f32 %v3768_v17, %v5087_v48 }
 0xb68   :  { %v2141_v2 = vadd.f32 %v2140_v36, %v1602_v28 }
 0xb6a   :  { %3769 = vtanh.f32 %v2141_v2  ;;  %v1605_v2 = vadd.f32 %v4919_v21, %v5032_v58 }
 0xb74   :  { %v3770_v14 = vpop.eup %3769 }
 0xb75   :  { %v2144_v39 = vmul.f32 %v3770_v14, %v2143_v49 }
 0xb77   :  { %v5136_v22 = vadd.f32 %v2145_v4, %v2144_v39 }
 0xb79   :  { %v2147_v8 = vpack.c.bf16 %v5136_v22, %v5136_v22 }
 0xb7b   :  { %2181 = vmatmul.mubr.bf16.vlgmr.msra.gmra.mrb[76].mxu0 %v2147_v8  ;;  %3444 = vmatmul.mubr.bf16.vlgmr.msra.gmra.mrb[60].mxu1 %v2147_v8 }
 0xb7c   :  { %2255 = vmatpush1.bf16.msra.mxu0 %v4758_v55  ;;  %3448 = vmatpush3.bf16.msra.mxu1 %v4835_v1 }
 0xb7d   :  { %2256 = vmatprep.subr.bf16.mxu0 %v4765_v61  ;;  %3449 = vmatprep.subr.bf16.mxu1 %v5469_v45 }
 0xb7e   :  { %2286 = vmatprep.mubr.bf16.mxu0 %v5470_v62  ;;  %3463 = vmatprep.mubr.msk.bf16.mxu1 %vm3895_vm1, %v5469_v45 }
 0xb80   :  { %2257 = vmatpush1.bf16.msra.mxu0 %v4770_v46  ;;  %3450 = vmatpush3.bf16.msra.mxu1 %v4853_v41 }
 0xb81   :  { %2258 = vmatprep.subr.bf16.mxu0 %v4777_v3  ;;  %3451 = vmatprep.subr.bf16.mxu1 %v5469_v45 }
 0xb84   :  { %2259 = vmatpush1.bf16.msra.mxu0 %v4782_v54  ;;  %3452 = vmatpush3.bf16.msra.mxu1 %v4864_v52 }
 0xb85   :  { %2260 = vmatprep.subr.bf16.mxu0 %v4789_v11  ;;  %3453 = vmatprep.subr.bf16.mxu1 %v5469_v45 }
 0xb88   :  { %2261 = vmatpush1.bf16.msra.mxu0 %v4794_v47  ;;  %3454 = vmatpush3.bf16.msra.mxu1 %v4870_v0 }
 0xb89   :  { %2262 = vmatprep.subr.bf16.mxu0 %v4801_v43  ;;  %3455 = vmatprep.subr.bf16.mxu1 %v5469_v45 }
 0xb8c   :  { %2263 = vmatpush1.bf16.msra.mxu0 %v4806_v16  ;;  %3456 = vmatpush3.bf16.msra.mxu1 %v4877_v25 }
 0xb8d   :  { %2264 = vmatprep.subr.bf16.mxu0 %v4813_v32  ;;  %3457 = vmatprep.subr.bf16.mxu1 %v5469_v45 }
 0xb90   :  { %2265 = vmatpush1.bf16.msra.mxu0 %v4818_v63  ;;  %3458 = vmatpush3.bf16.msra.mxu1 %v4884_v27 }
 0xb91   :  { %2266 = vmatprep.subr.bf16.mxu0 %v4825_v29  ;;  %3459 = vmatprep.subr.bf16.mxu1 %v5469_v45 }
 0xb94   :  { %2267 = vmatpush1.bf16.msra.mxu0 %v4830_v53  ;;  %3460 = vmatpush3.bf16.msra.mxu1 %v4891_v30 }
 0xb95   :  { %2268 = vmatprep.subr.bf16.mxu0 %v4840_v40  ;;  %3461 = vmatprep.subr.bf16.mxu1 %v5469_v45 }
 0xb98   :  { %2269 = vmatpush1.bf16.msra.mxu0 %v4848_v37  ;;  %3462 = vmatpush3.bf16.msra.mxu1 %v4898_v33 }
 0xb99   :  { %2360 = vmatprep.subr.bf16.mxu0 %v4753_v50  ;;  %3467 = vmatprep.subr.bf16.mxu1 %v5469_v45 }
 0xc4e   :  { %v2182_v51 = vpop.f32.mrb[76].mxu0  ;;  %v2223_v48 = vpop.f32.mrb[60].mxu1 }
 0xc4f   :  { %v2183_v12 = vadd.f32 %v2182_v51, %v5014_v60  ;;  %v2184_v19 = vpop.f32.mrb[77].mxu0  ;;  %v3445_v10 = vpop.f32.mrb[61].mxu1  ;;  %v2224_v36 = vadd.f32 %v2223_v48, %v5029_v59  ;;  %v1541_v48 = vadd.f32 %v4934_v42, %v5011_v6 }
 0xc50   :  { %v2185_v57 = vadd.f32 %v2184_v19, %v5020_v23  ;;  %v2186_v5 = vpop.f32.mrb[78].mxu0  ;;  %v2226_v18 = vpop.f32.mrb[62].mxu1 }
 0xc51   :  { %v2232_v44 = vadd.f32 %v2183_v12, %v1535_v9  ;;  %v2187_v56 = vpop.f32.mrb[79].mxu0  ;;  %v3446_v26 = vpop.f32.mrb[63].mxu1 }
 0xc52   :  { %v2239_v13 = vadd.f32 %v2185_v57, %v1537_v7  ;;  %v5493_v57 = vld [vmem:[#allocation9_spill] sm:$0xff] }
 0xc53   :  { %v2984_v20 = vmul.f32 -1.442695, %v2232_v44  ;;  %v1543_v5 = vadd.f32 %v5493_v57, %v5017_v38 }
 0xc54   :  { %v2985_v24 = vmul.f32 -1.442695, %v2239_v13 }
 0xc55   :  { %3771 = vpow2.f32 %v2984_v20 }
 0xc56   :  { %3773 = vpow2.f32 %v2985_v24 }
 0xc5f   :  { %v3772_v34 = vpop.eup %3771 }
 0xc60   :  { %v2236_v15 = vadd.f32 1.0, %v3772_v34  ;;  %v3774_v31 = vpop.eup %3773 }
 0xc61   :  { %v2243_v28 = vadd.f32 1.0, %v3774_v31 }
 0xc62   :  { %3775 = vrcp.f32 %v2236_v15 }
 0xc63   :  { %3777 = vrcp.f32 %v2243_v28 }
 0xc6c   :  { %v3776_v35 = vpop.eup %3775 }
 0xc6d   :  { %v2246_v17 = vmul.f32 %v3776_v35, %v2224_v36  ;;  %v3778_v14 = vpop.eup %3777 }
 0xc6e   :  { %v2249_v39 = vsub.f32 1.0, %v3778_v14  ;;  %v2251_v51 = vmul.f32 %v3778_v14, %v5136_v22 }
 0xc6f   :  { %v2247_v49 = vadd.f32 %v2246_v17, %v1605_v2  ;;  %v5494_v2 = vld [vmem:[#allocation16_spill] sm:$0xff] }
 0xc70   :  { %v1610_v17 = vadd.f32 %v5494_v2, %v5032_v58  ;;  %v3856_v2 = vld [vmem:[%s5443_s4 + $0x110] ss:$12 sps:$4 sm:$0xff]  }
 0xc71   :  { %3779 = vtanh.f32 %v2247_v49 }
 0xc7b   :  { %v3780_v4 = vpop.eup %3779 }
 0xc7c   :  { %v2250_v8 = vmul.f32 %v3780_v4, %v2249_v39 }
 0xc7e   :  { %v5185_v9 = vadd.f32 %v2251_v51, %v2250_v8 }
 0xc80   :  { %v2253_v12 = vpack.c.bf16 %v5185_v9, %v5185_v9 }
 0xc82   :  { %2287 = vmatmul.mubr.bf16.vlgmr.msra.gmra.mrb[80].mxu0 %v2253_v12  ;;  %3464 = vmatmul.mubr.bf16.vlgmr.msra.gmra.mrb[64].mxu1 %v2253_v12 }
 0xc83   :  { %2361 = vmatpush1.bf16.msra.mxu0 %v4758_v55  ;;  %3468 = vmatpush3.bf16.msra.mxu1 %v4835_v1 }
 0xc84   :  { %2362 = vmatprep.subr.bf16.mxu0 %v4765_v61  ;;  %3469 = vmatprep.subr.bf16.mxu1 %v5469_v45 }
 0xc85   :  { %2392 = vmatprep.mubr.bf16.mxu0 %v5470_v62  ;;  %3483 = vmatprep.mubr.msk.bf16.mxu1 %vm3895_vm1, %v5469_v45 }
 0xc87   :  { %2363 = vmatpush1.bf16.msra.mxu0 %v4770_v46  ;;  %3470 = vmatpush3.bf16.msra.mxu1 %v4853_v41 }
 0xc88   :  { %2364 = vmatprep.subr.bf16.mxu0 %v4777_v3  ;;  %3471 = vmatprep.subr.bf16.mxu1 %v5469_v45 }
 0xc8b   :  { %2365 = vmatpush1.bf16.msra.mxu0 %v4782_v54  ;;  %3472 = vmatpush3.bf16.msra.mxu1 %v4864_v52 }
 0xc8c   :  { %2366 = vmatprep.subr.bf16.mxu0 %v4789_v11  ;;  %3473 = vmatprep.subr.bf16.mxu1 %v5469_v45 }
 0xc8f   :  { %2367 = vmatpush1.bf16.msra.mxu0 %v4794_v47  ;;  %3474 = vmatpush3.bf16.msra.mxu1 %v4870_v0 }
 0xc90   :  { %2368 = vmatprep.subr.bf16.mxu0 %v4801_v43  ;;  %3475 = vmatprep.subr.bf16.mxu1 %v5469_v45 }
 0xc93   :  { %2369 = vmatpush1.bf16.msra.mxu0 %v4806_v16  ;;  %3476 = vmatpush3.bf16.msra.mxu1 %v4877_v25 }
 0xc94   :  { %2370 = vmatprep.subr.bf16.mxu0 %v4813_v32  ;;  %3477 = vmatprep.subr.bf16.mxu1 %v5469_v45 }
 0xc97   :  { %2371 = vmatpush1.bf16.msra.mxu0 %v4818_v63  ;;  %3478 = vmatpush3.bf16.msra.mxu1 %v4884_v27 }
 0xc98   :  { %2372 = vmatprep.subr.bf16.mxu0 %v4825_v29  ;;  %3479 = vmatprep.subr.bf16.mxu1 %v5469_v45 }
 0xc9b   :  { %2373 = vmatpush1.bf16.msra.mxu0 %v4830_v53  ;;  %3480 = vmatpush3.bf16.msra.mxu1 %v4891_v30 }
 0xc9c   :  { %2374 = vmatprep.subr.bf16.mxu0 %v4840_v40  ;;  %3481 = vmatprep.subr.bf16.mxu1 %v5469_v45 }
 0xc9f   :  { %2375 = vmatpush1.bf16.msra.mxu0 %v4848_v37  ;;  %3482 = vmatpush3.bf16.msra.mxu1 %v4898_v33 }
 0xca0   :  { %2466 = vmatprep.subr.bf16.mxu0 %v4753_v50  ;;  %3487 = vmatprep.subr.bf16.mxu1 %v5469_v45 }
 0xd55   :  { %v2288_v21 = vpop.f32.mrb[80].mxu0  ;;  %v2329_v22 = vpop.f32.mrb[64].mxu1 }
 0xd56   :  { %v2289_v19 = vadd.f32 %v2288_v21, %v5014_v60  ;;  %v2290_v10 = vpop.f32.mrb[81].mxu0  ;;  %v3465_v7 = vpop.f32.mrb[65].mxu1  ;;  %v2330_v36 = vadd.f32 %v2329_v22, %v5029_v59 }
 0xd57   :  { %v2291_v18 = vadd.f32 %v2290_v10, %v5020_v23  ;;  %v2292_v44 = vpop.f32.mrb[82].mxu0  ;;  %v2332_v56 = vpop.f32.mrb[66].mxu1 }
 0xd58   :  { %v2338_v26 = vadd.f32 %v2289_v19, %v1541_v48  ;;  %v2293_v50 = vpop.f32.mrb[83].mxu0  ;;  %v3466_v13 = vpop.f32.mrb[67].mxu1  ;;  %v5497_v19 = vld [vmem:[#allocation19_spill] sm:$0xff] }
 0xd59   :  { %v2345_v20 = vadd.f32 %v2291_v18, %v1543_v5  ;;  %v1613_v10 = vadd.f32 %v5497_v19, %v5032_v58 }
 0xd5a   :  { %v2986_v24 = vmul.f32 -1.442695, %v2338_v26 }
 0xd5b   :  { %v2987_v34 = vmul.f32 -1.442695, %v2345_v20  ;;  %v3846_v20 = vld [vmem:[%s5443_s4 + $0xc0] ss:$12 sps:$4 sm:$0xff]  }
 0xd5c   :  { %3781 = vpow2.f32 %v2986_v24  ;;  %v3847_v24 = vld [vmem:[%s5443_s4 + $0xc8] ss:$12 sps:$4 sm:$0xff]  }
 0xd5d   :  { %3783 = vpow2.f32 %v2987_v34  ;;  %v3848_v34 = vld [vmem:[%s5443_s4 + $0xdc] ss:$12 sps:$4 sm:$0xff]  }
 0xd66   :  { %v3782_v42 = vpop.eup %3781 }
 0xd67   :  { %v2342_v15 = vadd.f32 1.0, %v3782_v42  ;;  %v3784_v31 = vpop.eup %3783  ;;  %v3849_v42 = vld [vmem:[%s5443_s4 + $0xd8] ss:$12 sps:$4 sm:$0xff]  }
 0xd68   :  { %v2349_v28 = vadd.f32 1.0, %v3784_v31  ;;  %v3851_v31 = vld [vmem:[%s5443_s4 + $0xf4] ss:$12 sps:$4 sm:$0xff]  }
 0xd69   :  { %3785 = vrcp.f32 %v2342_v15  ;;  %v3850_v15 = vld [vmem:[%s5443_s4 + $0xe0] ss:$12 sps:$4 sm:$0xff]  }
 0xd6a   :  { %3787 = vrcp.f32 %v2349_v28  ;;  %v3853_v28 = vld [vmem:[%s5443_s4 + $0xf8] ss:$12 sps:$4 sm:$0xff]  }
 0xd73   :  { %v3786_v35 = vpop.eup %3785 }
 0xd74   :  { %v2352_v49 = vmul.f32 %v3786_v35, %v2330_v36  ;;  %v3788_v39 = vpop.eup %3787  ;;  %v3854_v36 = vld [vmem:[%s5443_s4 + $0x10c] ss:$12 sps:$4 sm:$0xff]   ;;  %v3855_v35 = vld [vmem:[%s5443_s4 + $0x108] ss:$12 sps:$4 sm:$0xff]  }
 0xd75   :  { %v2355_v4 = vsub.f32 1.0, %v3788_v39  ;;  %v2357_v12 = vmul.f32 %v3788_v39, %v5185_v9  ;;  %v3860_v39 = vld [vmem:[%s5443_s4 + $0x13c] ss:$12 sps:$4 sm:$0xff]  }
 0xd76   :  { %v2353_v14 = vadd.f32 %v2352_v49, %v1610_v17  ;;  %v3857_v17 = vld [vmem:[%s5443_s4 + $0x124] ss:$12 sps:$4 sm:$0xff]   ;;  %v3858_v49 = vld [vmem:[%s5443_s4 + $0x120] ss:$12 sps:$4 sm:$0xff]  }
 0xd78   :  { %3789 = vtanh.f32 %v2353_v14  ;;  %v3859_v14 = vld [vmem:[%s5443_s4 + $0x128] ss:$12 sps:$4 sm:$0xff]  }
 0xd82   :  { %v3790_v8 = vpop.eup %3789 }
 0xd83   :  { %v2356_v51 = vmul.f32 %v3790_v8, %v2355_v4  ;;  %v3861_v4 = vld [vmem:[%s5443_s4 + $0x138] ss:$12 sps:$4 sm:$0xff]   ;;  %v3862_v8 = vld [vmem:[%s5443_s4 + $0x140] ss:$12 sps:$4 sm:$0xff]  }
 0xd85   :  { %v5234_v21 = vadd.f32 %v2357_v12, %v2356_v51  ;;  %v3863_v51 = vld [vmem:[%s5443_s4 + $0x154] ss:$12 sps:$4 sm:$0xff]   ;;  %v3864_v12 = vld [vmem:[%s5443_s4 + $0x150] ss:$12 sps:$4 sm:$0xff]  }
 0xd87   :  { %v2359_v48 = vpack.c.bf16 %v5234_v21, %v5234_v21 }
 0xd89   :  { %2393 = vmatmul.mubr.bf16.vlgmr.msra.gmra.mrb[84].mxu0 %v2359_v48  ;;  %3484 = vmatmul.mubr.bf16.vlgmr.msra.gmra.mrb[68].mxu1 %v2359_v48  ;;  %v3866_v48 = vld [vmem:[%s5443_s4 + $0x16c] ss:$12 sps:$4 sm:$0xff]  }
 0xd8a   :  { %2467 = vmatpush1.bf16.msra.mxu0 %v4758_v55  ;;  %3488 = vmatpush3.bf16.msra.mxu1 %v4835_v1  ;;  %v3845_v55 = vld [vmem:[%s5443_s4 + $0xc4] ss:$12 sps:$4 sm:$0xff]  }
 0xd8b   :  { %2468 = vmatprep.subr.bf16.mxu0 %v4765_v61  ;;  %3489 = vmatprep.subr.bf16.mxu1 %v5469_v45 }
 0xd8c   :  { %2498 = vmatprep.mubr.bf16.mxu0 %v5470_v62  ;;  %3503 = vmatprep.mubr.msk.bf16.mxu1 %vm3895_vm1, %v5469_v45 }
 0xd8e   :  { %2469 = vmatpush1.bf16.msra.mxu0 %v4770_v46  ;;  %3490 = vmatpush3.bf16.msra.mxu1 %v4853_v41 }
 0xd8f   :  { %2470 = vmatprep.subr.bf16.mxu0 %v4777_v3  ;;  %3491 = vmatprep.subr.bf16.mxu1 %v5469_v45  ;;  %v5495_v3 = vld [vmem:[#allocation10_spill] sm:$0xff] }
 0xd92   :  { %2471 = vmatpush1.bf16.msra.mxu0 %v4782_v54  ;;  %3492 = vmatpush3.bf16.msra.mxu1 %v4864_v52  ;;  %v1545_v54 = vadd.f32 %v5495_v3, %v5011_v6 }
 0xd93   :  { %2472 = vmatprep.subr.bf16.mxu0 %v4789_v11  ;;  %3493 = vmatprep.subr.bf16.mxu1 %v5469_v45 }
 0xd96   :  { %2473 = vmatpush1.bf16.msra.mxu0 %v4794_v47  ;;  %3494 = vmatpush3.bf16.msra.mxu1 %v4870_v0 }
 0xd97   :  { %2474 = vmatprep.subr.bf16.mxu0 %v4801_v43  ;;  %3495 = vmatprep.subr.bf16.mxu1 %v5469_v45 }
 0xd9a   :  { %2475 = vmatpush1.bf16.msra.mxu0 %v4806_v16  ;;  %3496 = vmatpush3.bf16.msra.mxu1 %v4877_v25  ;;  %v5496_v16 = vld [vmem:[#allocation14_spill] sm:$0xff] }
 0xd9b   :  { %2476 = vmatprep.subr.bf16.mxu0 %v4813_v32  ;;  %3497 = vmatprep.subr.bf16.mxu1 %v5469_v45  ;;  %v1547_v32 = vadd.f32 %v5496_v16, %v5017_v38 }
 0xd9e   :  { %2477 = vmatpush1.bf16.msra.mxu0 %v4818_v63  ;;  %3498 = vmatpush3.bf16.msra.mxu1 %v4884_v27 }
 0xd9f   :  { %2478 = vmatprep.subr.bf16.mxu0 %v4825_v29  ;;  %3499 = vmatprep.subr.bf16.mxu1 %v5469_v45 }
 0xda2   :  { %2479 = vmatpush1.bf16.msra.mxu0 %v4830_v53  ;;  %3500 = vmatpush3.bf16.msra.mxu1 %v4891_v30 }
 0xda3   :  { %2480 = vmatprep.subr.bf16.mxu0 %v4840_v40  ;;  %3501 = vmatprep.subr.bf16.mxu1 %v5469_v45 }
 0xda6   :  { %2481 = vmatpush1.bf16.msra.mxu0 %v4848_v37  ;;  %3502 = vmatpush3.bf16.msra.mxu1 %v4898_v33 }
 0xda7   :  { %2572 = vmatprep.subr.bf16.mxu0 %v3845_v55  ;;  %3507 = vmatprep.subr.bf16.mxu1 %v5469_v45  ;;  %v3867_v55 = vld [vmem:[%s5443_s4 + $0x168] ss:$12 sps:$4 sm:$0xff]  }
 0xe5c   :  { %v2394_v61 = vpop.f32.mrb[84].mxu0  ;;  %v2435_v46 = vpop.f32.mrb[68].mxu1 }
 0xe5d   :  { %v2395_v11 = vadd.f32 %v2394_v61, %v5014_v60  ;;  %v2396_v47 = vpop.f32.mrb[85].mxu0  ;;  %v3485_v43 = vpop.f32.mrb[69].mxu1  ;;  %v2436_v9 = vadd.f32 %v2435_v46, %v5029_v59  ;;  %v3868_v61 = vld [vmem:[%s5443_s4 + $0x170] ss:$12 sps:$4 sm:$0xff]  }
 0xe5e   :  { %v2397_v63 = vadd.f32 %v2396_v47, %v5020_v23  ;;  %v2398_v29 = vpop.f32.mrb[86].mxu0  ;;  %v2438_v53 = vpop.f32.mrb[70].mxu1 }
 0xe5f   :  { %v2444_v1 = vadd.f32 %v2395_v11, %v1545_v54  ;;  %v2399_v40 = vpop.f32.mrb[87].mxu0  ;;  %v3486_v37 = vpop.f32.mrb[71].mxu1  ;;  %v5498_v54 = vld [vmem:[#allocation13_spill] sm:$0xff] }
 0xe60   :  { %v2451_v41 = vadd.f32 %v2397_v63, %v1547_v32  ;;  %v1551_v11 = vadd.f32 %v5498_v54, %v5011_v6  ;;  %v5499_v32 = vld [vmem:[#allocation11_spill] sm:$0xff] }
 0xe61   :  { %v2988_v52 = vmul.f32 -1.442695, %v2444_v1  ;;  %v1553_v63 = vadd.f32 %v5499_v32, %v5017_v38 }
 0xe62   :  { %v2989_v0 = vmul.f32 -1.442695, %v2451_v41 }
 0xe63   :  { %3791 = vpow2.f32 %v2988_v52 }
 0xe64   :  { %3793 = vpow2.f32 %v2989_v0 }
 0xe6d   :  { %v3792_v25 = vpop.eup %3791 }
 0xe6e   :  { %v2448_v27 = vadd.f32 1.0, %v3792_v25  ;;  %v3794_v30 = vpop.eup %3793 }
 0xe6f   :  { %v2455_v33 = vadd.f32 1.0, %v3794_v30 }
 0xe70   :  { %3795 = vrcp.f32 %v2448_v27 }
 0xe71   :  { %3797 = vrcp.f32 %v2455_v33 }
 0xe7a   :  { %v3796_v22 = vpop.eup %3795 }
 0xe7b   :  { %v2458_v7 = vmul.f32 %v3796_v22, %v2436_v9  ;;  %v3798_v5 = vpop.eup %3797 }
 0xe7c   :  { %v2461_v18 = vsub.f32 1.0, %v3798_v5  ;;  %v2463_v26 = vmul.f32 %v3798_v5, %v5234_v21  ;;  %v3865_v21 = vld [vmem:[%s5443_s4 + $0x158] ss:$12 sps:$4 sm:$0xff]  }
 0xe7d   :  { %v2459_v57 = vadd.f32 %v2458_v7, %v1613_v10  ;;  %v5500_v10 = vld [vmem:[#allocation15_spill] sm:$0xff] }
 0xe7e   :  { %v1618_v7 = vadd.f32 %v5500_v10, %v5032_v58 }
 0xe7f   :  { %3799 = vtanh.f32 %v2459_v57 }
 0xe89   :  { %v3800_v44 = vpop.eup %3799 }
 0xe8a   :  { %v2462_v56 = vmul.f32 %v3800_v44, %v2461_v18 }
 0xe8c   :  { %v5285_v50 = vadd.f32 %v2463_v26, %v2462_v56 }
 0xe8e   :  { %v2465_v13 = vpack.c.bf16 %v5285_v50, %v5285_v50 }
 0xe90   :  { %2499 = vmatmul.mubr.bf16.vlgmr.msra.gmra.mrb[88].mxu0 %v2465_v13  ;;  %3504 = vmatmul.mubr.bf16.vlgmr.msra.gmra.mrb[72].mxu1 %v2465_v13 }
 0xe91   :  { %2573 = vmatpush1.bf16.msra.mxu0 %v3846_v20  ;;  %3508 = vmatpush3.bf16.msra.mxu1 %v3847_v24 }
 0xe92   :  { %2574 = vmatprep.subr.bf16.mxu0 %v3848_v34  ;;  %3509 = vmatprep.subr.bf16.mxu1 %v5469_v45  ;;  %v3653_v34 = vld [vmem:[%s5446_s7] sm:$0xff]  }
 0xe93   :  { %2604 = vmatprep.mubr.bf16.mxu0 %v5470_v62  ;;  %3523 = vmatprep.mubr.msk.bf16.mxu1 %vm3895_vm1, %v5469_v45  ;;  %v3852_v62 = vld [vmem:[%s5443_s4 + $0xf0] ss:$12 sps:$4 sm:$0xff]  }
 0xe95   :  { %2575 = vmatpush1.bf16.msra.mxu0 %v3849_v42  ;;  %3510 = vmatpush3.bf16.msra.mxu1 %v3850_v15  ;;  %v3654_v42 = vld [vmem:[%s5446_s7 + $0x8] sm:$0xff]   ;;  %v3656_v15 = vld [vmem:[%s5446_s7 + $0x18] sm:$0xff]  }
 0xe96   :  { %2576 = vmatprep.subr.bf16.mxu0 %v3851_v31  ;;  %3511 = vmatprep.subr.bf16.mxu1 %v5469_v45  ;;  %v3657_v31 = vld [vmem:[%s5446_s7 + $0x20] sm:$0xff]  }
 0xe99   :  { %2577 = vmatpush1.bf16.msra.mxu0 %v3852_v62  ;;  %3512 = vmatpush3.bf16.msra.mxu1 %v3853_v28  ;;  %v3658_v62 = vld [vmem:[%s5446_s7 + $0x28] sm:$0xff]   ;;  %v3659_v28 = vld [vmem:[%s5446_s7 + $0x30] sm:$0xff]  }
 0xe9a   :  { %2578 = vmatprep.subr.bf16.mxu0 %v3854_v36  ;;  %3513 = vmatprep.subr.bf16.mxu1 %v5469_v45  ;;  %v3660_v36 = vld [vmem:[%s5446_s7 + $0x38] sm:$0xff]  }
 0xe9d   :  { %2579 = vmatpush1.bf16.msra.mxu0 %v3855_v35  ;;  %3514 = vmatpush3.bf16.msra.mxu1 %v3856_v2 }
 0xe9e   :  { %2580 = vmatprep.subr.bf16.mxu0 %v3857_v17  ;;  %3515 = vmatprep.subr.bf16.mxu1 %v5469_v45  ;;  %v5501_v17 = vld [vmem:[#allocation17_spill] sm:$0xff] }
 0xea1   :  { %2581 = vmatpush1.bf16.msra.mxu0 %v3858_v49  ;;  %3516 = vmatpush3.bf16.msra.mxu1 %v3859_v14  ;;  %v1555_v49 = vadd.f32 %v5501_v17, %v5011_v6 }
 0xea2   :  { %2582 = vmatprep.subr.bf16.mxu0 %v3860_v39  ;;  %3517 = vmatprep.subr.bf16.mxu1 %v5469_v45 }
 0xea5   :  { %2583 = vmatpush1.bf16.msra.mxu0 %v3861_v4  ;;  %3518 = vmatpush3.bf16.msra.mxu1 %v3862_v8  ;;  %v5502_v8 = vld [vmem:[#allocation18_spill] sm:$0xff] }
 0xea6   :  { %2584 = vmatprep.subr.bf16.mxu0 %v3863_v51  ;;  %3519 = vmatprep.subr.bf16.mxu1 %v5469_v45  ;;  %v1557_v51 = vadd.f32 %v5502_v8, %v5017_v38 }
 0xea9   :  { %2585 = vmatpush1.bf16.msra.mxu0 %v3864_v12  ;;  %3520 = vmatpush3.bf16.msra.mxu1 %v3865_v21 }
 0xeaa   :  { %2586 = vmatprep.subr.bf16.mxu0 %v3866_v48  ;;  %3521 = vmatprep.subr.bf16.mxu1 %v5469_v45 }
 0xead   :  { %2587 = vmatpush1.bf16.msra.mxu0 %v3867_v55  ;;  %3522 = vmatpush3.bf16.msra.mxu1 %v3868_v61 }
 0xeae   :  { %3527 = vmatprep.subr.bf16.mxu0 %v5469_v45 }
 0xf63   :  { %v2500_v46 = vpop.f32.mrb[88].mxu0  ;;  %v2541_v3 = vpop.f32.mrb[72].mxu1 }
 0xf64   :  { %v2501_v47 = vadd.f32 %v2500_v46, %v5014_v60  ;;  %v2502_v43 = vpop.f32.mrb[89].mxu0  ;;  %v3505_v16 = vpop.f32.mrb[73].mxu1  ;;  %v2542_v22 = vadd.f32 %v2541_v3, %v5029_v59 }
 0xf65   :  { %v2503_v29 = vadd.f32 %v2502_v43, %v5020_v23  ;;  %v2504_v53 = vpop.f32.mrb[90].mxu0  ;;  %v2544_v1 = vpop.f32.mrb[74].mxu1 }
 0xf66   :  { %v2550_v40 = vadd.f32 %v2501_v47, %v1551_v11  ;;  %v2505_v37 = vpop.f32.mrb[91].mxu0  ;;  %v3506_v41 = vpop.f32.mrb[75].mxu1 }
 0xf67   :  { %v2557_v52 = vadd.f32 %v2503_v29, %v1553_v63 }
 0xf68   :  { %v2990_v0 = vmul.f32 -1.442695, %v2550_v40 }
 0xf69   :  { %v2991_v25 = vmul.f32 -1.442695, %v2557_v52 }
 0xf6a   :  { %3801 = vpow2.f32 %v2990_v0 }
 0xf6b   :  { %3803 = vpow2.f32 %v2991_v25 }
 0xf74   :  { %v3802_v27 = vpop.eup %3801 }
 0xf75   :  { %v2554_v30 = vadd.f32 1.0, %v3802_v27  ;;  %v3804_v33 = vpop.eup %3803 }
 0xf76   :  { %v2561_v9 = vadd.f32 1.0, %v3804_v33 }
 0xf77   :  { %3805 = vrcp.f32 %v2554_v30 }
 0xf78   :  { %3807 = vrcp.f32 %v2561_v9 }
 0xf81   :  { %v3806_v19 = vpop.eup %3805 }
 0xf82   :  { %v2564_v57 = vmul.f32 %v3806_v19, %v2542_v22  ;;  %v3808_v18 = vpop.eup %3807 }
 0xf83   :  { %v2567_v44 = vsub.f32 1.0, %v3808_v18  ;;  %v2569_v13 = vmul.f32 %v3808_v18, %v5285_v50  ;;  %v3655_v50 = vld [vmem:[%s5446_s7 + $0x10] sm:$0xff]   ;;  %s3896_s7 = smov [#allocation4]  }
 0xf84   :  { %v2565_v5 = vadd.f32 %v2564_v57, %v1618_v7  ;;  %s2799_s26 = sshll.u32 %s3896_s7, 4  ;;  %s2800_s26 = int_to_ptr.vmem [resolvable:$true] %s2799_s26 }
 0xf85   :  { %s3869_s2 = scalar_lea.vmem %s2800_s26, 256  ;;  %p3874_p1 = scmp.lt.s32.totalorder %s2800_s26, %s2800_s26 }
 0xf86   :  { %3809 = vtanh.f32 %v2565_v5  ;;  %p3870_p0 = scmp.ne.s32.totalorder %s2800_s26, %s3869_s2  ;;  %p3875_p2 = scmp.lt.s32.totalorder %s3869_s2, %s3869_s2 }
 0xf88   :  { %p3876_p3 = por %p3875_p2, %p3874_p1 }
 0xf8a   :  { %p3877_p4 = pnand %p3876_p3, %p3870_p0 }
 0xf90   :  { %v3810_v56 = vpop.eup %3809 }
 0xf91   :  { %v2568_v26 = vmul.f32 %v3810_v56, %v2567_v44 }
 0xf93   :  { %v2570_v20 = vadd.f32 %v2569_v13, %v2568_v26 }
 0xf95   :  { %v2571_v24 = vpack.c.bf16 %v2570_v20, %v2570_v20 }
 0xf97   :  { %2605 = vmatmul.mubr.bf16.vlgmr.msra.gmra.mrb[92].mxu0 %v2571_v24  ;;  %3524 = vmatmul.mubr.bf16.vlgmr.msra.gmra.mrb[76].mxu1 %v2571_v24 }
 0xf98   :  { %3543 = vmatprep.mubr.msk.bf16.mxu0 %vm3895_vm1, %v5469_v45  ;;  %3528 = vmatpush3.bf16.msra.mxu0 %v3653_v34 }
 0xf99   :  { %3529 = vmatprep.subr.bf16.mxu0 %v5469_v45 }
 0xf9c   :  { %3530 = vmatpush3.bf16.msra.mxu0 %v3654_v42 }
 0xf9d   :  { %3531 = vmatprep.subr.bf16.mxu0 %v5469_v45 }
 0xfa0   :  { %3532 = vmatpush3.bf16.msra.mxu0 %v3655_v50 }
 0xfa1   :  { %3533 = vmatprep.subr.bf16.mxu0 %v5469_v45 }
 0xfa4   :  { %3534 = vmatpush3.bf16.msra.mxu0 %v3656_v15 }
 0xfa5   :  { %3535 = vmatprep.subr.bf16.mxu0 %v5469_v45 }
 0xfa8   :  { %3536 = vmatpush3.bf16.msra.mxu0 %v3657_v31 }
 0xfa9   :  { %3537 = vmatprep.subr.bf16.mxu0 %v5469_v45 }
 0xfac   :  { %3538 = vmatpush3.bf16.msra.mxu0 %v3658_v62 }
 0xfad   :  { %3539 = vmatprep.subr.bf16.mxu0 %v5469_v45 }
 0xfb0   :  { %3540 = vmatpush3.bf16.msra.mxu0 %v3659_v28 }
 0xfb1   :  { %3541 = vmatprep.subr.bf16.mxu0 %v5469_v45 }
 0xfb4   :  { %3542 = vmatpush3.bf16.msra.mxu0 %v3660_v36 }
0x106a   :  { %v2606_v35 = vpop.f32.mrb[92].mxu0  ;;  %v2647_v2 = vpop.f32.mrb[76].mxu1 }
0x106b   :  { %v2607_v14 = vadd.f32 %v2606_v35, %v5014_v60  ;;  %v2608_v39 = vpop.f32.mrb[93].mxu0  ;;  %v3525_v4 = vpop.f32.mrb[77].mxu1  ;;  %v2648_v43 = vadd.f32 %v2647_v2, %v5029_v59 }
0x106c   :  { %v2609_v12 = vadd.f32 %v2608_v39, %v5020_v23  ;;  %v2610_v21 = vpop.f32.mrb[94].mxu0  ;;  %v2650_v48 = vpop.f32.mrb[78].mxu1  ;;  %v5503_v23 = vld [vmem:[#allocation12_spill] sm:$0xff] }
0x106d   :  { %v2656_v55 = vadd.f32 %v2607_v14, %v1555_v49  ;;  %v2611_v61 = vpop.f32.mrb[95].mxu0  ;;  %v3526_v45 = vpop.f32.mrb[79].mxu1  ;;  %v1621_v16 = vadd.f32 %v5503_v23, %v5032_v58 }
0x106e   :  { %v2663_v46 = vadd.f32 %v2609_v12, %v1557_v51 }
0x106f   :  { %v2992_v3 = vmul.f32 -1.442695, %v2656_v55 }
0x1070   :  { %v2993_v54 = vmul.f32 -1.442695, %v2663_v46 }
0x1071   :  { %3811 = vpow2.f32 %v2992_v3 }
0x1072   :  { %3813 = vpow2.f32 %v2993_v54 }
0x107b   :  { %v3812_v6 = vpop.eup %3811 }
0x107c   :  { %v2660_v11 = vadd.f32 1.0, %v3812_v6  ;;  %v3814_v60 = vpop.eup %3813 }
0x107d   :  { %v2667_v47 = vadd.f32 1.0, %v3814_v60 }
0x107e   :  { %3815 = vrcp.f32 %v2660_v11 }
0x107f   :  { %3817 = vrcp.f32 %v2667_v47 }
0x1088   :  { %v3816_v38 = vpop.eup %3815 }
0x1089   :  { %v2670_v32 = vmul.f32 %v3816_v38, %v2648_v43  ;;  %v3818_v29 = vpop.eup %3817 }
0x108a   :  { %v2673_v53 = vsub.f32 1.0, %v3818_v29  ;;  %v2675_v37 = vmul.f32 %v3818_v29, %v2570_v20 }
0x108b   :  { %v2671_v63 = vadd.f32 %v2670_v32, %v1621_v16 }
0x108d   :  { %3819 = vtanh.f32 %v2671_v63 }
0x1097   :  { %v3820_v1 = vpop.eup %3819 }
0x1098   :  { %v2674_v40 = vmul.f32 %v3820_v1, %v2673_v53 }
0x109a   :  { %v2676_v41 = vadd.f32 %v2675_v37, %v2674_v40 }
0x109c   :  { %v2679_v52 = vpack.c.bf16 %v2676_v41, %v2676_v41  ;;  %2678 = vst [vmem:[#allocation4 + $0x8] sm:$0xff] %v2676_v41 }
0x109e   :  { %3544 = vmatmul.mubr.bf16.vlgmr.msra.gmra.mrb[96].mxu0 %v2679_v52 }
0x109f   :  { %3880 = shalt.err (!%p3877_p4)
}
0x10a0   :  { %s3881_s29 = scalar_lea.hbm %s5449_s10, 256 }
0x10a1   :  { %p3882_p5 = scmp.ne.s32.totalorder %s5449_s10, %s3881_s29  ;;  %p3885_p6 = scmp.lt.u32.totalorder %s3881_s29, %s5449_s10 }
0x10a3   :  { %p3887_p7 = pnand %p3885_p6, %p3882_p5 }
0x10a5   :  { %3890 = shalt.err (!%p3887_p7)
}
0x10a6   :  { %s3897_s13 = smov 128   ;;  %s3898_s14 = smov 8   ;;  %v2994_v59 = vld [vmem:[%s5447_s8] ss:$0 sm:$0xff] }
0x10a7   :  { %2805 = dma.vmem_to_hbm [thread:$0]  %s2800_s26, 256, %s5449_s10, [#allocation5], %s3897_s13, %s3897_s13, %s3898_s14  }
0x1171   :  { %v2785_v58 = vpop.f32.mrb[96].mxu0 }
0x1172   :  { %v2786_v0 = vadd.f32 %v2994_v59, %v2785_v58  ;;  %v3545_v25 = vpop.f32.mrb[97].mxu0 }
0x1173   :  { %v2788_v27 = vpop.f32.mrb[98].mxu0 }
0x1174   :  { %2791 = vst [vmem:[%s5448_s9] sm:$0xff] %v2786_v0  ;;  %v3546_v30 = vpop.f32.mrb[99].mxu0 }
0x1175   :  { %3891 = dma.done.wait [#allocation5], 256  }
0x1176   :  { %3892 = vsyncadd [#allocation5], 4294967040 }
0x1177   :  { %2811 = vsyncpa [#allocation5], 1 }

</bundles_post_ra>
